<compile_context>
chip_gen: v5e
topology: v5e:2x2
jax: 0.10.0
libtpu: 0.0.40
codegen_flags: <defaults>
</compile_context>

<pallas_src>
import jax
import jax.numpy as jnp
from jax.experimental import pallas as pl
from jax.experimental.pallas import tpu as pltpu


# ----------------------------------------------------------------------------
# Fused kernel: one grid step == (batch element, query tile)
# ----------------------------------------------------------------------------
def _point_transformer_kernel(
    xf_ref, xt_ref,          # x full (1,N,D) and x query tile (1,TI,D)
    pwf_ref, pwt_ref,        # pos @ W1 full (1,N,Hp) and tile (1,TI,Hp)
    wqkv_ref,                # (D, 3D) bf16
    pb1_ref, pw2_ref, pb2_ref,
    aw1_ref, ab1_ref, aw2_ref, ab2_ref,
    o_ref,
    k_scr, v_scr,            # (N, D) f32 VMEM scratch, persistent across i-tiles
):
    i = pl.program_id(1)
    N = xf_ref.shape[1]
    D = xf_ref.shape[2]
    TI = xt_ref.shape[1]
    Hp = pwf_ref.shape[2]

    # --- k/v projection once per batch element, cached in VMEM scratch ---------
    @pl.when(i == 0)
    def _():
        xb = xf_ref[0].astype(jnp.bfloat16)                                   # (N, D)
        kv = jnp.dot(xb, wqkv_ref[:, D:], preferred_element_type=jnp.float32)  # (N, 2D)
        k_scr[...] = kv[:, :D]
        v_scr[...] = kv[:, D:]

    # --- q projection for this query tile only ---------------------------------
    q_i = jnp.dot(xt_ref[0].astype(jnp.bfloat16), wqkv_ref[:, :D],
                  preferred_element_type=jnp.float32)                         # (TI, D)

    k = k_scr[...]                                                            # (N, D)
    v = v_scr[...]                                                            # (N, D)
    pw = pwf_ref[0]                                                           # (N, Hp)
    pw_i = pwt_ref[0]                                                         # (TI, Hp)

    # --- pos_mlp ----------------------------------------------------------------
    # layer 1 (3 -> Hp) is linear, so it was pre-applied in the wrapper; here we
    # only do the broadcast-subtract + bias + ReLU on the VPU.
    h = jnp.maximum(pw_i[:, None, :] - pw[None, :, :] + pb1_ref[...], 0.0)    # (TI, N, Hp)
    # layer 2 (Hp -> D): MXU matmul, bf16 operands, f32 accumulation.
    rel_emb = (jnp.dot(h.reshape(TI * N, Hp).astype(jnp.bfloat16), pw2_ref[...],
                       preferred_element_type=jnp.float32)
               + pb2_ref[...])                                                # (TI*N, D)

    # --- attn_mlp on (q_i - k_j + rel_emb_ij) -----------------------------------
    qk_rel = (q_i[:, None, :] - k[None, :, :]).reshape(TI * N, D)
    sim_in = (qk_rel + rel_emb).astype(jnp.bfloat16)
    hh = jnp.maximum(
        jnp.dot(sim_in, aw1_ref[...], preferred_element_type=jnp.float32)
        + ab1_ref[...], 0.0)                                                  # (TI*N, Ha)
    sim = (jnp.dot(hh.astype(jnp.bfloat16), aw2_ref[...],
                   preferred_element_type=jnp.float32)
           + ab2_ref[...])                                                    # (TI*N, D)

    # --- per-channel softmax over the key axis j, then aggregate ----------------
    # (reduction is over j only, so per-query-tile softmax is exact)
    sim3 = sim.reshape(TI, N, D)
    m = jnp.max(sim3, axis=1, keepdims=True)
    e = jnp.exp(sim3 - m)
    denom = jnp.sum(e, axis=1, keepdims=True)
    attn = e * pl.reciprocal(denom, approx=False)        # exact EUP reciprocal

    v3 = v[None, :, :] + rel_emb.reshape(TI, N, D)                            # (TI, N, D)
    o_ref[0] = jnp.sum(attn * v3, axis=1)                                     # (TI, D)


# ----------------------------------------------------------------------------
# Wrapper: one pallas_call for the whole forward pass
# ----------------------------------------------------------------------------
def point_transformer_forward(params, x, pos4, tile_i=None):
    B, L, K, _ = pos4.shape
    N = L * K
    D = x.shape[-1]
    assert x.shape == (B, N, D)
    pos = pos4.reshape(B, N, 3).astype(jnp.float32)

    Hp_raw = params["pos_w1"].shape[1]
    Hp = ((Hp_raw + 127) // 128) * 128            # pad pos hidden dim to full lanes
    Ha = params["attn_w1"].shape[1]

    # Zero-padding the hidden channels is exact: padded pw / bias channels are 0,
    # ReLU(0) = 0, and the matching rows of pos_w2 are 0.
    pw1 = jnp.pad(params["pos_w1"], ((0, 0), (0, Hp - Hp_raw)))
    pb1 = jnp.pad(params["pos_b1"], ((0, 0), (0, Hp - Hp_raw)))
    pw2 = jnp.pad(params["pos_w2"], ((0, Hp - Hp_raw), (0, 0)))

    # Pre-project positions (pos_mlp layer 1 is linear): lane-dense (B, N, Hp).
    pw_proj = jnp.dot(pos, pw1, precision=jax.lax.Precision.HIGHEST)

    # bf16 MXU operands (accumulation stays f32 inside the kernel); biases stay f32.
    wqkv_bf = params["w_qkv"].astype(jnp.bfloat16)
    pw2_bf = pw2.astype(jnp.bfloat16)
    aw1_bf = params["attn_w1"].astype(jnp.bfloat16)
    aw2_bf = params["attn_w2"].astype(jnp.bfloat16)

    # Query-tile size: keeps the N^2 intermediates bounded as N grows.
    if tile_i is None:
        tile_i = N if N <= 128 else 128
    assert N % tile_i == 0 and (tile_i % 8 == 0 or tile_i == N)
    NI = N // tile_i

    def full2d(shape):
        return pl.BlockSpec(shape, lambda b, i: (0, 0))

    return pl.pallas_call(
        _point_transformer_kernel,
        out_shape=jax.ShapeDtypeStruct((B, N, D), jnp.float32),
        grid=(B, NI),
        in_specs=[
            pl.BlockSpec((1, N, D), lambda b, i: (b, 0, 0)),        # x (full, for k/v)
            pl.BlockSpec((1, tile_i, D), lambda b, i: (b, i, 0)),   # x (query tile, for q)
            pl.BlockSpec((1, N, Hp), lambda b, i: (b, 0, 0)),       # pos @ W1 (full)
            pl.BlockSpec((1, tile_i, Hp), lambda b, i: (b, i, 0)),  # pos @ W1 (query tile)
            full2d((D, 3 * D)),                                     # to_qkv weight (bf16)
            full2d((1, Hp)),                                        # pos_mlp bias 1
            full2d((Hp, D)), full2d((1, D)),                        # pos_mlp layer 2
            full2d((D, Ha)), full2d((1, Ha)),                       # attn_mlp layer 1
            full2d((Ha, D)), full2d((1, D)),                        # attn_mlp layer 2
        ],
        out_specs=pl.BlockSpec((1, tile_i, D), lambda b, i: (b, i, 0)),
        scratch_shapes=[pltpu.VMEM((N, D), jnp.float32),            # k cache
                        pltpu.VMEM((N, D), jnp.float32)],           # v cache
        compiler_params=pltpu.CompilerParams(
            # batch axis -> megacore on v7x; query-tile axis reuses the k/v scratch.
            dimension_semantics=("parallel", "arbitrary"),
            vmem_limit_bytes=64 * 1024 * 1024),
    )(x, x, pw_proj, pw_proj, wqkv_bf,
      pb1, pw2_bf, params["pos_b2"],
      aw1_bf, params["attn_b1"], aw2_bf, params["attn_b2"])


# ----------------------------------------------------------------------------
# Pure-JAX reference (mirrors the PyTorch forward) for a correctness check
# ----------------------------------------------------------------------------
def point_transformer_reference(params, x, pos4):
    hi = jax.lax.Precision.HIGHEST
    B, L, K, _ = pos4.shape
    pos = pos4.reshape(B, L * K, 3)
    qkv = jnp.dot(x, params["w_qkv"], precision=hi)
    q, k, v = jnp.split(qkv, 3, axis=-1)
    rel_pos = pos[:, :, None, :] - pos[:, None, :, :]
    h = jax.nn.relu(jnp.dot(rel_pos, params["pos_w1"], precision=hi) + params["pos_b1"])
    rel_emb = jnp.dot(h, params["pos_w2"], precision=hi) + params["pos_b2"]
    qk_rel = q[:, :, None, :] - k[:, None, :, :]
    # == repeat(v, 'b j d -> b i j d', i=L) + rel_pos_emb (valid in the reference only when K == 1)
    v_b = v[:, None, :, :] + rel_emb
    sim = (jnp.dot(
        jax.nn.relu(jnp.dot(qk_rel + rel_emb, params["attn_w1"], precision=hi)
                    + params["attn_b1"]),
        params["attn_w2"], precision=hi) + params["attn_b2"])
    attn = jax.nn.softmax(sim, axis=-2)
    return jnp.einsum("bijd,bijd->bid", attn, v_b, precision=hi)


# ----------------------------------------------------------------------------
# Deterministic parameter init (weights as (in, out))
# ----------------------------------------------------------------------------
def init_params(key, dim, pos_hidden, attn_mult, scale=0.05):
    ks = jax.random.split(key, 9)

    def w(k, din, dout):
        return scale * jax.random.normal(k, (din, dout), jnp.float32)

    def b(k, dout):
        return scale * jax.random.normal(k, (1, dout), jnp.float32)

    attn_hidden = dim * attn_mult
    return dict(
        w_qkv=w(ks[0], dim, 3 * dim),                               # to_qkv (bias=False)
        pos_w1=w(ks[1], 3, pos_hidden), pos_b1=b(ks[2], pos_hidden),
        pos_w2=w(ks[3], pos_hidden, dim), pos_b2=b(ks[4], dim),
        attn_w1=w(ks[5], dim, attn_hidden), attn_b1=b(ks[6], attn_hidden),
        attn_w2=w(ks[7], attn_hidden, dim), attn_b2=b(ks[8], dim),
    )


# ----------------------------------------------------------------------------
# Main
# ----------------------------------------------------------------------------
if __name__ == "__main__":
    # PointTransformerLayer(dim=128, pos_mlp_hidden_dim=64, attn_mlp_hidden_mult=4,
    #                       num_neighbors=10)
    # TODO(synk): num_neighbors is never used in the reference forward (no kNN gather),
    #             so it is not implemented here.
    dim, pos_hidden, attn_mult = 128, 64, 4

    # TODO(synk): the reference's repeat(v, 'b j d -> b i j d', i=L) only broadcast-matches
    #             rel_pos_emb (B, L*K, L*K, d) when K == 1; the kernel broadcasts v over the
    #             full query axis i = L*K, which is identical for K == 1 (used here).
    B, L, K = 2, 16, 1
    N = L * K

    key = jax.random.PRNGKey(0)
    kp, kx, kpos = jax.random.split(key, 3)
    params = init_params(kp, dim, pos_hidden, attn_mult)
    x = jax.random.normal(kx, (B, N, dim), jnp.float32)
    pos4 = jax.random.normal(kpos, (B, L, K, 3), jnp.float32)

    out = jax.block_until_ready(point_transformer_forward(params, x, pos4))
    ref = jax.block_until_ready(point_transformer_reference(params, x, pos4))

    assert out.shape == (B, N, dim)
    assert bool(jnp.all(jnp.isfinite(out)))
    # Tolerance accounts for bf16 MXU operands (f32 accumulation) vs. the f32
    # HIGHEST-precision reference.
    max_err = float(jnp.max(jnp.abs(out - ref)))
    assert bool(jnp.allclose(out, ref, rtol=5e-2, atol=5e-3)), max_err
    print("KERNEL_OK")
</pallas_src>

<mosaic_0001>
module attributes {stable_mosaic.version = 11 : i64} {
  func.func @_point_transformer_kernel(%arg0: i32, %arg1: i32, %arg2: memref<1x16x128xf32, #tpu.memory_space<vmem>>, %arg3: memref<1x16x128xf32, #tpu.memory_space<vmem>>, %arg4: memref<1x16x128xf32, #tpu.memory_space<vmem>>, %arg5: memref<1x16x128xf32, #tpu.memory_space<vmem>>, %arg6: memref<128x384xbf16, #tpu.memory_space<vmem>>, %arg7: memref<1x128xf32, #tpu.memory_space<vmem>>, %arg8: memref<128x128xbf16, #tpu.memory_space<vmem>>, %arg9: memref<1x128xf32, #tpu.memory_space<vmem>>, %arg10: memref<128x512xbf16, #tpu.memory_space<vmem>>, %arg11: memref<1x512xf32, #tpu.memory_space<vmem>>, %arg12: memref<512x128xbf16, #tpu.memory_space<vmem>>, %arg13: memref<1x128xf32, #tpu.memory_space<vmem>>, %arg14: memref<1x16x128xf32, #tpu.memory_space<vmem>>, %arg15: memref<16x128xf32, #tpu.memory_space<vmem>>, %arg16: memref<16x128xf32, #tpu.memory_space<vmem>>) attributes {dimension_semantics = [#tpu.dimension_semantics<parallel>, #tpu.dimension_semantics<arbitrary>], iteration_bounds = array<i64: 2, 1>, scalar_prefetch = 0 : i64, scratch_operands = 2 : i64, tpu.core_type = #tpu.core_type<tc>, window_params = [{transform_indices = @transform_0, window_bounds = array<i64: 1, 16, 128>}, {transform_indices = @transform_1, window_bounds = array<i64: 1, 16, 128>}, {transform_indices = @transform_2, window_bounds = array<i64: 1, 16, 128>}, {transform_indices = @transform_3, window_bounds = array<i64: 1, 16, 128>}, {pipeline_mode = #tpu.pipeline_mode<synchronous>, transform_indices = @transform_4, window_bounds = array<i64: 128, 384>}, {pipeline_mode = #tpu.pipeline_mode<synchronous>, transform_indices = @transform_5, window_bounds = array<i64: 1, 128>}, {pipeline_mode = #tpu.pipeline_mode<synchronous>, transform_indices = @transform_6, window_bounds = array<i64: 128, 128>}, {pipeline_mode = #tpu.pipeline_mode<synchronous>, transform_indices = @transform_7, window_bounds = array<i64: 1, 128>}, {pipeline_mode = #tpu.pipeline_mode<synchronous>, transform_indices = @transform_8, window_bounds = array<i64: 128, 512>}, {pipeline_mode = #tpu.pipeline_mode<synchronous>, transform_indices = @transform_9, window_bounds = array<i64: 1, 512>}, {pipeline_mode = #tpu.pipeline_mode<synchronous>, transform_indices = @transform_10, window_bounds = array<i64: 512, 128>}, {pipeline_mode = #tpu.pipeline_mode<synchronous>, transform_indices = @transform_11, window_bounds = array<i64: 1, 128>}, {transform_indices = @transform_12, window_bounds = array<i64: 1, 16, 128>}]} {
    %c0_i32 = arith.constant 0 : i32
    %0 = arith.cmpi eq, %arg1, %c0_i32 : i32
    %1 = arith.extui %0 : i1 to i32
    %c0_i32_0 = arith.constant 0 : i32
    %2 = arith.cmpi ne, %1, %c0_i32_0 : i32
    scf.if %2 {
      %c0_40 = arith.constant 0 : index
      %c0_41 = arith.constant 0 : index
      %c0_42 = arith.constant 0 : index
      %73 = vector.load %arg2[%c0_40, %c0_41, %c0_42] : memref<1x16x128xf32, #tpu.memory_space<vmem>>, vector<1x16x128xf32>
      %74 = vector.shape_cast %73 : vector<1x16x128xf32> to vector<16x128xf32>
      %75 = arith.truncf %74 : vector<16x128xf32> to vector<16x128xbf16>
      %c0_43 = arith.constant 0 : index
      %c128 = arith.constant 128 : index
      %76 = vector.load %arg6[%c0_43, %c128] : memref<128x384xbf16, #tpu.memory_space<vmem>>, vector<128x256xbf16>
      %cst_44 = arith.constant dense<0.000000e+00> : vector<16x256xf32>
      %77 = tpu.matmul %75, %76, %cst_44 {dimension_numbers = #tpu.dot_dimension_numbers<[1], [0], [0], [1], [0, 0, 1, 1], [], []>} : vector<16x128xbf16>, vector<128x256xbf16>, vector<16x256xf32> -> vector<16x256xf32>
      %78 = vector.extract_strided_slice %77 {offsets = [0, 0], sizes = [16, 128], strides = [1, 1]} : vector<16x256xf32> to vector<16x128xf32>
      %c0_45 = arith.constant 0 : index
      %c0_46 = arith.constant 0 : index
      %79 = vector.load %arg15[%c0_45, %c0_46] : memref<16x128xf32, #tpu.memory_space<vmem>>, vector<16x128xf32>
      tpu.vector_store %arg15[%c0_45, %c0_46], %78 {strides = array<i32>} : memref<16x128xf32, #tpu.memory_space<vmem>>, vector<16x128xf32>,
      %80 = vector.extract_strided_slice %77 {offsets = [0, 128], sizes = [16, 128], strides = [1, 1]} : vector<16x256xf32> to vector<16x128xf32>
      %c0_47 = arith.constant 0 : index
      %c0_48 = arith.constant 0 : index
      %81 = vector.load %arg16[%c0_47, %c0_48] : memref<16x128xf32, #tpu.memory_space<vmem>>, vector<16x128xf32>
      tpu.vector_store %arg16[%c0_47, %c0_48], %80 {strides = array<i32>} : memref<16x128xf32, #tpu.memory_space<vmem>>, vector<16x128xf32>,
    } else {
    }
    %c0 = arith.constant 0 : index
    %c0_1 = arith.constant 0 : index
    %c0_2 = arith.constant 0 : index
    %3 = vector.load %arg3[%c0, %c0_1, %c0_2] : memref<1x16x128xf32, #tpu.memory_space<vmem>>, vector<1x16x128xf32>
    %4 = vector.shape_cast %3 : vector<1x16x128xf32> to vector<16x128xf32>
    %5 = arith.truncf %4 : vector<16x128xf32> to vector<16x128xbf16>
    %c0_3 = arith.constant 0 : index
    %c0_4 = arith.constant 0 : index
    %6 = vector.load %arg6[%c0_3, %c0_4] : memref<128x384xbf16, #tpu.memory_space<vmem>>, vector<128x128xbf16>
    %cst = arith.constant dense<0.000000e+00> : vector<16x128xf32>
    %7 = tpu.matmul %5, %6, %cst {dimension_numbers = #tpu.dot_dimension_numbers<[1], [0], [0], [1], [0, 0, 1, 1], [], []>} : vector<16x128xbf16>, vector<128x128xbf16>, vector<16x128xf32> -> vector<16x128xf32>
    %c0_5 = arith.constant 0 : index
    %c0_6 = arith.constant 0 : index
    %8 = vector.load %arg15[%c0_5, %c0_6] : memref<16x128xf32, #tpu.memory_space<vmem>>, vector<16x128xf32>
    %c0_7 = arith.constant 0 : index
    %c0_8 = arith.constant 0 : index
    %9 = vector.load %arg16[%c0_7, %c0_8] : memref<16x128xf32, #tpu.memory_space<vmem>>, vector<16x128xf32>
    %c0_9 = arith.constant 0 : index
    %c0_10 = arith.constant 0 : index
    %c0_11 = arith.constant 0 : index
    %10 = vector.load %arg4[%c0_9, %c0_10, %c0_11] : memref<1x16x128xf32, #tpu.memory_space<vmem>>, vector<1x16x128xf32>
    %11 = vector.shape_cast %10 : vector<1x16x128xf32> to vector<16x128xf32>
    %c0_12 = arith.constant 0 : index
    %c0_13 = arith.constant 0 : index
    %c0_14 = arith.constant 0 : index
    %12 = vector.load %arg5[%c0_12, %c0_13, %c0_14] : memref<1x16x128xf32, #tpu.memory_space<vmem>>, vector<1x16x128xf32>
    %13 = vector.shape_cast %12 : vector<1x16x128xf32> to vector<16x128xf32>
    %14 = vector.shape_cast %13 : vector<16x128xf32> to vector<16x1x128xf32>
    %15 = vector.shape_cast %11 : vector<16x128xf32> to vector<1x16x128xf32>
    %16 = vector.broadcast %14 : vector<16x1x128xf32> to vector<16x16x128xf32>
    %17 = vector.broadcast %15 : vector<1x16x128xf32> to vector<16x16x128xf32>
    %18 = arith.subf %16, %17 : vector<16x16x128xf32>
    %c0_15 = arith.constant 0 : index
    %c0_16 = arith.constant 0 : index
    %19 = vector.load %arg7[%c0_15, %c0_16] : memref<1x128xf32, #tpu.memory_space<vmem>>, vector<1x128xf32>
    %20 = vector.shape_cast %19 : vector<1x128xf32> to vector<1x1x128xf32>
    %21 = vector.broadcast %20 : vector<1x1x128xf32> to vector<16x16x128xf32>
    %22 = arith.addf %18, %21 : vector<16x16x128xf32>
    %cst_17 = arith.constant 0.000000e+00 : f32
    %23 = vector.broadcast %cst_17 : f32 to vector<16x16x128xf32>
    %24 = arith.maximumf %22, %23 : vector<16x16x128xf32>
    %25 = vector.shape_cast %24 : vector<16x16x128xf32> to vector<256x128xf32>
    %26 = arith.truncf %25 : vector<256x128xf32> to vector<256x128xbf16>
    %c0_18 = arith.constant 0 : index
    %c0_19 = arith.constant 0 : index
    %27 = vector.load %arg8[%c0_18, %c0_19] : memref<128x128xbf16, #tpu.memory_space<vmem>>, vector<128x128xbf16>
    %cst_20 = arith.constant dense<0.000000e+00> : vector<256x128xf32>
    %28 = tpu.matmul %26, %27, %cst_20 {dimension_numbers = #tpu.dot_dimension_numbers<[1], [0], [0], [1], [0, 0, 1, 1], [], []>} : vector<256x128xbf16>, vector<128x128xbf16>, vector<256x128xf32> -> vector<256x128xf32>
    %c0_21 = arith.constant 0 : index
    %c0_22 = arith.constant 0 : index
    %29 = vector.load %arg9[%c0_21, %c0_22] : memref<1x128xf32, #tpu.memory_space<vmem>>, vector<1x128xf32>
    %30 = vector.broadcast %29 : vector<1x128xf32> to vector<256x128xf32>
    %31 = arith.addf %28, %30 : vector<256x128xf32>
    %32 = vector.shape_cast %7 : vector<16x128xf32> to vector<16x1x128xf32>
    %33 = vector.shape_cast %8 : vector<16x128xf32> to vector<1x16x128xf32>
    %34 = vector.broadcast %32 : vector<16x1x128xf32> to vector<16x16x128xf32>
    %35 = vector.broadcast %33 : vector<1x16x128xf32> to vector<16x16x128xf32>
    %36 = arith.subf %34, %35 : vector<16x16x128xf32>
    %37 = vector.shape_cast %36 : vector<16x16x128xf32> to vector<256x128xf32>
    %38 = arith.addf %37, %31 : vector<256x128xf32>
    %39 = arith.truncf %38 : vector<256x128xf32> to vector<256x128xbf16>
    %c0_23 = arith.constant 0 : index
    %c0_24 = arith.constant 0 : index
    %40 = vector.load %arg10[%c0_23, %c0_24] : memref<128x512xbf16, #tpu.memory_space<vmem>>, vector<128x512xbf16>
    %cst_25 = arith.constant dense<0.000000e+00> : vector<256x512xf32>
    %41 = tpu.matmul %39, %40, %cst_25 {dimension_numbers = #tpu.dot_dimension_numbers<[1], [0], [0], [1], [0, 0, 1, 1], [], []>} : vector<256x128xbf16>, vector<128x512xbf16>, vector<256x512xf32> -> vector<256x512xf32>
    %c0_26 = arith.constant 0 : index
    %c0_27 = arith.constant 0 : index
    %42 = vector.load %arg11[%c0_26, %c0_27] : memref<1x512xf32, #tpu.memory_space<vmem>>, vector<1x512xf32>
    %43 = vector.broadcast %42 : vector<1x512xf32> to vector<256x512xf32>
    %44 = arith.addf %41, %43 : vector<256x512xf32>
    %cst_28 = arith.constant 0.000000e+00 : f32
    %45 = vector.broadcast %cst_28 : f32 to vector<256x512xf32>
    %46 = arith.maximumf %44, %45 : vector<256x512xf32>
    %47 = arith.truncf %46 : vector<256x512xf32> to vector<256x512xbf16>
    %c0_29 = arith.constant 0 : index
    %c0_30 = arith.constant 0 : index
    %48 = vector.load %arg12[%c0_29, %c0_30] : memref<512x128xbf16, #tpu.memory_space<vmem>>, vector<512x128xbf16>
    %cst_31 = arith.constant dense<0.000000e+00> : vector<256x128xf32>
    %49 = tpu.matmul %47, %48, %cst_31 {dimension_numbers = #tpu.dot_dimension_numbers<[1], [0], [0], [1], [0, 0, 1, 1], [], []>} : vector<256x512xbf16>, vector<512x128xbf16>, vector<256x128xf32> -> vector<256x128xf32>
    %c0_32 = arith.constant 0 : index
    %c0_33 = arith.constant 0 : index
    %50 = vector.load %arg13[%c0_32, %c0_33] : memref<1x128xf32, #tpu.memory_space<vmem>>, vector<1x128xf32>
    %51 = vector.broadcast %50 : vector<1x128xf32> to vector<256x128xf32>
    %52 = arith.addf %49, %51 : vector<256x128xf32>
    %53 = vector.shape_cast %52 : vector<256x128xf32> to vector<16x16x128xf32>
    %cst_34 = arith.constant dense<0xFF800000> : vector<16x128xf32>
    %54 = vector.multi_reduction <maximumf>, %53, %cst_34 [1] : vector<16x16x128xf32> to vector<16x128xf32>
    %55 = vector.shape_cast %54 : vector<16x128xf32> to vector<16x1x128xf32>
    %56 = vector.broadcast %55 : vector<16x1x128xf32> to vector<16x16x128xf32>
    %57 = arith.subf %53, %56 : vector<16x16x128xf32>
    %58 = math.exp %57 : vector<16x16x128xf32>
    %cst_35 = arith.constant dense<0.000000e+00> : vector<16x128xf32>
    %59 = vector.multi_reduction <add>, %58, %cst_35 [1] : vector<16x16x128xf32> to vector<16x128xf32>
    %60 = vector.shape_cast %59 : vector<16x128xf32> to vector<16x1x128xf32>
    %61 = tpu.reciprocal %60 : vector<16x1x128xf32> -> vector<16x1x128xf32>
    %62 = vector.broadcast %61 : vector<16x1x128xf32> to vector<16x16x128xf32>
    %63 = arith.mulf %58, %62 : vector<16x16x128xf32>
    %64 = vector.shape_cast %9 : vector<16x128xf32> to vector<1x16x128xf32>
    %65 = vector.shape_cast %31 : vector<256x128xf32> to vector<16x16x128xf32>
    %66 = vector.broadcast %64 : vector<1x16x128xf32> to vector<16x16x128xf32>
    %67 = arith.addf %66, %65 : vector<16x16x128xf32>
    %68 = arith.mulf %63, %67 : vector<16x16x128xf32>
    %cst_36 = arith.constant dense<0.000000e+00> : vector<16x128xf32>
    %69 = vector.multi_reduction <add>, %68, %cst_36 [1] : vector<16x16x128xf32> to vector<16x128xf32>
    %c0_37 = arith.constant 0 : index
    %c0_38 = arith.constant 0 : index
    %c0_39 = arith.constant 0 : index
    %70 = vector.load %arg14[%c0_37, %c0_38, %c0_39] : memref<1x16x128xf32, #tpu.memory_space<vmem>>, vector<1x16x128xf32>
    %71 = vector.shape_cast %70 : vector<1x16x128xf32> to vector<16x128xf32>
    %72 = vector.shape_cast %69 : vector<16x128xf32> to vector<1x16x128xf32>
    tpu.vector_store %arg14[%c0_37, %c0_38, %c0_39], %72 {strides = array<i32>} : memref<1x16x128xf32, #tpu.memory_space<vmem>>, vector<1x16x128xf32>,
    return
  }
  func.func @transform_0(%arg0: i32, %arg1: i32) -> (i32, i32, i32) {
    %c0_i32 = arith.constant 0 : i32
    %c0_i32_0 = arith.constant 0 : i32
    %c0_i32_1 = arith.constant 0 : i32
    return %arg0, %c0_i32, %c0_i32_0 : i32, i32, i32
  }
  func.func @transform_1(%arg0: i32, %arg1: i32) -> (i32, i32, i32) {
    %c0_i32 = arith.constant 0 : i32
    %c0_i32_0 = arith.constant 0 : i32
    return %arg0, %arg1, %c0_i32 : i32, i32, i32
  }
  func.func @transform_2(%arg0: i32, %arg1: i32) -> (i32, i32, i32) {
    %c0_i32 = arith.constant 0 : i32
    %c0_i32_0 = arith.constant 0 : i32
    %c0_i32_1 = arith.constant 0 : i32
    return %arg0, %c0_i32, %c0_i32_0 : i32, i32, i32
  }
  func.func @transform_3(%arg0: i32, %arg1: i32) -> (i32, i32, i32) {
    %c0_i32 = arith.constant 0 : i32
    %c0_i32_0 = arith.constant 0 : i32
    return %arg0, %arg1, %c0_i32 : i32, i32, i32
  }
  func.func @transform_4(%arg0: i32, %arg1: i32) -> (i32, i32) {
    %c0_i32 = arith.constant 0 : i32
    %c0_i32_0 = arith.constant 0 : i32
    %c0_i32_1 = arith.constant 0 : i32
    return %c0_i32, %c0_i32_0 : i32, i32
  }
  func.func @transform_5(%arg0: i32, %arg1: i32) -> (i32, i32) {
    %c0_i32 = arith.constant 0 : i32
    %c0_i32_0 = arith.constant 0 : i32
    %c0_i32_1 = arith.constant 0 : i32
    return %c0_i32, %c0_i32_0 : i32, i32
  }
  func.func @transform_6(%arg0: i32, %arg1: i32) -> (i32, i32) {
    %c0_i32 = arith.constant 0 : i32
    %c0_i32_0 = arith.constant 0 : i32
    %c0_i32_1 = arith.constant 0 : i32
    return %c0_i32, %c0_i32_0 : i32, i32
  }
  func.func @transform_7(%arg0: i32, %arg1: i32) -> (i32, i32) {
    %c0_i32 = arith.constant 0 : i32
    %c0_i32_0 = arith.constant 0 : i32
    %c0_i32_1 = arith.constant 0 : i32
    return %c0_i32, %c0_i32_0 : i32, i32
  }
  func.func @transform_8(%arg0: i32, %arg1: i32) -> (i32, i32) {
    %c0_i32 = arith.constant 0 : i32
    %c0_i32_0 = arith.constant 0 : i32
    %c0_i32_1 = arith.constant 0 : i32
    return %c0_i32, %c0_i32_0 : i32, i32
  }
  func.func @transform_9(%arg0: i32, %arg1: i32) -> (i32, i32) {
    %c0_i32 = arith.constant 0 : i32
    %c0_i32_0 = arith.constant 0 : i32
    %c0_i32_1 = arith.constant 0 : i32
    return %c0_i32, %c0_i32_0 : i32, i32
  }
  func.func @transform_10(%arg0: i32, %arg1: i32) -> (i32, i32) {
    %c0_i32 = arith.constant 0 : i32
    %c0_i32_0 = arith.constant 0 : i32
    %c0_i32_1 = arith.constant 0 : i32
    return %c0_i32, %c0_i32_0 : i32, i32
  }
  func.func @transform_11(%arg0: i32, %arg1: i32) -> (i32, i32) {
    %c0_i32 = arith.constant 0 : i32
    %c0_i32_0 = arith.constant 0 : i32
    %c0_i32_1 = arith.constant 0 : i32
    return %c0_i32, %c0_i32_0 : i32, i32
  }
  func.func @transform_12(%arg0: i32, %arg1: i32) -> (i32, i32, i32) {
    %c0_i32 = arith.constant 0 : i32
    %c0_i32_0 = arith.constant 0 : i32
    return %arg0, %arg1, %c0_i32 : i32, i32, i32
  }
}

</mosaic_0001>

<bundles_post_ra>
// kernel: tpu_custom_call.1
= control target key start
LH: loop header
LB: loop body
LE: loop exit
PB: predicated region body
PF: predicated region fallthrough
CT: control target
= control target key end

     0   :  { %s6372_s0 = inlined_call_operand.hbm [shape: f32[2,16,128], index: 0, kind: input, shape index: {}]   ;;  %s6373_s1 = inlined_call_operand.hbm [shape: f32[2,16,128], index: 1, kind: input, shape index: {}]   ;;  %s6374_s2 = inlined_call_operand.hbm [shape: f32[2,16,128], index: 2, kind: input, shape index: {}]   ;;  %s6375_s3 = inlined_call_operand.hbm [shape: f32[2,16,128], index: 3, kind: input, shape index: {}]   ;;  %s6376_s4 = inlined_call_operand.hbm [shape: bf16[128,384], index: 4, kind: input, shape index: {}]   ;;  %s6377_s5 = inlined_call_operand.vmem [shape: f32[1,128], index: 5, kind: input, shape index: {}]   ;;  %s6378_s6 = inlined_call_operand.hbm [shape: bf16[128,128], index: 6, kind: input, shape index: {}]   ;;  %s6379_s7 = inlined_call_operand.vmem [shape: f32[1,128], index: 7, kind: input, shape index: {}]   ;;  %s6380_s8 = inlined_call_operand.hbm [shape: bf16[128,512], index: 8, kind: input, shape index: {}]   ;;  %s6381_s9 = inlined_call_operand.vmem [shape: f32[1,512], index: 9, kind: input, shape index: {}]   ;;  %s6382_s10 = inlined_call_operand.hbm [shape: bf16[512,128], index: 10, kind: input, shape index: {}]   ;;  %s6383_s11 = inlined_call_operand.vmem [shape: f32[1,128], index: 11, kind: input, shape index: {}]   ;;  %s6384_s12 = inlined_call_operand.hbm [shape: f32[2,16,128], index: 12, kind: output, shape index: {}]  }
   0x1   :  { %6423 = sst [smem:[#allocation55_spill]] %s6373_s1 }
   0x2   :  { %6424 = sst [smem:[#allocation56_spill]] %s6376_s4 }
   0x3   :  { %6425 = sst [smem:[#allocation57_spill]] %s6378_s6 }
   0x4   :  { %6426 = sst [smem:[#allocation58_spill]] %s6379_s7 }
   0x5   :  { %6427 = sst [smem:[#allocation59_spill]] %s6381_s9 }
   0x6   :  { %6428 = sst [smem:[#allocation60_spill]] %s6383_s11 }
   0x7   :  { %6429 = sst [smem:[#allocation61_spill]] %s6384_s12 }
   0x8   :  { %17 = vsyncpa [#allocation5], 0 }
   0x9   :  { %19 = vsyncpa [#allocation5 + $0x1], 0 }
   0xa   :  { %20 = vsyncpa [#allocation8], 0 }
   0xb   :  { %22 = vsyncpa [#allocation8 + $0x1], 0 }
   0xc   :  { %23 = vsyncpa [#allocation11], 0 }
   0xd   :  { %25 = vsyncpa [#allocation11 + $0x1], 0 }
   0xe   :  { %26 = vsyncpa [#allocation14], 0 }
   0xf   :  { %27 = vsyncpa [#allocation17], 0 }
  0x10   :  { %28 = vsyncpa [#allocation6], 0 }
  0x11   :  { %30 = vsyncpa [#allocation6 + $0x1], 0  ;;  %s4879_s21 = smov 0   ;;  %s4881_s22 = smov 0  }
  0x12   :  { %s4883_s23 = smov 0   ;;  %s4885_s24 = smov 0  }
  0x13   :  { %s4887_s25 = smov 0   ;;  %s4889_s26 = smov 0  }
  0x14 LB: > { %6430 = sst [smem:[#allocation26_spill]] %s4778_s21  ;;  %s4910_s27 = sadd.s32 4294967295, %s4798_s26   ;;  %s4798_s26 = sphi %s4889_s26, %s36_s26   ;;  %s4794_s25 = sphi %s4887_s25, %s6506_s25   ;;  %s4790_s24 = sphi %s4885_s24, %s6505_s24   ;;  %s4786_s23 = sphi %s4883_s23, %s6509_s23   ;;  %s4782_s22 = sphi %s4881_s22, %s6508_s22   ;;  %s4778_s21 = sphi %s4879_s21, %s6507_s21  }
  0x15   : > { %6431 = sst [smem:[#allocation27_spill]] %s4790_s24  ;;  %s3693_s28 = sadd.s32 4294967294, %s4798_s26  }
  0x16   : > { %6432 = sst [smem:[#allocation28_spill]] %s4794_s25  ;;  %p68_p0 = scmp.ne.s32.totalorder %s4782_s22, %s4778_s21 }
  0x17   : > { %p69_p1 = scmp.eq.s32.totalorder %s4910_s27, 0  ;;  %p344_p2 = scmp.eq.s32.totalorder %s4910_s27, 1 }
  0x18   : > { %p350_p3 = scmp.eq.s32.totalorder %s3693_s28, 1  ;;  %p3694_p5 = scmp.ge.s32.totalorder %s4798_s26, 1 }
  0x19   : > { %p4919_p4 = por %p69_p1, %p68_p0  ;;  %p357_p7 = scmp.lt.s32.totalorder %s4798_s26, 3 }
  0x1a   : > { %p4924_p6 = por %p350_p3, %p68_p0  ;;  %s6436_s4 = sld [smem:[#allocation56_spill]] }
  0x1b   : > { %p4932_p8 = pnand %p3694_p5, %p357_p7  ;;  %s4800_s17 = smov [#allocation12]  }
  0x1c   : > { %s6434_s30 = scalar_select %p4924_p6, 1, 0 }
  0x1d   : > { %p4254_p9 = pneg %p4932_p8  ;;  %s370_s18 = sshll.u32 %s4800_s17, 4  ;;  %s371_s18 = int_to_ptr.vmem [resolvable:$true] %s370_s18 }
  0x1e   : > { %6435 = sst [smem:[#allocation29_spill]] %s6434_s30  ;;  %p3699_p11 = scmp.ge.s32.totalorder %s4798_s26, 2 }
  0x1f   : > { %p4940_p10 = pnand %p4254_p9, %p69_p1  ;;  %s6439_s6 = sld [smem:[#allocation57_spill]] }
  0x20   : > { %s368_s15 = sshll.u32 %s6436_s4, 4  ;;  %s4801_s14 = smov 192   ;;  %s369_s15 = int_to_ptr.hbm [resolvable:$true] %s368_s15 }
  0x21   : > { %s4802_s17 = smov 12   ;;  %s4803_s4 = smov [#allocation13]  }
  0x22   : > { %4257 = dma.hbm_to_vmem [thread:$0]  (!%p4940_p10), %s369_s15, 3072, %s371_s18, [#allocation11], %s4801_s14, %s4801_s14, %s4802_s17  }
  0x23   : > { %s387_s30 = sshll.u32 %s4803_s4, 4  ;;  %s6388_s21 = smov 64   ;;  %s388_s30 = int_to_ptr.vmem [resolvable:$true] %s387_s30 }
  0x24   : > { %s6389_s12 = smov 4   ;;  %s48_s20 = sadd.s32 1, %s4794_s25 }
  0x25   : > { %s385_s13 = sshll.u32 %s6439_s6, 4  ;;  %s55_s28 = sadd.s32 1, %s4786_s23  ;;  %s386_s13 = int_to_ptr.hbm [resolvable:$true] %s385_s13 }
  0x26   : > { %4260 = dma.hbm_to_vmem [thread:$0]  (!%p4940_p10), %s386_s13, 1024, %s388_s30, [#allocation14], %s6388_s21, %s6388_s21, %s6389_s12  }
  0x27   : > { %p50_p12 = scmp.ge.s32.totalorder %s48_s20, 2  ;;  %p62_p13 = scmp.ne.s32.totalorder %s4786_s23, %s4782_s22 }
  0x28   : > { %p63_p0 = scmp.eq.s32.totalorder %s4798_s26, 0  ;;  %p4288_p3 = scmp.lt.s32.totalorder %s4798_s26, 2 }
  0x29   : > { %s6511_s20 = smov (%p50_p12, %s48_s20), 0  ;;  %p4965_p7 = por %p344_p2, %p62_p13 }
  0x2a   : > { %6440 = sst [smem:[#allocation30_spill]] %s6511_s20  ;;  %p64_p5 = por %p63_p0, %p62_p13 }
  0x2b   : > { %s6441_s4 = scalar_select %p4965_p7, 1, 0 }
  0x2c   : > { %s52_s15 = ssub.s32 %s4794_s25, %s6511_s20  ;;  %s6393_s30 = sand.u32 1, %s4786_s23  }
  0x2d   : > { %6442 = sst [smem:[#allocation31_spill]] %s6441_s4  ;;  %p53_p9 = scmp.eq.s32.totalorder %s52_s15, 0 }
  0x2e   : > { %s4974_s18 = sshll.u32 %s6393_s30, 4  ;;  %s4977_s13 = sshll.u32 %s4794_s25, 4 }
  0x2f   : > { %p4979_p12 = pnand %p4288_p3, %p64_p5  ;;  %s6396_s21 = sand.u32 1, %s4798_s26  }
  0x30   : > { %s4984_s17 = scalar_select %p53_p9, %s4786_s23, %s55_s28  }
  0x31   : > { %s6445_s1 = sld [smem:[#allocation55_spill]]  ;;  %s464_s15 = scalar_lea.vmem [#allocation7], %s4974_s18 }
  0x32   : > { %6444 = sst [smem:[#allocation32_spill]] %s4984_s17  ;;  %s474_s4 = sshll.u32 %s464_s15, 4  ;;  %s475_s4 = int_to_ptr.vmem [resolvable:$true] %s474_s4 }
  0x33   : > { %s4994_s25 = scalar_lea.sflag [#allocation8], %s6396_s21  ;;  %s6397_s24 = smov 128  }
  0x34   : > { %s6399_s11 = smov 8   ;;  %s4808_s28 = smov [#allocation15]  }
  0x35   : > { %s404_s15 = sshll.u32 %s4808_s28, 4  ;;  %s419_s17 = sshll.u32 %s6382_s10, 4  ;;  %s405_s15 = int_to_ptr.vmem [resolvable:$true] %s404_s15  ;;  %s420_s17 = int_to_ptr.hbm [resolvable:$true] %s419_s17 }
  0x36   : > { %s4809_s9 = smov 256   ;;  %s4810_s7 = smov 16  }
  0x37   : > { %s471_s20 = scalar_lea.hbm %s6445_s1, %s4977_s13  ;;  %s6446_s6 = smov 4  }
  0x38   : > { %s472_s30 = sshll.u32 %s471_s20, 4  ;;  %s402_s20 = sshll.u32 %s6380_s8, 4  ;;  %s473_s30 = int_to_ptr.hbm [resolvable:$true] %s472_s30  ;;  %s403_s20 = int_to_ptr.hbm [resolvable:$true] %s402_s20 }
  0x39   : > { %4273 = dma.hbm_to_vmem [thread:$0]  (!%p4979_p12), %s473_s30, 256, %s475_s4, %s4994_s25, %s6397_s24, %s6397_s24, %s6399_s11  }
  0x3a   : > { %4263 = dma.hbm_to_vmem [thread:$0]  (!%p4940_p10), %s403_s20, 4096, %s405_s15, [#allocation14], %s4809_s9, %s4809_s9, %s4810_s7  }
  0x3b   : > { %s4811_s4 = smov [#allocation16]   ;;  %s6447_s12 = smov 64  }
  0x3c   : > { %s421_s30 = sshll.u32 %s4811_s4, 4  ;;  %s447_s28 = scalar_lea.hbm %s6372_s0, %s4977_s13  ;;  %s422_s30 = int_to_ptr.vmem [resolvable:$true] %s421_s30 }
  0x3d   : > { %4266 = dma.hbm_to_vmem [thread:$0]  (!%p4940_p10), %s420_s17, 4096, %s422_s30, [#allocation17], %s6447_s12, %s6447_s12, %s6446_s6  }
  0x3e   : > { %s442_s24 = scalar_lea.vmem [#allocation4], %s4974_s18  ;;  %s448_s7 = sshll.u32 %s447_s28, 4  ;;  %s449_s7 = int_to_ptr.hbm [resolvable:$true] %s448_s7 }
  0x3f   : > { %s450_s11 = sshll.u32 %s442_s24, 4  ;;  %s6448_s9 = sand.u32 1, %s4786_s23   ;;  %s451_s11 = int_to_ptr.vmem [resolvable:$true] %s450_s11 }
  0x40   : > { %s439_s19 = scalar_lea.sflag [#allocation5], %s6448_s9  ;;  %s6449_s20 = smov 8  }
  0x41   : > { %s6450_s15 = smov 128   ;;  %s493_s30 = scalar_lea.hbm %s6374_s2, %s4977_s13 }
  0x42   : > { %4270 = dma.hbm_to_vmem [thread:$0]  (!%p4979_p12), %s449_s7, 256, %s451_s11, %s439_s19, %s6450_s15, %s6450_s15, %s6449_s20  }
  0x43   : > { %s488_s6 = scalar_lea.vmem [#allocation9], %s4974_s18  ;;  %s494_s1 = sshll.u32 %s493_s30, 4  ;;  %s495_s1 = int_to_ptr.hbm [resolvable:$true] %s494_s1 }
  0x44   : > { %s496_s12 = sshll.u32 %s488_s6, 4  ;;  %s517_s28 = scalar_lea.hbm %s6375_s3, %s4977_s13  ;;  %s497_s12 = int_to_ptr.vmem [resolvable:$true] %s496_s12 }
  0x45   : > { %4276 = dma.hbm_to_vmem [thread:$0]  (!%p4979_p12), %s495_s1, 256, %s497_s12, %s4994_s25, %s6450_s15, %s6450_s15, %s6449_s20  }
  0x46   : > { %s510_s9 = scalar_lea.vmem [#allocation10], %s4974_s18  ;;  %s518_s7 = sshll.u32 %s517_s28, 4  ;;  %s519_s7 = int_to_ptr.hbm [resolvable:$true] %s518_s7 }
  0x47   : > { %s520_s11 = sshll.u32 %s510_s9, 4  ;;  %s6451_s19 = sand.u32 1, %s4798_s26   ;;  %s521_s11 = int_to_ptr.vmem [resolvable:$true] %s520_s11 }
  0x48   : > { %s507_s17 = scalar_lea.sflag [#allocation11], %s6451_s19  ;;  %532 = sbr.rel (%p4932_p8) target bundleno = 1021 (0x3fd), region = 68 }
  0x49   : > { %4279 = dma.hbm_to_vmem [thread:$0]  (!%p4979_p12), %s519_s7, 256, %s521_s11, %s507_s17, %s6450_s15, %s6450_s15, %s6449_s20  }
  0x4d   : > { %s5053_s25 = sand.u32 1, %s4782_s22  }
  0x4e   : > { %s5056_s18 = sshll.u32 %s5053_s25, 4  ;;  %s535_s13 = scalar_lea.sflag [#allocation5], %s5053_s25 }
  0x4f   : > { %s538_s4 = scalar_lea.vmem [#allocation4], %s5056_s18 }
  0x50   : > { %4749 = dma.done.wait (%p4919_p4), %s535_s13, 256  }
  0x51   : > { %4751 = vsyncadd (%p4919_p4), %s535_s13, 4294967040  ;;  %s544_s16 = sand.u32 1, %s4910_s27   ;;  %s548_s20 = scalar_lea.vmem [#allocation7], %s5056_s18 }
  0x52   : > { %s545_s14 = scalar_lea.sflag [#allocation8], %s544_s16 }
  0x53   : > { %4753 = dma.done.wait (%p4919_p4), %s545_s14, 512  }
  0x54   : > { %4755 = vsyncadd (%p4919_p4), %s545_s14, 4294966784  ;;  %s558_s15 = scalar_lea.vmem [#allocation9], %s5056_s18  ;;  %s565_s30 = scalar_lea.sflag [#allocation11], %s544_s16 }
  0x55   : > { %s568_s6 = scalar_lea.vmem [#allocation10], %s5056_s18 }
  0x56   : > { %4757 = dma.done.wait (%p4919_p4), %s565_s30, 256  }
  0x57   : > { %4759 = vsyncadd (%p4919_p4), %s565_s30, 4294967040 }
  0x58   : > { %4761 = dma.done.wait (%p69_p1), [#allocation11], 3072  }
  0x59   : > { %4763 = vsyncadd (%p69_p1), [#allocation11], 4294964224 }
  0x5a   : > { %4765 = dma.done.wait (%p69_p1), [#allocation14], 5120  }
  0x5b   : > { %4767 = vsyncadd (%p69_p1), [#allocation14], 4294962176 }
  0x5c   : > { %4769 = dma.done.wait (%p69_p1), [#allocation17], 4096  }
  0x5d   : > { %4771 = vsyncadd (%p69_p1), [#allocation17], 4294963200  ;;  %v3780_v0 = vld [vmem:[#allocation12 + $0xac] sm:$0xf]  ;;  %v4130_v1 = vld [vmem:[#allocation12 + $0xb4] sm:$0xf0] }
  0x5e   : > { %v4129_v2 = vld [vmem:[#allocation12 + $0xb0] sm:$0xf]  ;;  %v3781_v3 = vor.u32 %v4130_v1, %v3780_v0  ;;  %v3782_v4 = vld [vmem:[#allocation12 + $0xb8] sm:$0xf0]  ;;  %v3772_v6 = vld [vmem:[#allocation12 + $0x94] sm:$0xf] }
  0x5f   : > { %v5088_v5 = vld [vmem:[#allocation13 + $0x38] sm:$0xff]  ;;  %v3785_v7 = vor.u32 %v4129_v2, %v3782_v4  ;;  %v4128_v8 = vld [vmem:[#allocation12 + $0x9c] sm:$0xf0]  ;;  %v3774_v10 = vld [vmem:[#allocation12 + $0xa0] sm:$0xf0]  ;;  %s6452_s24 = sld [smem:[#allocation58_spill]] }
  0x60   : > { %v4127_v9 = vld [vmem:[#allocation12 + $0x98] sm:$0xf]  ;;  %751 = vmatpush.bf16.msra.mxu0 %v3781_v3  ;;  %4212 = vmatpush.bf16.msra.mxu1 %v5088_v5  ;;  %v3773_v11 = vor.u32 %v4128_v8, %v3772_v6  ;;  %v5091_v12 = vld [vmem:[#allocation13 + $0x30] sm:$0xff]  ;;  %v3764_v14 = vld [vmem:[#allocation12 + $0x7c] sm:$0xf]  ;;  %s6467_s9 = sld [smem:[#allocation59_spill]] }
  0x61   : > { %765 = vmatpush.bf16.msra.mxu2 %v3785_v7  ;;  %4213 = vmatpush.bf16.msra.mxu3 %v5088_v5  ;;  %v3777_v13 = vor.u32 %v4127_v9, %v3774_v10  ;;  %v4126_v15 = vld [vmem:[#allocation12 + $0x84] sm:$0xf0]  ;;  %v4125_v16 = vld [vmem:[#allocation12 + $0x80] sm:$0xf]  ;;  %v3766_v17 = vld [vmem:[#allocation12 + $0x88] sm:$0xf0] }
  0x62   : > { %v3765_v18 = vor.u32 %v4126_v15, %v3764_v14  ;;  %v5095_v19 = vld [vmem:[#allocation13 + $0x28] sm:$0xff]  ;;  %v3769_v20 = vor.u32 %v4125_v16, %v3766_v17  ;;  %v3756_v21 = vld [vmem:[#allocation12 + $0x64] sm:$0xf]  ;;  %v4124_v22 = vld [vmem:[#allocation12 + $0x6c] sm:$0xf0]  ;;  %s6476_s19 = sld [smem:[#allocation60_spill]] }
  0x63   : > { %v4123_v23 = vld [vmem:[#allocation12 + $0x68] sm:$0xf]  ;;  %v3758_v24 = vld [vmem:[#allocation12 + $0x70] sm:$0xf0]  ;;  %v3757_v25 = vor.u32 %v4124_v22, %v3756_v21  ;;  %v5099_v26 = vld [vmem:[#allocation13 + $0x20] sm:$0xff]  ;;  %vm3455_vm10 = vcmask 1041409  }
  0x64   : > { %752 = vmatpush.bf16.msra.mxu0 %v3773_v11  ;;  %4214 = vmatpush.bf16.msra.mxu1 %v5091_v12  ;;  %v3761_v27 = vor.u32 %v4123_v23, %v3758_v24  ;;  %v3748_v28 = vld [vmem:[#allocation12 + $0x4c] sm:$0xf]  ;;  %v4122_v29 = vld [vmem:[#allocation12 + $0x54] sm:$0xf0]  ;;  %v4121_v30 = vld [vmem:[#allocation12 + $0x50] sm:$0xf] }
  0x65   : > { %766 = vmatpush.bf16.msra.mxu2 %v3777_v13  ;;  %4215 = vmatpush.bf16.msra.mxu3 %v5091_v12  ;;  %v3750_v31 = vld [vmem:[#allocation12 + $0x58] sm:$0xf0]  ;;  %v5106_v33 = vld [vmem:[%s568_s6] sm:$0xff]  ;;  %v3749_v34 = vor.u32 %v4122_v29, %v3748_v28  ;;  %v4119_v43 = vld [vmem:[#allocation12 + $0x38] sm:$0xf]  ;;  %vm3457_vm15 = vcmask 1042434  }
  0x66   : > { %v5102_v32 = vld [vmem:[#allocation13 + $0x18] sm:$0xff]  ;;  %v3740_v35 = vld [vmem:[#allocation12 + $0x34] sm:$0xf]  ;;  %v877_v36 = vrot.slane %v5106_v33, 4  ;;  %v3753_v38 = vor.u32 %v4121_v30, %v3750_v31  ;;  %v4120_v39 = vld [vmem:[#allocation12 + $0x3c] sm:$0xf0] }
  0x67   : > { %v5112_v37 = vld [vmem:[%s568_s6 + $0x8] sm:$0xff]  ;;  %v5117_v40 = vld [vmem:[%s558_s15] sm:$0xff]  ;;  %v3741_v48 = vor.u32 %v4120_v39, %v3740_v35  ;;  %v878_v11 = vrot.slane %v5106_v33, 5  ;;  %s3481_s12 = scalar_lea.sflag [#allocation6], %s5053_s25 }
  0x68   : > { %753 = vmatpush.bf16.msra.mxu0 %v3765_v18  ;;  %4216 = vmatpush.bf16.msra.mxu1 %v5095_v19  ;;  %v5121_v41 = vld [vmem:[%s558_s15 + $0x8] sm:$0xff]  ;;  %v882_v42 = vrot.slane %v5112_v37, 2  ;;  %v3742_v44 = vld [vmem:[#allocation12 + $0x40] sm:$0xf0]  ;;  %v892_v45 = vperm.slane %v877_v36, 0  ;;  %v5130_v49 = vld [vmem:[#allocation13 + $0x10] sm:$0xff] }
  0x69   : > { %767 = vmatpush.bf16.msra.mxu2 %v3769_v20  ;;  %4217 = vmatpush.bf16.msra.mxu3 %v5095_v19  ;;  %v5127_v46 = vld [vmem:[%s6377_s5] ss:$0 sm:$0xff]  ;;  %v3745_v52 = vor.u32 %v4119_v43, %v3742_v44  ;;  %v3732_v53 = vld [vmem:[#allocation12 + $0x1c] sm:$0xf]  ;;  %v4118_v54 = vld [vmem:[#allocation12 + $0x24] sm:$0xf0] }
  0x6a   : > { %v898_v47 = vperm.slane %v882_v42, 0  ;;  %v928_v50 = vsub.f32 %v892_v45, %v5117_v40  ;;  %v929_v51 = vsub.f32 %v892_v45, %v5121_v41  ;;  %v4117_v57 = vld [vmem:[#allocation12 + $0x20] sm:$0xf]  ;;  %v3734_v58 = vld [vmem:[#allocation12 + $0x28] sm:$0xf0]  ;;  %v3733_v61 = vor.u32 %v4118_v54, %v3732_v53  ;;  %s6500_s15 = sld [smem:[#allocation61_spill]] }
  0x6b   : > { %v5140_v62 = vld [vmem:[#allocation13 + $0x8] sm:$0xff]  ;;  %v3737_v1 = vor.u32 %v4117_v57, %v3734_v58  ;;  %v3724_v2 = vld [vmem:[#allocation12 + $0x4] sm:$0xf]  ;;  %v4116_v3 = vld [vmem:[#allocation12 + $0xc] sm:$0xf0]  ;;  %v883_v20 = vrot.slane %v5112_v37, 3 }
  0x6c   : > { %754 = vmatpush.bf16.msra.mxu0 %v3757_v25  ;;  %4218 = vmatpush.bf16.msra.mxu1 %v5099_v26  ;;  %v940_v55 = vsub.f32 %v898_v47, %v5117_v40  ;;  %v941_v56 = vsub.f32 %v898_v47, %v5121_v41  ;;  %v964_v59 = vadd.f32 %v5127_v46, %v928_v50  ;;  %v4115_v4 = vld [vmem:[#allocation12 + $0x8] sm:$0xf]  ;;  %v3726_v6 = vld [vmem:[#allocation12 + $0x10] sm:$0xf0]  ;;  %v5147_v14 = vld [vmem:[#allocation13] sm:$0xff]  ;;  %v893_v28 = vperm.slane %v878_v11, 0 }
  0x6d   : > { %768 = vmatpush.bf16.msra.mxu2 %v3761_v27  ;;  %4219 = vmatpush.bf16.msra.mxu3 %v5099_v26  ;;  %v965_v60 = vadd.f32 %v5127_v46, %v929_v51  ;;  %v3816_v7 = vld [vmem:[#allocation12 + $0xa8] sm:$0xf]  ;;  %v4138_v8 = vld [vmem:[#allocation12 + $0xb0] sm:$0xf0]  ;;  %v3725_v13 = vor.u32 %v4116_v3, %v3724_v2  ;;  %v3729_v21 = vor.u32 %v4115_v4, %v3726_v6  ;;  %v3812_v24 = vld [vmem:[#allocation12 + $0x90] sm:$0xf] }
  0x6e   : > { %v976_v63 = vadd.f32 %v5127_v46, %v940_v55  ;;  %v977_v0 = vadd.f32 %v5127_v46, %v941_v56  ;;  %v996_v9 = vmax.f32 %v964_v59, 0.0  ;;  %v652_v17 = vld [vmem:[%s538_s4] sm:$0xff]  ;;  %v653_v18 = vld [vmem:[%s538_s4 + $0x8] sm:$0xff]  ;;  %v3817_v22 = vor.u32 %v4138_v8, %v3816_v7  ;;  %s6194_s4 = scalar_lea.vmem [#allocation18], %s5056_s18  ;;  %s6497_s18 = sld [smem:[#allocation27_spill]] }
  0x6f   : > { %v997_v10 = vmax.f32 %v965_v60, 0.0  ;;  %v4137_v25 = vld [vmem:[#allocation12 + $0x98] sm:$0xf0]  ;;  %v654_v27 = vpack.c.bf16 %v653_v18, %v652_v17  ;;  %v899_v30 = vperm.slane %v883_v20, 0  ;;  %v4136_v35 = vld [vmem:[#allocation12 + $0x80] sm:$0xf0]  ;;  %v930_v36 = vsub.f32 %v893_v28, %v5117_v40 }
  0x70   : > { %755 = vmatpush.bf16.msra.mxu0 %v3749_v34  ;;  %4220 = vmatpush.bf16.msra.mxu1 %v5102_v32  ;;  %v1008_v15 = vmax.f32 %v976_v63, 0.0  ;;  %v1009_v16 = vmax.f32 %v977_v0, 0.0  ;;  %v3813_v31 = vor.u32 %v4137_v25, %v3812_v24  ;;  %v3808_v34 = vld [vmem:[#allocation12 + $0x78] sm:$0xf]  ;;  %v4135_v44 = vld [vmem:[#allocation12 + $0x68] sm:$0xf0] }
  0x71   : > { %769 = vmatpush.bf16.msra.mxu2 %v3753_v38  ;;  %4221 = vmatpush.bf16.msra.mxu3 %v5102_v32  ;;  %v1024_v23 = vpack.c.bf16 %v997_v10, %v996_v9  ;;  %v931_v38 = vsub.f32 %v893_v28, %v5121_v41  ;;  %v942_v39 = vsub.f32 %v899_v30, %v5117_v40  ;;  %v879_v53 = vrot.slane %v5106_v33, 6  ;;  %v4134_v54 = vld [vmem:[#allocation12 + $0x50] sm:$0xf0]  ;;  %v4133_v0 = vld [vmem:[#allocation12 + $0x38] sm:$0xf0]  ;;  %s3495_s27 = sshll.u32 %s6194_s4, 4  ;;  %s3496_s27 = int_to_ptr.vmem [resolvable:$true] %s3495_s27 }
  0x72   : > { %v1030_v29 = vpack.c.bf16 %v1009_v16, %v1008_v15  ;;  %v943_v42 = vsub.f32 %v899_v30, %v5121_v41  ;;  %v3809_v43 = vor.u32 %v4136_v35, %v3808_v34  ;;  %v966_v45 = vadd.f32 %v5127_v46, %v930_v36  ;;  %v4132_v9 = vld [vmem:[#allocation12 + $0x20] sm:$0xf0]  ;;  %v3788_v16 = vld [vmem:[#allocation12] sm:$0xf]  ;;  %v4131_v17 = vld [vmem:[#allocation12 + $0x8] sm:$0xf0] }
  0x73   : > { %v967_v47 = vadd.f32 %v5127_v46, %v931_v38  ;;  %v884_v56 = vrot.slane %v5112_v37, 4  ;;  %v888_v59 = vperm.slane %v5106_v33, 0  ;;  %v886_v24 = vrot.slane %v5112_v37, 6 }
  0x74   : > { %756 = vmatpush.bf16.msra.mxu0 %v3741_v48  ;;  %4222 = vmatpush.bf16.msra.mxu1 %v5130_v49  ;;  %v978_v48 = vadd.f32 %v5127_v46, %v942_v39  ;;  %v979_v50 = vadd.f32 %v5127_v46, %v943_v42  ;;  %v3789_v25 = vor.u32 %v4131_v17, %v3788_v16  ;;  %v880_v30 = vrot.slane %v5106_v33, 7  ;;  %s4211_s16 = sshll.u32 %s6497_s18, 4 }
  0x75   : > { %770 = vmatpush.bf16.msra.mxu2 %v3745_v52  ;;  %4223 = vmatpush.bf16.msra.mxu3 %v5130_v49  ;;  %v3800_v52 = vld [vmem:[#allocation12 + $0x48] sm:$0xf]  ;;  %v999_v55 = vmax.f32 %v967_v47, 0.0  ;;  %v920_v3 = vsub.f32 %v888_v59, %v5117_v40  ;;  %v921_v4 = vsub.f32 %v888_v59, %v5121_v41  ;;  %v896_v35 = vperm.slane %v5112_v37, 0  ;;  %s3494_s6 = scalar_lea.hbm %s6500_s15, %s4211_s16 }
  0x76   : > { %v1010_v57 = vmax.f32 %v978_v48, 0.0  ;;  %v1011_v58 = vmax.f32 %v979_v50, 0.0  ;;  %v3801_v60 = vor.u32 %v4134_v54, %v3800_v52  ;;  %v902_v36 = vperm.slane %v886_v24, 0  ;;  %s3497_s29 = sshll.u32 %s3494_s6, 4  ;;  %s3498_s29 = int_to_ptr.hbm [resolvable:$true] %s3497_s29 }
  0x77   : > { %v957_v15 = vadd.f32 %v5127_v46, %v921_v4  ;;  %v885_v42 = vrot.slane %v5112_v37, 5  ;;  %v895_v48 = vperm.slane %v880_v30, 0  ;;  %v875_v16 = vrot.slane %v5106_v33, 2  ;;  %s4710_s1 = sshra.s32 %s3498_s29, 4  ;;  %s4711_s1 = int_to_ptr.hbm [resolvable:$true] %s4710_s1 }
  0x78   : > { %757 = vmatpush.bf16.msra.mxu0 %v3733_v61  ;;  %4224 = vmatpush.bf16.msra.mxu1 %v5140_v62  ;;  %v894_v61 = vperm.slane %v879_v53, 0  ;;  %v1031_v2 = vpack.c.bf16 %v1011_v58, %v1010_v57  ;;  %v948_v50 = vsub.f32 %v902_v36, %v5117_v40  ;;  %p4717_p8 = scmp.lt.s32.totalorder %s4711_s1, %s6500_s15 }
  0x79   : > { %771 = vmatpush.bf16.msra.mxu2 %v3737_v1  ;;  %4225 = vmatpush.bf16.msra.mxu3 %v5140_v62  ;;  %v900_v1 = vperm.slane %v884_v56, 0 }
  0x7a   : > { %v932_v7 = vsub.f32 %v894_v61, %v5117_v40  ;;  %v933_v8 = vsub.f32 %v894_v61, %v5121_v41  ;;  %v935_v61 = vsub.f32 %v895_v48, %v5121_v41 }
  0x7b   : > { %v944_v10 = vsub.f32 %v900_v1, %v5117_v40  ;;  %v945_v11 = vsub.f32 %v900_v1, %v5121_v41 }
  0x7c   : > { %758 = vmatpush.bf16.msra.mxu0 %v3725_v13  ;;  %4226 = vmatpush.bf16.msra.mxu1 %v5147_v14  ;;  %v956_v13 = vadd.f32 %v5127_v46, %v920_v3  ;;  %v968_v18 = vadd.f32 %v5127_v46, %v932_v7  ;;  %v969_v20 = vadd.f32 %v5127_v46, %v933_v8  ;;  %v3974_v7 = vld [vmem:[#allocation15 + $0xf8] sm:$0xf0]  ;;  %v876_v8 = vrot.slane %v5106_v33, 3 }
  0x7d   : > { %772 = vmatpush.bf16.msra.mxu2 %v3729_v21  ;;  %4227 = vmatpush.bf16.msra.mxu3 %v5147_v14  ;;  %v980_v21 = vadd.f32 %v5127_v46, %v944_v10  ;;  %v971_v10 = vadd.f32 %v5127_v46, %v935_v61  ;;  %v4171_v61 = vld [vmem:[#allocation15 + $0xc4] sm:$0xf] }
  0x7e   : > { %v988_v28 = vmax.f32 %v956_v13, 0.0  ;;  %v1001_v34 = vmax.f32 %v969_v20, 0.0  ;;  %v891_v13 = vperm.slane %v876_v8, 0  ;;  %v881_v20 = vrot.slane %v5112_v37, 1  ;;  %v3964_v8 = vld [vmem:[#allocation15 + $0xe0] sm:$0xf] }
  0x7f   : > { %1132 = vmatmul.bf16.vlgmr.msra.gmra.mxu1 %v1024_v23  ;;  %759 = vmatmul.bf16.vlgmr.msra.gmra.mxu0 %v654_v27  ;;  %v874_v23 = vrot.slane %v5106_v33, 1  ;;  %v1012_v38 = vmax.f32 %v980_v21, 0.0  ;;  %v887_v21 = vrot.slane %v5112_v37, 7 }
  0x80   : > { %1104 = vmatpush.bf16.msrb.mxu0 %v5088_v5  ;;  %1162 = vmatmul.bf16.vlgmr.msra.gmra.mxu3 %v1030_v29  ;;  %v3804_v5 = vld [vmem:[#allocation12 + $0x60] sm:$0xf]  ;;  %v989_v29 = vmax.f32 %v957_v15, 0.0  ;;  %v926_v17 = vsub.f32 %v891_v13, %v5117_v40 }
  0x81   : > { %850 = vmatpush.bf16.msrb.mxu2 %v3817_v22  ;;  %v3805_v51 = vor.u32 %v4135_v44, %v3804_v5  ;;  %v981_v22 = vadd.f32 %v5127_v46, %v945_v11  ;;  %v889_v5 = vperm.slane %v874_v23, 0  ;;  %v936_v44 = vsub.f32 %v896_v35, %v5117_v40 }
  0x82   : > { %773 = vmatmul.bf16.vlgmr.msra.gmra.mxu2 %v654_v27  ;;  %v783_v27 = vld [vmem:[%s548_s20] sm:$0xff]  ;;  %v1020_v47 = vpack.c.bf16 %v989_v29, %v988_v28  ;;  %v897_v28 = vperm.slane %v881_v20, 0  ;;  %v903_v29 = vperm.slane %v887_v21, 0 }
  0x83   : > { %v1013_v39 = vmax.f32 %v981_v22, 0.0  ;;  %v972_v52 = vadd.f32 %v5127_v46, %v936_v44  ;;  %v922_v57 = vsub.f32 %v889_v5, %v5117_v40  ;;  %v923_v58 = vsub.f32 %v889_v5, %v5121_v41  ;;  %v4173_v20 = vld [vmem:[#allocation15 + $0xcc] sm:$0xf0] }
  0x84   : > { %1105 = vmatpush.bf16.msrb.mxu0 %v5091_v12  ;;  %v998_v12 = vmax.f32 %v966_v45, 0.0  ;;  %v937_v45 = vsub.f32 %v896_v35, %v5121_v41 }
  0x85   : > { %851 = vmatpush.bf16.msrb.mxu2 %v3813_v31  ;;  %v1000_v31 = vmax.f32 %v968_v18, 0.0  ;;  %v1032_v54 = vpack.c.bf16 %v1013_v39, %v1012_v38  ;;  %v1004_v59 = vmax.f32 %v972_v52, 0.0  ;;  %v958_v4 = vadd.f32 %v5127_v46, %v922_v57 }
  0x86   : > { %v1025_v63 = vpack.c.bf16 %v999_v55, %v998_v12  ;;  %v973_v53 = vadd.f32 %v5127_v46, %v937_v45  ;;  %v901_v12 = vperm.slane %v885_v42, 0  ;;  %v984_v55 = vadd.f32 %v5127_v46, %v948_v50 }
  0x87   : > { %v927_v18 = vsub.f32 %v891_v13, %v5121_v41  ;;  %v990_v22 = vmax.f32 %v958_v4, 0.0  ;;  %v939_v38 = vsub.f32 %v897_v28, %v5121_v41  ;;  %v950_v39 = vsub.f32 %v903_v29, %v5117_v40 }
  0x88   : > { %1106 = vmatpush.bf16.msrb.mxu0 %v5095_v19  ;;  %v3796_v19 = vld [vmem:[#allocation12 + $0x30] sm:$0xf]  ;;  %v946_v1 = vsub.f32 %v901_v12, %v5117_v40  ;;  %v951_v42 = vsub.f32 %v903_v29, %v5121_v41 }
  0x89   : > { %852 = vmatpush.bf16.msrb.mxu2 %v3809_v43  ;;  %v3797_v6 = vor.u32 %v4133_v0, %v3796_v19  ;;  %v975_v45 = vadd.f32 %v5127_v46, %v939_v38  ;;  %v986_v50 = vadd.f32 %v5127_v46, %v950_v39  ;;  %v3894_v39 = vld [vmem:[#allocation15 + $0x58] sm:$0xf0] }
  0x8a   : > { %v982_v15 = vadd.f32 %v5127_v46, %v946_v1  ;;  %v4168_v1 = vld [vmem:[#allocation15 + $0xac] sm:$0xf] }
  0x8c   : > { %1107 = vmatpush.bf16.msrb.mxu0 %v5099_v26  ;;  %v3792_v26 = vld [vmem:[#allocation12 + $0x18] sm:$0xf]  ;;  %v1014_v33 = vmax.f32 %v982_v15, 0.0  ;;  %v4164_v15 = vld [vmem:[#allocation15 + $0x8c] sm:$0xf] }
  0x8d   : > { %853 = vmatpush.bf16.msrb.mxu2 %v3805_v51  ;;  %v1026_v51 = vpack.c.bf16 %v1001_v34, %v1000_v31  ;;  %v890_v31 = vperm.slane %v875_v16, 0  ;;  %v3948_v16 = vld [vmem:[#allocation15 + $0xc0] sm:$0xf] }
  0x8e   : > { %v3949_v21 = vor.u32 %v4173_v20, %v3948_v16  ;;  %v3854_v16 = vld [vmem:[#allocation15 + $0x10] sm:$0xf0]  ;;  %v4154_v20 = vld [vmem:[#allocation15 + $0x34] sm:$0xf0] }
  0x8f   : > { %1137 = vmatmul.bf16.gmra.mxu1 %v1025_v63  ;;  %v1016_v63 = vmax.f32 %v984_v55, 0.0  ;;  %v1018_v55 = vmax.f32 %v986_v50, 0.0  ;;  %v3956_v50 = vld [vmem:[#allocation15 + $0xc8] sm:$0xf] }
  0x90   : > { %1108 = vmatpush.bf16.msrb.mxu0 %v5102_v32  ;;  %1167 = vmatmul.bf16.gmra.mxu3 %v1031_v2  ;;  %v3793_v32 = vor.u32 %v4132_v9, %v3792_v26  ;;  %v947_v2 = vsub.f32 %v901_v12, %v5121_v41  ;;  %v959_v26 = vadd.f32 %v5127_v46, %v923_v58  ;;  %v3966_v12 = vld [vmem:[#allocation15 + $0xf0] sm:$0xf0] }
  0x91   : > { %854 = vmatpush.bf16.msrb.mxu2 %v3801_v60  ;;  %v1005_v60 = vmax.f32 %v973_v53, 0.0  ;;  %v1007_v53 = vmax.f32 %v975_v45, 0.0  ;;  %v4178_v45 = vld [vmem:[#allocation15 + $0xf4] sm:$0xf0] }
  0x92   : > { %v991_v23 = vmax.f32 %v959_v26, 0.0 }
  0x93   : > { %v5209_v0 = vpack.c.bf16 %v1005_v60, %v1004_v59  ;;  %v4172_v60 = vld [vmem:[#allocation15 + $0xcc] sm:$0xf] }
  0x94   : > { %1109 = vmatpush.bf16.msrb.mxu0 %v5130_v49  ;;  %v784_v49 = vld [vmem:[%s548_s20 + $0x8] sm:$0xff]  ;;  %v1021_v37 = vpack.c.bf16 %v991_v23, %v990_v22  ;;  %v3932_v23 = vld [vmem:[#allocation15 + $0xa0] sm:$0xf] }
  0x95   : > { %855 = vmatpush.bf16.msrb.mxu2 %v3797_v6  ;;  %v785_v43 = vpack.c.bf16 %v784_v49, %v783_v27  ;;  %v4176_v6 = vld [vmem:[#allocation15 + $0xec] sm:$0xf]  ;;  %v962_v27 = vadd.f32 %v5127_v46, %v926_v17  ;;  %v963_v49 = vadd.f32 %v5127_v46, %v927_v18  ;;  %v4163_v17 = vld [vmem:[#allocation15 + $0x84] sm:$0xf]  ;;  %v3918_v18 = vld [vmem:[#allocation15 + $0x90] sm:$0xf0] }
  0x96   : > { %v3977_v11 = vor.u32 %v4176_v6, %v3974_v7  ;;  %v4167_v6 = vld [vmem:[#allocation15 + $0xa4] sm:$0xf]  ;;  %v3934_v7 = vld [vmem:[#allocation15 + $0xb0] sm:$0xf0] }
  0x97   : > { %v994_v34 = vmax.f32 %v962_v27, 0.0  ;;  %v995_v35 = vmax.f32 %v963_v49, 0.0  ;;  %v4160_v27 = vld [vmem:[#allocation15 + $0x6c] sm:$0xf]  ;;  %v3910_v49 = vld [vmem:[#allocation15 + $0x78] sm:$0xf0] }
  0x98   : > { %1110 = vmatpush.bf16.msrb.mxu0 %v5140_v62  ;;  %v949_v62 = vsub.f32 %v902_v36, %v5121_v41  ;;  %1790 = vmatpush.bf16.msrb.mxu3 %v3977_v11  ;;  %v938_v36 = vsub.f32 %v897_v28, %v5117_v40  ;;  %v4177_v11 = vld [vmem:[#allocation15 + $0xec] sm:$0xf0] }
  0x99   : > { %856 = vmatpush.bf16.msrb.mxu2 %v3793_v32  ;;  %v983_v32 = vadd.f32 %v5127_v46, %v947_v2  ;;  %v5233_v5 = vpack.c.bf16 %v995_v35, %v994_v34  ;;  %v3942_v2 = vld [vmem:[#allocation15 + $0xb8] sm:$0xf0]  ;;  %v3965_v13 = vor.u32 %v4177_v11, %v3964_v8  ;;  %v3916_v35 = vld [vmem:[#allocation15 + $0x80] sm:$0xf]  ;;  %v4158_v8 = vld [vmem:[#allocation15 + $0x54] sm:$0xf0] }
  0x9a   : > { %v985_v56 = vadd.f32 %v5127_v46, %v949_v62  ;;  %v974_v44 = vadd.f32 %v5127_v46, %v938_v36  ;;  %v987_v62 = vadd.f32 %v5127_v46, %v951_v42  ;;  %v4165_v36 = vld [vmem:[#allocation15 + $0x8c] sm:$0xf0]  ;;  %v4155_v42 = vld [vmem:[#allocation15 + $0x44] sm:$0xf] }
  0x9b   : > { %v1015_v30 = vmax.f32 %v983_v32, 0.0  ;;  %v3926_v32 = vld [vmem:[#allocation15 + $0x98] sm:$0xf0]  ;;  %v3917_v38 = vor.u32 %v4165_v36, %v3916_v35 }
  0x9c   : > { %1111 = vmatpush.bf16.msrb.mxu0 %v5147_v14  ;;  %v934_v14 = vsub.f32 %v895_v48, %v5117_v40  ;;  %v1017_v19 = vmax.f32 %v985_v56, 0.0  ;;  %v925_v48 = vsub.f32 %v890_v31, %v5121_v41  ;;  %v1006_v52 = vmax.f32 %v974_v44, 0.0  ;;  %v3886_v44 = vld [vmem:[#allocation15 + $0x50] sm:$0xf0]  ;;  %v4186_v36 = vld [vmem:[#allocation16 + $0x38] sm:$0xff] }
  0x9d   : > { %857 = vmatpush.bf16.msrb.mxu2 %v3789_v25  ;;  %v1003_v25 = vmax.f32 %v971_v10, 0.0  ;;  %v1019_v56 = vmax.f32 %v987_v62, 0.0  ;;  %v3945_v10 = vor.u32 %v4168_v1, %v3942_v2  ;;  %v3929_v22 = vor.u32 %v4164_v15, %v3926_v32  ;;  %v3908_v1 = vld [vmem:[#allocation15 + $0x68] sm:$0xf]  ;;  %v4162_v2 = vld [vmem:[#allocation15 + $0x74] sm:$0xf0] }
  0x9e   : > { %v5213_v3 = vpack.c.bf16 %v1017_v19, %v1016_v63  ;;  %v970_v9 = vadd.f32 %v5127_v46, %v934_v14  ;;  %v1029_v58 = vpack.c.bf16 %v1007_v53, %v1006_v52  ;;  %v3958_v14 = vld [vmem:[#allocation15 + $0xd8] sm:$0xf0]  ;;  %v3950_v19 = vld [vmem:[#allocation15 + $0xd0] sm:$0xf0]  ;;  %v3940_v53 = vld [vmem:[#allocation15 + $0xa8] sm:$0xf] }
  0x9f   : > { %1112 = vmatmul.bf16.vlgmr.msrb.gmra.mxu0 %v1020_v47  ;;  %1142 = vmatmul.bf16.gmra.mxu1 %v1026_v51  ;;  %v924_v47 = vsub.f32 %v890_v31, %v5117_v40  ;;  %v1033_v51 = vpack.c.bf16 %v1015_v30, %v1014_v33  ;;  %v961_v40 = vadd.f32 %v5127_v46, %v925_v48  ;;  %v4159_v30 = vld [vmem:[#allocation15 + $0x64] sm:$0xf]  ;;  %v3902_v31 = vld [vmem:[#allocation15 + $0x70] sm:$0xf0]  ;;  %v4161_v48 = vld [vmem:[#allocation15 + $0x6c] sm:$0xf0] }
  0xa0   : > { %858 = vmatmul.bf16.vlgmr.msrb.gmra.mxu2 %v785_v43  ;;  %1172 = vmatmul.bf16.gmra.mxu3 %v1032_v54  ;;  %v1002_v24 = vmax.f32 %v970_v9, 0.0  ;;  %v4175_v54 = vld [vmem:[#allocation15 + $0xe4] sm:$0xf]  ;;  %v1035_v41 = vpack.c.bf16 %v1019_v56, %v1018_v55  ;;  %v3961_v63 = vor.u32 %v4172_v60, %v3958_v14  ;;  %v3953_v4 = vor.u32 %v4171_v61, %v3950_v19  ;;  %v3924_v55 = vld [vmem:[#allocation15 + $0x88] sm:$0xf] }
  0xa1   : > { %v3969_v57 = vor.u32 %v4175_v54, %v3966_v12  ;;  %v960_v59 = vadd.f32 %v5127_v46, %v924_v47  ;;  %v993_v9 = vmax.f32 %v961_v40, 0.0  ;;  %v3937_v46 = vor.u32 %v4167_v6, %v3934_v7  ;;  %1523 = vmatpush.bf16.msra.mxu0 %v3965_v13  ;;  %v4170_v54 = vld [vmem:[#allocation15 + $0xb4] sm:$0xf0]  ;;  %v4152_v40 = vld [vmem:[#allocation15 + $0x2c] sm:$0xf] }
  0xa2   : > { %v1027_v43 = vpack.c.bf16 %v1003_v25, %v1002_v24  ;;  %1791 = vmatpush.bf16.msrb.mxu3 %v3961_v63  ;;  %v4169_v24 = vld [vmem:[#allocation15 + $0xac] sm:$0xf0]  ;;  %v3921_v25 = vor.u32 %v4163_v17, %v3918_v18  ;;  %v3913_v33 = vor.u32 %v4160_v27, %v3910_v49  ;;  %v3905_v34 = vor.u32 %v4159_v30, %v3902_v31  ;;  %v4166_v56 = vld [vmem:[#allocation15 + $0x94] sm:$0xf0]  ;;  %v3878_v60 = vld [vmem:[#allocation15 + $0x38] sm:$0xf0] }
  0xa3   : > { %1612 = vmatpush.bf16.msrb.mxu1 %v3969_v57  ;;  %v992_v26 = vmax.f32 %v960_v59, 0.0  ;;  %v3933_v29 = vor.u32 %v4169_v24, %v3932_v23  ;;  %v3941_v12 = vor.u32 %v4170_v54, %v3940_v53  ;;  %v3925_v57 = vor.u32 %v4166_v56, %v3924_v55  ;;  %v4157_v59 = vld [vmem:[#allocation15 + $0x4c] sm:$0xf0]  ;;  %v4151_v14 = vld [vmem:[#allocation15 + $0x24] sm:$0xf]  ;;  %v4202_v30 = vld [vmem:[#allocation16 + $0xb8] sm:$0xff] }
  0xa4   : > { %v3870_v61 = vld [vmem:[#allocation15 + $0x30] sm:$0xf0]  ;;  %v3881_v63 = vor.u32 %v4152_v40, %v3878_v60  ;;  %v3892_v7 = vld [vmem:[#allocation15 + $0x48] sm:$0xf]  ;;  %v3862_v13 = vld [vmem:[#allocation15 + $0x18] sm:$0xf0] }
  0xa5   : > { %v1022_v28 = vpack.c.bf16 %v993_v9, %v992_v26  ;;  %1524 = vmatpush.bf16.msra.mxu0 %v3949_v21  ;;  %v3873_v19 = vor.u32 %v4151_v14, %v3870_v61  ;;  %v3893_v26 = vor.u32 %v4158_v8, %v3892_v7  ;;  %v3868_v9 = vld [vmem:[#allocation15 + $0x20] sm:$0xf]  ;;  %v4147_v32 = vld [vmem:[#allocation15 + $0x4] sm:$0xf]  ;;  %v3876_v17 = vld [vmem:[#allocation15 + $0x28] sm:$0xf] }
  0xa6   : > { %1792 = vmatpush.bf16.msrb.mxu3 %v3945_v10  ;;  %v4153_v10 = vld [vmem:[#allocation15 + $0x2c] sm:$0xf0]  ;;  %v3857_v18 = vor.u32 %v4147_v32, %v3854_v16  ;;  %v3877_v21 = vor.u32 %v4154_v20, %v3876_v17  ;;  %v3852_v24 = vld [vmem:[#allocation15] sm:$0xf]  ;;  %v3860_v27 = vld [vmem:[#allocation15 + $0x8] sm:$0xf] }
  0xa7   : > { %1613 = vmatpush.bf16.msrb.mxu1 %v3953_v4  ;;  %v3909_v4 = vor.u32 %v4162_v2, %v3908_v1  ;;  %v3869_v11 = vor.u32 %v4153_v10, %v3868_v9  ;;  %v4201_v10 = vld [vmem:[#allocation16 + $0xb0] sm:$0xff] }
  0xa9   : > { %1525 = vmatpush.bf16.msra.mxu0 %v3933_v29 }
  0xaa   : > { %1793 = vmatpush.bf16.msrb.mxu3 %v3929_v22 }
  0xab   : > { %1614 = vmatpush.bf16.msrb.mxu1 %v3937_v46  ;;  %v4148_v46 = vld [vmem:[#allocation15 + $0xc] sm:$0xf] }
  0xac   : > { %v3865_v15 = vor.u32 %v4148_v46, %v3862_v13 }
  0xad   : > { %1526 = vmatpush.bf16.msra.mxu0 %v3917_v38  ;;  %v4210_v38 = vld [vmem:[#allocation16 + $0xf8] sm:$0xff] }
  0xae   : > { %1794 = vmatpush.bf16.msrb.mxu3 %v3913_v33 }
  0xaf   : > { %1117 = vmatmul.bf16.gmra.mxu0 %v1021_v37  ;;  %1147 = vmatmul.bf16.gmra.mxu1 %v1027_v43  ;;  %v4156_v37 = vld [vmem:[#allocation15 + $0x4c] sm:$0xf] }
  0xb0   : > { %1177 = vmatmul.bf16.gmra.mxu3 %v1033_v51  ;;  %1615 = vmatpush.bf16.msrb.mxu1 %v3921_v25  ;;  %v3897_v43 = vor.u32 %v4156_v37, %v3894_v39  ;;  %v4174_v51 = vld [vmem:[#allocation15 + $0xd4] sm:$0xf0]  ;;  %v4149_v25 = vld [vmem:[#allocation15 + $0xc] sm:$0xf0] }
  0xb1   : > { %v3957_v52 = vor.u32 %v4174_v51, %v3956_v50  ;;  %v3853_v49 = vor.u32 %v4149_v25, %v3852_v24  ;;  %v4194_v37 = vld [vmem:[#allocation16 + $0x78] sm:$0xff]  ;;  %v4185_v24 = vld [vmem:[#allocation16 + $0x30] sm:$0xff] }
  0xb2   : > { %1795 = vmatpush.bf16.msrb.mxu3 %v3897_v43  ;;  %v4209_v25 = vld [vmem:[#allocation16 + $0xf0] sm:$0xff] }
  0xb4   : > { %1616 = vmatpush.bf16.msrb.mxu1 %v3905_v34 }
  0xb6   : > { %1796 = vmatpush.bf16.msrb.mxu3 %v3881_v63 }
  0xba   : > { %1797 = vmatpush.bf16.msrb.mxu3 %v3865_v15 }
  0xbe   : > { %2598 = vmatpush.bf16.msra.mxu3 %v4210_v38 }
  0xbf   : > { %1122 = vmatmul.bf16.gmra.mxu0 %v1022_v28  ;;  %1152 = vmatmul.bf16.gmra.mxu1 %v5209_v0  ;;  %v3972_v0 = vld [vmem:[#allocation15 + $0xe8] sm:$0xf]  ;;  %v4150_v28 = vld [vmem:[#allocation15 + $0x14] sm:$0xf0] }
  0xc0   : > { %1182 = vmatmul.bf16.gmra.mxu3 %v5213_v3  ;;  %v3889_v3 = vor.u32 %v4155_v42, %v3886_v44  ;;  %v3973_v47 = vor.u32 %v4178_v45, %v3972_v0  ;;  %v3861_v29 = vor.u32 %v4150_v28, %v3860_v27  ;;  %v4193_v27 = vld [vmem:[#allocation16 + $0x70] sm:$0xff] }
  0xc2   : > { %1617 = vmatpush.bf16.msrb.mxu1 %v3889_v3  ;;  %1701 = vmatpush.bf16.msra.mxu2 %v3973_v47  ;;  %v5273_v47 = vld [vmem:[%s6452_s24] ss:$0 sm:$0xff]  ;;  %s4712_s24 = scalar_lea.hbm %s4711_s1, 16 }
  0xc3   : > { %2599 = vmatpush.bf16.msra.mxu3 %v4209_v25  ;;  %p4713_p1 = scmp.ne.s32.totalorder %s4711_s1, %s4712_s24 }
  0xc5   : > { %p4714_p2 = pnand %p4713_p1, %p4965_p7 }
  0xc6   : > { %1702 = vmatpush.bf16.msra.mxu2 %v3957_v52  ;;  %1618 = vmatpush.bf16.msrb.mxu1 %v3873_v19 }
  0xc7   : > { %p4715_p4 = pneg %p4714_p2 }
  0xca   : > { %1703 = vmatpush.bf16.msra.mxu2 %v3941_v12  ;;  %1619 = vmatpush.bf16.msrb.mxu1 %v3857_v18 }
  0xce   : > { %1704 = vmatpush.bf16.msra.mxu2 %v3925_v57  ;;  %2420 = vmatpush.bf16.msra.mxu1 %v4194_v37 }
  0xcf   : > { %1127 = vmatmul.bf16.gmra.mxu0 %v5233_v5  ;;  %1157 = vmatmul.bf16.gmra.mxu1 %v1029_v58  ;;  %v3900_v5 = vld [vmem:[#allocation15 + $0x60] sm:$0xf] }
  0xd0   : > { %1187 = vmatmul.bf16.gmra.mxu3 %v1035_v41  ;;  %v3901_v62 = vor.u32 %v4161_v48, %v3900_v5  ;;  %v3884_v58 = vld [vmem:[#allocation15 + $0x40] sm:$0xf] }
  0xd1   : > { %v3885_v41 = vor.u32 %v4157_v59, %v3884_v58 }
  0xd2   : > { %1527 = vmatpush.bf16.msra.mxu0 %v3901_v62  ;;  %1705 = vmatpush.bf16.msra.mxu2 %v3909_v4 }
  0xd3   : > { %2421 = vmatpush.bf16.msra.mxu1 %v4193_v27 }
  0xd6   : > { %1528 = vmatpush.bf16.msra.mxu0 %v3885_v41  ;;  %1706 = vmatpush.bf16.msra.mxu2 %v3893_v26 }
  0xda   : > { %1529 = vmatpush.bf16.msra.mxu0 %v3869_v11  ;;  %1707 = vmatpush.bf16.msra.mxu2 %v3877_v21 }
  0xde   : > { %1530 = vmatpush.bf16.msra.mxu0 %v3853_v49  ;;  %1708 = vmatpush.bf16.msra.mxu2 %v3861_v29 }
  0xe2   : > { %2509 = vmatpush.bf16.msrb.mxu2 %v4202_v30  ;;  %2331 = vmatpush.bf16.msrb.mxu0 %v4186_v36 }
  0xe6   : > { %2510 = vmatpush.bf16.msrb.mxu2 %v4201_v10  ;;  %2332 = vmatpush.bf16.msrb.mxu0 %v4185_v24 }
  0xfc   : > { %v5246_v6 = vpop.f32.mrf.mxu1  ;;  %v5252_v33 = vpop.f32.mrf.mxu0 }
 0x103   : > { %v5248_v22 = vpop.f32.mrf.mxu3 }
 0x104   : > { %v5250_v23 = vpop.f32.mrf.mxu1  ;;  %v5260_v39 = vpop.f32.mrf.mxu0 }
 0x105   : > { %v5258_v35 = vpop.f32.mrf.mxu2 }
 0x10b   : > { %v5254_v31 = vpop.f32.mrf.mxu3 }
 0x10c   : > { %v5256_v34 = vpop.f32.mrf.mxu1 }
 0x10d   : > { %v5266_v44 = vpop.f32.mrf.mxu2 }
 0x113   : > { %v5262_v42 = vpop.f32.mrf.mxu3 }
 0x114   : > { %v5264_v43 = vpop.f32.mrf.mxu1 }
 0x11b   : > { %v5268_v45 = vpop.f32.mrf.mxu3 }
 0x11c   : > { %v1113_v0 = vpop.f32.mrf.mxu0  ;;  %v1143_v3 = vpop.f32.mrf.mxu1 }
 0x11d   : > { %v5281_v51 = vadd.f32 %v5273_v47, %v1113_v0  ;;  %v5296_v60 = vadd.f32 %v5273_v47, %v1143_v3 }
 0x11f   : > { %6454 = vst [vmem:[#allocation34_spill] sm:$0xff] %v5296_v60 }
 0x123   : > { %v5275_v5 = vpop.f32.mrf.mxu2  ;;  %v1173_v55 = vpop.f32.mrf.mxu3 }
 0x124   : > { %v1209_v48 = vperm.slane %v5275_v5, 0  ;;  %v1200_v50 = vrot.slane %v5275_v5, 6  ;;  %v1201_v62 = vrot.slane %v5275_v5, 7  ;;  %v1115_v52 = vpop.f32.mrf.mxu0  ;;  %v1145_v57 = vpop.f32.mrf.mxu1  ;;  %v1195_v9 = vrot.slane %v5275_v5, 1 }
 0x125   : > { %v5284_v53 = vadd.f32 %v5273_v47, %v1115_v52  ;;  %v5293_v41 = vadd.f32 %v5273_v47, %v1145_v57  ;;  %v5316_v32 = vadd.f32 %v5273_v47, %v1173_v55  ;;  %v1199_v17 = vrot.slane %v5275_v5, 5 }
 0x126   : > { %v1241_v54 = vsub.f32 %v1209_v48, %v5252_v33  ;;  %v1242_v12 = vsub.f32 %v1209_v48, %v5260_v39  ;;  %v1215_v56 = vperm.slane %v1200_v50, 0  ;;  %v5288_v58 = vperm.slane %v1201_v62, 0 }
 0x127   : > { %6453 = vst [vmem:[#allocation33_spill] sm:$0xff] %v5293_v41  ;;  %v1210_v18 = vperm.slane %v1195_v9, 0  ;;  %v1214_v28 = vperm.slane %v1199_v17, 0 }
 0x128   : > { %v1273_v59 = vadd.f32 %v1241_v54, %v5281_v51  ;;  %v1274_v40 = vadd.f32 %v1242_v12, %v5284_v53  ;;  %v1253_v14 = vsub.f32 %v1215_v56, %v5252_v33  ;;  %v1254_v61 = vsub.f32 %v1215_v56, %v5260_v39  ;;  %6455 = vst [vmem:[#allocation35_spill] sm:$0xff] %v5316_v32 }
 0x129   : > { %v1255_v19 = vsub.f32 %v5288_v58, %v5252_v33  ;;  %v1243_v29 = vsub.f32 %v1210_v18, %v5252_v33  ;;  %v1244_v36 = vsub.f32 %v1210_v18, %v5260_v39  ;;  %v1256_v50 = vsub.f32 %v5288_v58, %v5260_v39 }
 0x12a   : > { %v1305_v63 = vpack.c.bf16 %v1274_v40, %v1273_v59  ;;  %v1285_v1 = vadd.f32 %v1253_v14, %v5296_v60  ;;  %v1286_v2 = vadd.f32 %v1254_v61, %v5293_v41  ;;  %v1251_v54 = vsub.f32 %v1214_v28, %v5252_v33 }
 0x12b   : > { %v5304_v4 = vpop.f32.mrf.mxu2  ;;  %v5310_v11 = vpop.f32.mrf.mxu3  ;;  %v1252_v12 = vsub.f32 %v1214_v28, %v5260_v39  ;;  %v5357_v40 = vadd.f32 %v5273_v47, %v5256_v34  ;;  %v5361_v14 = vadd.f32 %v5273_v47, %v5264_v43 }
 0x12c   : > { %1531 = vmatmul.bf16.vlgmr.msra.gmra.mxu0 %v1305_v63  ;;  %1620 = vmatmul.bf16.vlgmr.msrb.gmra.mxu1 %v1305_v63  ;;  %v1205_v7 = vrot.slane %v5304_v4, 4  ;;  %v5307_v8 = vpack.c.bf16 %v1286_v2, %v1285_v1  ;;  %v1118_v26 = vpop.f32.mrf.mxu0  ;;  %v1206_v13 = vrot.slane %v5304_v4, 5  ;;  %v1148_v15 = vpop.f32.mrf.mxu1  ;;  %v1203_v38 = vrot.slane %v5304_v4, 2 }
 0x12d   : > { %1709 = vmatmul.bf16.vlgmr.msra.gmra.mxu2 %v1305_v63  ;;  %1798 = vmatmul.bf16.vlgmr.msrb.gmra.mxu3 %v1305_v63  ;;  %v5327_v49 = vadd.f32 %v5273_v47, %v1118_v26  ;;  %v5333_v37 = vadd.f32 %v5273_v47, %v1148_v15  ;;  %v1204_v58 = vrot.slane %v5304_v4, 3  ;;  %6459 = vst [vmem:[#allocation39_spill] sm:$0xff] %v5357_v40  ;;  %v1207_v24 = vrot.slane %v5304_v4, 6 }
 0x12e   : > { %v5312_v46 = vperm.slane %v1205_v7, 0  ;;  %v5324_v21 = vperm.slane %v1206_v13, 0  ;;  %v5347_v55 = vperm.slane %v1203_v38, 0  ;;  %6460 = vst [vmem:[#allocation40_spill] sm:$0xff] %v5361_v14  ;;  %v5370_v7 = vadd.f32 %v5273_v47, %v5248_v22 }
 0x12f   : > { %6456 = vst [vmem:[#allocation36_spill] sm:$0xff] %v5333_v37  ;;  %v1275_v56 = vadd.f32 %v1243_v29, %v5327_v49  ;;  %v1287_v63 = vadd.f32 %v1255_v19, %v5333_v37  ;;  %v1283_v26 = vadd.f32 %v1251_v54, %v5357_v40  ;;  %v1284_v34 = vadd.f32 %v1252_v12, %v5361_v14 }
 0x130   : > { %v1265_v16 = vsub.f32 %v5312_v46, %v5252_v33  ;;  %v1267_v48 = vsub.f32 %v5324_v21, %v5252_v33  ;;  %6461 = vst [vmem:[#allocation41_spill] sm:$0xff] %v5370_v7  ;;  %v1261_v43 = vsub.f32 %v5347_v55, %v5252_v33  ;;  %v5378_v10 = vperm.slane %v1204_v58, 0  ;;  %v4200_v58 = vld [vmem:[#allocation16 + $0xa8] sm:$0xff] }
 0x131   : > { %v5380_v13 = vpack.c.bf16 %v1284_v34, %v1283_v26  ;;  %v5387_v15 = vadd.f32 %v5273_v47, %v5262_v42  ;;  %v5398_v28 = vperm.slane %v1207_v24, 0  ;;  %v4192_v34 = vld [vmem:[#allocation16 + $0x68] sm:$0xff]  ;;  %2511 = vmatpush.bf16.msrb.mxu2 %v4200_v58  ;;  %v1198_v58 = vrot.slane %v5275_v5, 4 }
 0x132   : > { %v5322_v20 = vadd.f32 %v1265_v16, %v5316_v32  ;;  %v5383_v22 = vadd.f32 %v1261_v43, %v5370_v7  ;;  %v1196_v16 = vrot.slane %v5275_v5, 2  ;;  %v1263_v18 = vsub.f32 %v5378_v10, %v5252_v33  ;;  %2422 = vmatpush.bf16.msra.mxu1 %v4192_v34 }
 0x133   : > { %v1178_v3 = vpop.f32.mrf.mxu3  ;;  %6462 = vst [vmem:[#allocation42_spill] sm:$0xff] %v5387_v15  ;;  %v1208_v43 = vrot.slane %v5304_v4, 7  ;;  %v5447_v34 = vadd.f32 %v5273_v47, %v5246_v6 }
 0x134   : > { %v1120_v30 = vpop.f32.mrf.mxu0  ;;  %v5343_v62 = vadd.f32 %v5273_v47, %v1178_v3  ;;  %v1150_v52 = vpop.f32.mrf.mxu1  ;;  %v5396_v25 = vadd.f32 %v1263_v18, %v5387_v15  ;;  %v1211_v27 = vperm.slane %v1196_v16, 0 }
 0x135   : > { %v5336_v0 = vadd.f32 %v5273_v47, %v1120_v30  ;;  %v5352_v59 = vadd.f32 %v5273_v47, %v1150_v52  ;;  %v5422_v16 = vperm.slane %v1208_v43, 0  ;;  %v5451_v43 = vadd.f32 %v5273_v47, %v5250_v23 }
 0x136   : > { %6457 = vst [vmem:[#allocation37_spill] sm:$0xff] %v5343_v62  ;;  %v5364_v61 = vadd.f32 %v1267_v48, %v5343_v62  ;;  %v1245_v30 = vsub.f32 %v1211_v27, %v5252_v33  ;;  %v1246_v38 = vsub.f32 %v1211_v27, %v5260_v39 }
 0x137   : > { %v1276_v57 = vadd.f32 %v1244_v36, %v5336_v0  ;;  %6458 = vst [vmem:[#allocation38_spill] sm:$0xff] %v5352_v59  ;;  %v1288_v2 = vadd.f32 %v1256_v50, %v5352_v59  ;;  %v1269_v50 = vsub.f32 %v5398_v28, %v5252_v33 }
 0x139   : > { %v1306_v1 = vpack.c.bf16 %v1276_v57, %v1275_v56  ;;  %v5376_v9 = vpack.c.bf16 %v1288_v2, %v1287_v63  ;;  %v4184_v63 = vld [vmem:[#allocation16 + $0x28] sm:$0xff]  ;;  %v1197_v2 = vrot.slane %v5275_v5, 3 }
 0x13a   : > { %2333 = vmatpush.bf16.msrb.mxu0 %v4184_v63  ;;  %v1213_v63 = vperm.slane %v1198_v58, 0  ;;  %v4190_v58 = vld [vmem:[#allocation16 + $0x58] sm:$0xff] }
 0x13b   : > { %v5390_v17 = vpop.f32.mrf.mxu3 }
 0x13c   : > { %1536 = vmatmul.bf16.gmra.mxu0 %v1306_v1  ;;  %1625 = vmatmul.bf16.gmra.mxu1 %v1306_v1  ;;  %v1123_v19 = vpop.f32.mrf.mxu0  ;;  %v1153_v6 = vpop.f32.mrf.mxu1 }
 0x13d   : > { %1714 = vmatmul.bf16.gmra.mxu2 %v1306_v1  ;;  %1803 = vmatmul.bf16.gmra.mxu3 %v1306_v1  ;;  %v5401_v29 = vadd.f32 %v5273_v47, %v1123_v19  ;;  %v4208_v1 = vld [vmem:[#allocation16 + $0xe8] sm:$0xff]  ;;  %v1212_v19 = vperm.slane %v1197_v2, 0  ;;  %v1250_v2 = vsub.f32 %v1213_v63, %v5260_v39 }
 0x13e   : > { %2600 = vmatpush.bf16.msra.mxu3 %v4208_v1  ;;  %v1249_v1 = vsub.f32 %v1213_v63, %v5252_v33 }
 0x13f   : > { %v1277_v52 = vadd.f32 %v1245_v30, %v5401_v29  ;;  %v1247_v27 = vsub.f32 %v1212_v19, %v5252_v33  ;;  %v1248_v30 = vsub.f32 %v1212_v19, %v5260_v39  ;;  %v1282_v5 = vadd.f32 %v1250_v2, %v5451_v43 }
 0x140   : > { %v1281_v19 = vadd.f32 %v1249_v1, %v5447_v34  ;;  %v5472_v2 = vadd.f32 %v5273_v47, %v1153_v6  ;;  %v1202_v6 = vrot.slane %v5304_v4, 1 }
 0x142   : > { %6466 = vst [vmem:[#allocation46_spill] sm:$0xff] %v5472_v2 }
 0x143   : > { %v1183_v3 = vpop.f32.mrf.mxu3 }
 0x144   : > { %v1125_v42 = vpop.f32.mrf.mxu0  ;;  %v5409_v48 = vadd.f32 %v5273_v47, %v1183_v3  ;;  %v1155_v23 = vpop.f32.mrf.mxu1 }
 0x145   : > { %v5405_v36 = vadd.f32 %v5273_v47, %v1125_v42  ;;  %v5469_v1 = vadd.f32 %v5273_v47, %v1155_v23 }
 0x146   : > { %6463 = vst [vmem:[#allocation43_spill] sm:$0xff] %v5409_v48  ;;  %v5416_v12 = vadd.f32 %v1269_v50, %v5409_v48  ;;  %v1271_v50 = vsub.f32 %v5422_v16, %v5252_v33 }
 0x147   : > { %v1278_v54 = vadd.f32 %v1246_v38, %v5405_v36  ;;  %6465 = vst [vmem:[#allocation45_spill] sm:$0xff] %v5469_v1 }
 0x149   : > { %v1307_v56 = vpack.c.bf16 %v1278_v54, %v1277_v52 }
 0x14b   : > { %v5419_v26 = vpop.f32.mrf.mxu3 }
 0x14c   : > { %1541 = vmatmul.bf16.gmra.mxu0 %v1307_v56  ;;  %1630 = vmatmul.bf16.gmra.mxu1 %v1307_v56  ;;  %v1128_v57 = vpop.f32.mrf.mxu0  ;;  %v1158_v63 = vpop.f32.mrf.mxu1 }
 0x14d   : > { %1719 = vmatmul.bf16.gmra.mxu2 %v1307_v56  ;;  %1808 = vmatmul.bf16.gmra.mxu3 %v1307_v56  ;;  %v5425_v18 = vadd.f32 %v5273_v47, %v1128_v57 }
 0x14f   : > { %v1279_v52 = vadd.f32 %v1247_v27, %v5425_v18  ;;  %v4199_v27 = vld [vmem:[#allocation16 + $0xa0] sm:$0xff] }
 0x150   : > { %2512 = vmatpush.bf16.msrb.mxu2 %v4199_v27 }
 0x153   : > { %v1188_v38 = vpop.f32.mrf.mxu3 }
 0x154   : > { %v1130_v24 = vpop.f32.mrf.mxu0  ;;  %v5433_v3 = vadd.f32 %v5273_v47, %v1188_v38  ;;  %v4207_v38 = vld [vmem:[#allocation16 + $0xe0] sm:$0xff] }
 0x155   : > { %v5429_v42 = vadd.f32 %v5273_v47, %v1130_v24  ;;  %v1309_v24 = vpack.c.bf16 %v1282_v5, %v1281_v19  ;;  %2601 = vmatpush.bf16.msra.mxu3 %v4207_v38 }
 0x156   : > { %6464 = vst [vmem:[#allocation44_spill] sm:$0xff] %v5433_v3  ;;  %v5440_v56 = vadd.f32 %v1271_v50, %v5433_v3  ;;  %v4191_v50 = vld [vmem:[#allocation16 + $0x60] sm:$0xff] }
 0x157   : > { %v1280_v54 = vadd.f32 %v1248_v30, %v5429_v42  ;;  %v4183_v30 = vld [vmem:[#allocation16 + $0x20] sm:$0xff]  ;;  %2423 = vmatpush.bf16.msra.mxu1 %v4191_v50 }
 0x158   : > { %2334 = vmatpush.bf16.msrb.mxu0 %v4183_v30 }
 0x159   : > { %v1308_v57 = vpack.c.bf16 %v1280_v54, %v1279_v52  ;;  %v4198_v52 = vld [vmem:[#allocation16 + $0x98] sm:$0xff] }
 0x15a   : > { %v4182_v54 = vld [vmem:[#allocation16 + $0x18] sm:$0xff]  ;;  %2513 = vmatpush.bf16.msrb.mxu2 %v4198_v52 }
 0x15b   : > { %2424 = vmatpush.bf16.msra.mxu1 %v4190_v58  ;;  %v5478_v30 = vpop.f32.mrf.mxu3  ;;  %v4181_v58 = vld [vmem:[#allocation16 + $0x10] sm:$0xff] }
 0x15c   : > { %1546 = vmatmul.bf16.gmra.mxu0 %v1308_v57  ;;  %1635 = vmatmul.bf16.gmra.mxu1 %v1308_v57 }
 0x15d   : > { %1724 = vmatmul.bf16.gmra.mxu2 %v1308_v57  ;;  %1813 = vmatmul.bf16.gmra.mxu3 %v1308_v57  ;;  %v4206_v57 = vld [vmem:[#allocation16 + $0xd8] sm:$0xff] }
 0x15e   : > { %2335 = vmatpush.bf16.msrb.mxu0 %v4182_v54  ;;  %2602 = vmatpush.bf16.msra.mxu3 %v4206_v57  ;;  %v4197_v57 = vld [vmem:[#allocation16 + $0x90] sm:$0xff] }
 0x15f   : > { %2514 = vmatpush.bf16.msrb.mxu2 %v4197_v57 }
 0x162   : > { %2336 = vmatpush.bf16.msrb.mxu0 %v4181_v58  ;;  %v4189_v58 = vld [vmem:[#allocation16 + $0x50] sm:$0xff] }
 0x163   : > { %2425 = vmatpush.bf16.msra.mxu1 %v4189_v58 }
 0x16c   : > { %1551 = vmatmul.bf16.gmra.mxu0 %v1309_v24  ;;  %1640 = vmatmul.bf16.gmra.mxu1 %v1309_v24 }
 0x16d   : > { %1729 = vmatmul.bf16.gmra.mxu2 %v1309_v24  ;;  %1818 = vmatmul.bf16.gmra.mxu3 %v1309_v24 }
 0x17c   : > { %1556 = vmatmul.bf16.gmra.mxu0 %v5380_v13  ;;  %1645 = vmatmul.bf16.gmra.mxu1 %v5380_v13 }
 0x17d   : > { %1734 = vmatmul.bf16.gmra.mxu2 %v5380_v13  ;;  %1823 = vmatmul.bf16.gmra.mxu3 %v5380_v13  ;;  %v1217_v13 = vperm.slane %v5304_v4, 0 }
 0x17f   : > { %v1258_v19 = vsub.f32 %v1217_v13, %v5260_v39  ;;  %v1257_v5 = vsub.f32 %v1217_v13, %v5252_v33  ;;  %v4205_v13 = vld [vmem:[#allocation16 + $0xd0] sm:$0xff] }
 0x180   : > { %2603 = vmatpush.bf16.msra.mxu3 %v4205_v13 }
 0x181   : > { %v1290_v24 = vadd.f32 %v1258_v19, %v5469_v1  ;;  %v1289_v27 = vadd.f32 %v1257_v5, %v5472_v2  ;;  %v1218_v19 = vperm.slane %v1202_v6, 0  ;;  %v5496_v6 = vadd.f32 %v5273_v47, %v1158_v63 }
 0x183   : > { %v1313_v23 = vpack.c.bf16 %v1290_v24, %v1289_v27  ;;  %6469 = vst [vmem:[#allocation48_spill] sm:$0xff] %v5496_v6  ;;  %v1260_v57 = vsub.f32 %v1218_v19, %v5260_v39 }
 0x18c   : > { %1561 = vmatmul.bf16.gmra.mxu0 %v5307_v8  ;;  %1650 = vmatmul.bf16.gmra.mxu1 %v5307_v8 }
 0x18d   : > { %1739 = vmatmul.bf16.gmra.mxu2 %v5307_v8  ;;  %1828 = vmatmul.bf16.gmra.mxu3 %v5307_v8  ;;  %v1160_v8 = vpop.f32.mrf.mxu1 }
 0x18e   : > { %v5491_v62 = vadd.f32 %v5273_v47, %v1160_v8  ;;  %v1259_v8 = vsub.f32 %v1218_v19, %v5252_v33 }
 0x190   : > { %6468 = vst [vmem:[#allocation47_spill] sm:$0xff] %v5491_v62 }
 0x19c   : > { %1566 = vmatmul.bf16.gmra.mxu0 %v5376_v9  ;;  %1655 = vmatmul.bf16.gmra.mxu1 %v5376_v9 }
 0x19d   : > { %1744 = vmatmul.bf16.gmra.mxu2 %v5376_v9  ;;  %1833 = vmatmul.bf16.gmra.mxu3 %v5376_v9  ;;  %v1353_v9 = vld [vmem:[%s6467_s9] sm:$0xf]  ;;  %s4716_s9 = scalar_lea.hbm %s6500_s15, 32 }
 0x19e   : > { %v5484_v52 = vperm.slane %v1353_v9, 0  ;;  %v5486_v54 = vperm.slane %v1353_v9, 1  ;;  %p4718_p10 = scmp.lt.s32.totalorder %s4716_s9, %s4712_s24 }
 0x1a0   : > { %p4719_p13 = por %p4718_p10, %p4717_p8 }
 0x1a2   : > { %p4720_p0 = pnand %p4719_p13, %p4715_p4 }
 0x1a9   : > { %v1532_v38 = vpop.f32.mrf.mxu0  ;;  %v1621_v50 = vpop.f32.mrf.mxu1 }
 0x1aa   : > { %v1533_v5 = vadd.f32 %v1532_v38, %v5484_v52  ;;  %v1622_v24 = vadd.f32 %v1621_v50, %v5486_v54  ;;  %v5499_v38 = vperm.slane %v1353_v9, 2  ;;  %v5501_v50 = vperm.slane %v1353_v9, 3 }
 0x1ab   : > { %v1291_v9 = vadd.f32 %v1259_v8, %v5496_v6 }
 0x1ac   : > { %1571 = vmatmul.bf16.gmra.mxu0 %v1313_v23  ;;  %1660 = vmatmul.bf16.gmra.mxu1 %v1313_v23  ;;  %v1879_v13 = vmax.f32 %v1533_v5, 0.0  ;;  %v1880_v15 = vmax.f32 %v1622_v24, 0.0 }
 0x1ad   : > { %1749 = vmatmul.bf16.gmra.mxu2 %v1313_v23  ;;  %1838 = vmatmul.bf16.gmra.mxu3 %v1313_v23 }
 0x1b0   : > { %v1710_v27 = vpop.f32.mrf.mxu2  ;;  %v1799_v4 = vpop.f32.mrf.mxu3 }
 0x1b1   : > { %v1534_v3 = vpop.f32.mrf.mxu0  ;;  %v1623_v48 = vpop.f32.mrf.mxu1  ;;  %v1711_v2 = vadd.f32 %v1710_v27, %v5499_v38  ;;  %v1800_v59 = vadd.f32 %v1799_v4, %v5501_v50 }
 0x1b2   : > { %v1535_v23 = vadd.f32 %v1534_v3, %v5484_v52  ;;  %v1624_v32 = vadd.f32 %v1623_v48, %v5486_v54  ;;  %v1292_v3 = vadd.f32 %v1260_v57, %v5491_v62 }
 0x1b3   : > { %v1881_v57 = vmax.f32 %v1711_v2, 0.0 }
 0x1b4   : > { %v1883_v7 = vmax.f32 %v1535_v23, 0.0  ;;  %v1884_v1 = vmax.f32 %v1624_v32, 0.0  ;;  %v1314_v19 = vpack.c.bf16 %v1292_v3, %v1291_v9  ;;  %v1262_v9 = vsub.f32 %v5347_v55, %v5260_v39 }
 0x1b6   : > { %v5505_v48 = vpack.c.bf16 %v1883_v7, %v1879_v13  ;;  %v5507_v63 = vpack.c.bf16 %v1884_v1, %v1880_v15  ;;  %v1882_v7 = vmax.f32 %v1800_v59, 0.0 }
 0x1b8   : > { %v1712_v37 = vpop.f32.mrf.mxu2  ;;  %v1801_v5 = vpop.f32.mrf.mxu3 }
 0x1b9   : > { %v1713_v24 = vadd.f32 %v1712_v37, %v5499_v38  ;;  %v1802_v32 = vadd.f32 %v1801_v5, %v5501_v50  ;;  %v1537_v23 = vpop.f32.mrf.mxu0  ;;  %v1626_v33 = vpop.f32.mrf.mxu1 }
 0x1ba   : > { %v1538_v4 = vadd.f32 %v1537_v23, %v5484_v52  ;;  %v1627_v37 = vadd.f32 %v1626_v33, %v5486_v54 }
 0x1bb   : > { %v1885_v58 = vmax.f32 %v1713_v24, 0.0  ;;  %v1886_v15 = vmax.f32 %v1802_v32, 0.0  ;;  %v5526_v24 = vadd.f32 %v5273_v47, %v5254_v31 }
 0x1bc   : > { %1576 = vmatmul.bf16.gmra.mxu0 %v1314_v19  ;;  %1665 = vmatmul.bf16.gmra.mxu1 %v1314_v19  ;;  %v1887_v32 = vmax.f32 %v1538_v4, 0.0 }
 0x1bd   : > { %v5514_v1 = vpack.c.bf16 %v1885_v58, %v1881_v57  ;;  %v5516_v27 = vpack.c.bf16 %v1886_v15, %v1882_v7  ;;  %1754 = vmatmul.bf16.gmra.mxu2 %v1314_v19  ;;  %1843 = vmatmul.bf16.gmra.mxu3 %v1314_v19  ;;  %6470 = vst [vmem:[#allocation49_spill] sm:$0xff] %v5526_v24  ;;  %v1888_v19 = vmax.f32 %v1627_v37, 0.0 }
 0x1be   : > { %v1294_v33 = vadd.f32 %v1262_v9, %v5526_v24 }
 0x1c0   : > { %v1715_v13 = vpop.f32.mrf.mxu2  ;;  %v1804_v8 = vpop.f32.mrf.mxu3 }
 0x1c1   : > { %v1539_v5 = vpop.f32.mrf.mxu0  ;;  %v1628_v3 = vpop.f32.mrf.mxu1  ;;  %v1716_v15 = vadd.f32 %v1715_v13, %v5499_v38  ;;  %v4196_v13 = vld [vmem:[#allocation16 + $0x88] sm:$0xff] }
 0x1c2   : > { %v1540_v59 = vadd.f32 %v1539_v5, %v5484_v52  ;;  %v1629_v2 = vadd.f32 %v1628_v3, %v5486_v54  ;;  %v1805_v5 = vadd.f32 %v1804_v8, %v5501_v50  ;;  %v4180_v8 = vld [vmem:[#allocation16 + $0x8] sm:$0xff]  ;;  %2515 = vmatpush.bf16.msrb.mxu2 %v4196_v13 }
 0x1c3   : > { %2337 = vmatpush.bf16.msrb.mxu0 %v4180_v8 }
 0x1c4   : > { %v1891_v23 = vmax.f32 %v1540_v59, 0.0  ;;  %v1892_v57 = vmax.f32 %v1629_v2, 0.0  ;;  %v1315_v59 = vpack.c.bf16 %v1294_v33, %v5383_v22  ;;  %v1889_v2 = vmax.f32 %v1716_v15, 0.0 }
 0x1c5   : > { %v1890_v9 = vmax.f32 %v1805_v5, 0.0 }
 0x1c6   : > { %v5529_v7 = vpack.c.bf16 %v1891_v23, %v1887_v32  ;;  %v5531_v58 = vpack.c.bf16 %v1892_v57, %v1888_v19  ;;  %v4204_v19 = vld [vmem:[#allocation16 + $0xc8] sm:$0xff] }
 0x1c7   : > { %2604 = vmatpush.bf16.msra.mxu3 %v4204_v19 }
 0x1c8   : > { %v1717_v3 = vpop.f32.mrf.mxu2  ;;  %v1806_v55 = vpop.f32.mrf.mxu3 }
 0x1c9   : > { %v1718_v62 = vadd.f32 %v1717_v3, %v5499_v38  ;;  %v1807_v31 = vadd.f32 %v1806_v55, %v5501_v50  ;;  %v1542_v4 = vpop.f32.mrf.mxu0  ;;  %v1631_v37 = vpop.f32.mrf.mxu1 }
 0x1ca   : > { %v1543_v55 = vadd.f32 %v1542_v4, %v5484_v52  ;;  %v1632_v22 = vadd.f32 %v1631_v37, %v5486_v54 }
 0x1cb   : > { %v1893_v32 = vmax.f32 %v1718_v62, 0.0  ;;  %v1894_v23 = vmax.f32 %v1807_v31, 0.0 }
 0x1cc   : > { %1581 = vmatmul.bf16.gmra.mxu0 %v1315_v59  ;;  %1670 = vmatmul.bf16.gmra.mxu1 %v1315_v59  ;;  %v1895_v4 = vmax.f32 %v1543_v55, 0.0 }
 0x1cd   : > { %1759 = vmatmul.bf16.gmra.mxu2 %v1315_v59  ;;  %1848 = vmatmul.bf16.gmra.mxu3 %v1315_v59  ;;  %v5538_v57 = vpack.c.bf16 %v1893_v32, %v1889_v2  ;;  %v5540_v3 = vpack.c.bf16 %v1894_v23, %v1890_v9  ;;  %v1264_v2 = vsub.f32 %v5378_v10, %v5260_v39  ;;  %v4188_v32 = vld [vmem:[#allocation16 + $0x48] sm:$0xff]  ;;  %v1896_v23 = vmax.f32 %v1632_v22, 0.0 }
 0x1ce   : > { %v5550_v9 = vadd.f32 %v5273_v47, %v5268_v45  ;;  %2426 = vmatpush.bf16.msra.mxu1 %v4188_v32 }
 0x1d0   : > { %v1720_v33 = vpop.f32.mrf.mxu2  ;;  %v1809_v62 = vpop.f32.mrf.mxu3  ;;  %6471 = vst [vmem:[#allocation50_spill] sm:$0xff] %v5550_v9  ;;  %v1296_v8 = vadd.f32 %v1264_v2, %v5550_v9 }
 0x1d1   : > { %v1544_v15 = vpop.f32.mrf.mxu0  ;;  %v1633_v5 = vpop.f32.mrf.mxu1  ;;  %v1810_v10 = vadd.f32 %v1809_v62, %v5501_v50 }
 0x1d2   : > { %v1545_v31 = vadd.f32 %v1544_v15, %v5484_v52  ;;  %v1634_v59 = vadd.f32 %v1633_v5, %v5486_v54  ;;  %v1721_v5 = vadd.f32 %v1720_v33, %v5499_v38 }
 0x1d3   : > { %v1898_v2 = vmax.f32 %v1810_v10, 0.0 }
 0x1d4   : > { %v1899_v37 = vmax.f32 %v1545_v31, 0.0  ;;  %v1900_v13 = vmax.f32 %v1634_v59, 0.0  ;;  %v1316_v59 = vpack.c.bf16 %v1296_v8, %v5396_v25  ;;  %v1897_v32 = vmax.f32 %v1721_v5, 0.0 }
 0x1d5   : > { %v1266_v8 = vsub.f32 %v5312_v46, %v5260_v39 }
 0x1d6   : > { %v5553_v19 = vpack.c.bf16 %v1899_v37, %v1895_v4  ;;  %v5555_v15 = vpack.c.bf16 %v1900_v13, %v1896_v23 }
 0x1d8   : > { %v1722_v24 = vpop.f32.mrf.mxu2  ;;  %v1811_v6 = vpop.f32.mrf.mxu3 }
 0x1d9   : > { %v1723_v45 = vadd.f32 %v1722_v24, %v5499_v38  ;;  %v1812_v55 = vadd.f32 %v1811_v6, %v5501_v50  ;;  %v1547_v22 = vpop.f32.mrf.mxu0  ;;  %v1636_v31 = vpop.f32.mrf.mxu1 }
 0x1da   : > { %v1548_v24 = vadd.f32 %v1547_v22, %v5484_v52  ;;  %v1637_v6 = vadd.f32 %v1636_v31, %v5486_v54 }
 0x1db   : > { %v1901_v4 = vmax.f32 %v1723_v45, 0.0  ;;  %v1902_v37 = vmax.f32 %v1812_v55, 0.0  ;;  %v5574_v45 = vadd.f32 %v5273_v47, %v5310_v11 }
 0x1dc   : > { %1586 = vmatmul.bf16.gmra.mxu0 %v1316_v59  ;;  %1675 = vmatmul.bf16.gmra.mxu1 %v1316_v59  ;;  %v1903_v55 = vmax.f32 %v1548_v24, 0.0 }
 0x1dd   : > { %1764 = vmatmul.bf16.gmra.mxu2 %v1316_v59  ;;  %1853 = vmatmul.bf16.gmra.mxu3 %v1316_v59  ;;  %v5562_v33 = vpack.c.bf16 %v1901_v4, %v1897_v32  ;;  %v5564_v62 = vpack.c.bf16 %v1902_v37, %v1898_v2  ;;  %6472 = vst [vmem:[#allocation51_spill] sm:$0xff] %v5574_v45  ;;  %v1904_v59 = vmax.f32 %v1637_v6, 0.0 }
 0x1de   : > { %v1298_v31 = vadd.f32 %v1266_v8, %v5574_v45 }
 0x1e0   : > { %v1725_v23 = vpop.f32.mrf.mxu2  ;;  %v1814_v13 = vpop.f32.mrf.mxu3 }
 0x1e1   : > { %v1549_v9 = vpop.f32.mrf.mxu0  ;;  %v1638_v25 = vpop.f32.mrf.mxu1  ;;  %v1726_v46 = vadd.f32 %v1725_v23, %v5499_v38  ;;  %v4195_v23 = vld [vmem:[#allocation16 + $0x80] sm:$0xff] }
 0x1e2   : > { %v1550_v5 = vadd.f32 %v1549_v9, %v5484_v52  ;;  %v1639_v10 = vadd.f32 %v1638_v25, %v5486_v54  ;;  %v1815_v9 = vadd.f32 %v1814_v13, %v5501_v50  ;;  %v4179_v13 = vld [vmem:[#allocation16] sm:$0xff]  ;;  %2516 = vmatpush.bf16.msrb.mxu2 %v4195_v23 }
 0x1e3   : > { %2338 = vmatpush.bf16.msrb.mxu0 %v4179_v13 }
 0x1e4   : > { %v1907_v22 = vmax.f32 %v1550_v5, 0.0  ;;  %v1908_v32 = vmax.f32 %v1639_v10, 0.0  ;;  %v1317_v5 = vpack.c.bf16 %v1298_v31, %v5322_v20  ;;  %v1905_v10 = vmax.f32 %v1726_v46, 0.0 }
 0x1e5   : > { %v1906_v8 = vmax.f32 %v1815_v9, 0.0 }
 0x1e6   : > { %v5577_v2 = vpack.c.bf16 %v1907_v22, %v1903_v55  ;;  %v5579_v4 = vpack.c.bf16 %v1908_v32, %v1904_v59  ;;  %v4203_v59 = vld [vmem:[#allocation16 + $0xc0] sm:$0xff] }
 0x1e7   : > { %2605 = vmatpush.bf16.msra.mxu3 %v4203_v59 }
 0x1e8   : > { %v1727_v37 = vpop.f32.mrf.mxu2  ;;  %v1816_v25 = vpop.f32.mrf.mxu3 }
 0x1e9   : > { %v1728_v41 = vadd.f32 %v1727_v37, %v5499_v38  ;;  %v1817_v11 = vadd.f32 %v1816_v25, %v5501_v50  ;;  %v1552_v24 = vpop.f32.mrf.mxu0  ;;  %v1641_v6 = vpop.f32.mrf.mxu1 }
 0x1ea   : > { %v1553_v25 = vadd.f32 %v1552_v24, %v5484_v52  ;;  %v1642_v20 = vadd.f32 %v1641_v6, %v5486_v54 }
 0x1eb   : > { %v1909_v55 = vmax.f32 %v1728_v41, 0.0  ;;  %v1910_v22 = vmax.f32 %v1817_v11, 0.0  ;;  %v5594_v11 = vadd.f32 %v5273_v47, %v5390_v17 }
 0x1ec   : > { %1591 = vmatmul.bf16.gmra.mxu0 %v1317_v5  ;;  %1680 = vmatmul.bf16.gmra.mxu1 %v1317_v5  ;;  %v1911_v24 = vmax.f32 %v1553_v25, 0.0 }
 0x1ed   : > { %1769 = vmatmul.bf16.gmra.mxu2 %v1317_v5  ;;  %1858 = vmatmul.bf16.gmra.mxu3 %v1317_v5  ;;  %v5586_v32 = vpack.c.bf16 %v1909_v55, %v1905_v10  ;;  %v5588_v37 = vpack.c.bf16 %v1910_v22, %v1906_v8  ;;  %6473 = vst [vmem:[#allocation52_spill] sm:$0xff] %v5594_v11  ;;  %v4187_v55 = vld [vmem:[#allocation16 + $0x40] sm:$0xff]  ;;  %v1912_v22 = vmax.f32 %v1642_v20, 0.0 }
 0x1ee   : > { %v1268_v8 = vsub.f32 %v5324_v21, %v5260_v39  ;;  %2427 = vmatpush.bf16.msra.mxu1 %v4187_v55 }
 0x1f0   : > { %v1730_v31 = vpop.f32.mrf.mxu2  ;;  %v1819_v41 = vpop.f32.mrf.mxu3  ;;  %v1300_v13 = vadd.f32 %v1268_v8, %v5594_v11 }
 0x1f1   : > { %v1554_v46 = vpop.f32.mrf.mxu0  ;;  %v1643_v9 = vpop.f32.mrf.mxu1  ;;  %v1731_v17 = vadd.f32 %v1730_v31, %v5499_v38 }
 0x1f2   : > { %v1555_v5 = vadd.f32 %v1554_v46, %v5484_v52  ;;  %v1644_v10 = vadd.f32 %v1643_v9, %v5486_v54  ;;  %v1820_v46 = vadd.f32 %v1819_v41, %v5501_v50 }
 0x1f3   : > { %v1913_v55 = vmax.f32 %v1731_v17, 0.0 }
 0x1f4   : > { %v1915_v6 = vmax.f32 %v1555_v5, 0.0  ;;  %v1916_v23 = vmax.f32 %v1644_v10, 0.0  ;;  %v1318_v10 = vpack.c.bf16 %v1300_v13, %v5364_v61  ;;  %v1914_v8 = vmax.f32 %v1820_v46, 0.0 }
 0x1f5   : > { %v5618_v13 = vadd.f32 %v5273_v47, %v5419_v26 }
 0x1f6   : > { %v5601_v59 = vpack.c.bf16 %v1915_v6, %v1911_v24  ;;  %v5603_v45 = vpack.c.bf16 %v1916_v23, %v1912_v22 }
 0x1f7   : > { %6474 = vst [vmem:[#allocation53_spill] sm:$0xff] %v5618_v13 }
 0x1f8   : > { %v1732_v9 = vpop.f32.mrf.mxu2  ;;  %v1821_v60 = vpop.f32.mrf.mxu3 }
 0x1f9   : > { %v1733_v21 = vadd.f32 %v1732_v9, %v5499_v38  ;;  %v1822_v25 = vadd.f32 %v1821_v60, %v5501_v50  ;;  %v1557_v20 = vpop.f32.mrf.mxu0  ;;  %v1646_v5 = vpop.f32.mrf.mxu1 }
 0x1fa   : > { %v1558_v22 = vadd.f32 %v1557_v20, %v5484_v52  ;;  %v1647_v60 = vadd.f32 %v1646_v5, %v5486_v54 }
 0x1fb   : > { %v1917_v24 = vmax.f32 %v1733_v21, 0.0  ;;  %v1918_v6 = vmax.f32 %v1822_v25, 0.0  ;;  %v1270_v21 = vsub.f32 %v5398_v28, %v5260_v39 }
 0x1fc   : > { %1596 = vmatmul.bf16.gmra.mxu0 %v1318_v10  ;;  %1685 = vmatmul.bf16.gmra.mxu1 %v1318_v10  ;;  %v1919_v25 = vmax.f32 %v1558_v22, 0.0 }
 0x1fd   : > { %1774 = vmatmul.bf16.gmra.mxu2 %v1318_v10  ;;  %1863 = vmatmul.bf16.gmra.mxu3 %v1318_v10  ;;  %v5610_v31 = vpack.c.bf16 %v1917_v24, %v1913_v55  ;;  %v5612_v41 = vpack.c.bf16 %v1918_v6, %v1914_v8  ;;  %v1920_v10 = vmax.f32 %v1647_v60, 0.0  ;;  %v1302_v5 = vadd.f32 %v1270_v21, %v5618_v13 }
 0x200   : > { %v1735_v23 = vpop.f32.mrf.mxu2  ;;  %v1824_v9 = vpop.f32.mrf.mxu3 }
 0x201   : > { %v1559_v11 = vpop.f32.mrf.mxu0  ;;  %v1648_v61 = vpop.f32.mrf.mxu1  ;;  %v1736_v26 = vadd.f32 %v1735_v23, %v5499_v38  ;;  %v1825_v6 = vadd.f32 %v1824_v9, %v5501_v50 }
 0x202   : > { %v1560_v17 = vadd.f32 %v1559_v11, %v5484_v52  ;;  %v1649_v46 = vadd.f32 %v1648_v61, %v5486_v54 }
 0x203   : > { %v1922_v21 = vmax.f32 %v1825_v6, 0.0 }
 0x204   : > { %v1923_v20 = vmax.f32 %v1560_v17, 0.0  ;;  %v1924_v55 = vmax.f32 %v1649_v46, 0.0  ;;  %v1319_v17 = vpack.c.bf16 %v1302_v5, %v5416_v12  ;;  %v1921_v46 = vmax.f32 %v1736_v26, 0.0 }
 0x205   : > { %v5642_v5 = vadd.f32 %v5273_v47, %v5478_v30 }
 0x206   : > { %v5625_v8 = vpack.c.bf16 %v1923_v20, %v1919_v25  ;;  %v5627_v24 = vpack.c.bf16 %v1924_v55, %v1920_v10 }
 0x207   : > { %6475 = vst [vmem:[#allocation54_spill] sm:$0xff] %v5642_v5 }
 0x208   : > { %v1737_v11 = vpop.f32.mrf.mxu2  ;;  %v1826_v14 = vpop.f32.mrf.mxu3 }
 0x209   : > { %v1738_v61 = vadd.f32 %v1737_v11, %v5499_v38  ;;  %v1827_v28 = vadd.f32 %v1826_v14, %v5501_v50  ;;  %v1562_v22 = vpop.f32.mrf.mxu0  ;;  %v1651_v60 = vpop.f32.mrf.mxu1 }
 0x20a   : > { %v1563_v10 = vadd.f32 %v1562_v22, %v5484_v52  ;;  %v1652_v14 = vadd.f32 %v1651_v60, %v5486_v54 }
 0x20b   : > { %v1925_v25 = vmax.f32 %v1738_v61, 0.0  ;;  %v1926_v20 = vmax.f32 %v1827_v28, 0.0  ;;  %v1272_v61 = vsub.f32 %v5422_v16, %v5260_v39 }
 0x20c   : > { %1601 = vmatmul.bf16.gmra.mxu0 %v1319_v17  ;;  %1690 = vmatmul.bf16.gmra.mxu1 %v1319_v17  ;;  %v1927_v28 = vmax.f32 %v1563_v10, 0.0 }
 0x20d   : > { %1779 = vmatmul.bf16.gmra.mxu2 %v1319_v17  ;;  %1868 = vmatmul.bf16.gmra.mxu3 %v1319_v17  ;;  %v5634_v23 = vpack.c.bf16 %v1925_v25, %v1921_v46  ;;  %v5636_v9 = vpack.c.bf16 %v1926_v20, %v1922_v21  ;;  %v1928_v17 = vmax.f32 %v1652_v14, 0.0  ;;  %v1304_v60 = vadd.f32 %v1272_v61, %v5642_v5 }
 0x20f   : > { %v1320_v14 = vpack.c.bf16 %v1304_v60, %v5440_v56 }
 0x210   : > { %v1740_v55 = vpop.f32.mrf.mxu2  ;;  %v1829_v11 = vpop.f32.mrf.mxu3 }
 0x211   : > { %v1564_v13 = vpop.f32.mrf.mxu0  ;;  %v1653_v12 = vpop.f32.mrf.mxu1  ;;  %v1741_v47 = vadd.f32 %v1740_v55, %v5499_v38  ;;  %v1830_v30 = vadd.f32 %v1829_v11, %v5501_v50 }
 0x212   : > { %v1565_v26 = vadd.f32 %v1564_v13, %v5484_v52  ;;  %v1654_v6 = vadd.f32 %v1653_v12, %v5486_v54 }
 0x214   : > { %v1931_v22 = vmax.f32 %v1565_v26, 0.0  ;;  %v1932_v46 = vmax.f32 %v1654_v6, 0.0  ;;  %v1929_v26 = vmax.f32 %v1741_v47, 0.0  ;;  %v1930_v6 = vmax.f32 %v1830_v30, 0.0 }
 0x216   : > { %v5649_v21 = vpack.c.bf16 %v1931_v22, %v1927_v28  ;;  %v5651_v25 = vpack.c.bf16 %v1932_v46, %v1928_v17 }
 0x218   : > { %v1742_v13 = vpop.f32.mrf.mxu2  ;;  %v1831_v20 = vpop.f32.mrf.mxu3 }
 0x219   : > { %v1743_v12 = vadd.f32 %v1742_v13, %v5499_v38  ;;  %v1832_v39 = vadd.f32 %v1831_v20, %v5501_v50  ;;  %v1567_v16 = vpop.f32.mrf.mxu0  ;;  %v1656_v10 = vpop.f32.mrf.mxu1 }
 0x21a   : > { %v1568_v17 = vadd.f32 %v1567_v16, %v5484_v52  ;;  %v1657_v22 = vadd.f32 %v1656_v10, %v5486_v54 }
 0x21b   : > { %v1933_v61 = vmax.f32 %v1743_v12, 0.0  ;;  %v1934_v28 = vmax.f32 %v1832_v39, 0.0 }
 0x21c   : > { %1606 = vmatmul.bf16.gmra.mxu0 %v1320_v14  ;;  %1695 = vmatmul.bf16.gmra.mxu1 %v1320_v14  ;;  %v1935_v30 = vmax.f32 %v1568_v17, 0.0  ;;  %v1936_v12 = vmax.f32 %v1657_v22, 0.0 }
 0x21d   : > { %1784 = vmatmul.bf16.gmra.mxu2 %v1320_v14  ;;  %1873 = vmatmul.bf16.gmra.mxu3 %v1320_v14  ;;  %v5658_v55 = vpack.c.bf16 %v1933_v61, %v1929_v26  ;;  %v5660_v11 = vpack.c.bf16 %v1934_v28, %v1930_v6 }
 0x220   : > { %v1745_v46 = vpop.f32.mrf.mxu2  ;;  %v1834_v13 = vpop.f32.mrf.mxu3 }
 0x221   : > { %v1569_v20 = vpop.f32.mrf.mxu0  ;;  %v1658_v56 = vpop.f32.mrf.mxu1  ;;  %v1746_v16 = vadd.f32 %v1745_v46, %v5499_v38  ;;  %v1835_v10 = vadd.f32 %v1834_v13, %v5501_v50 }
 0x222   : > { %v1570_v60 = vadd.f32 %v1569_v20, %v5484_v52  ;;  %v1659_v47 = vadd.f32 %v1658_v56, %v5486_v54 }
 0x223   : > { %v1937_v17 = vmax.f32 %v1746_v16, 0.0  ;;  %v1938_v22 = vmax.f32 %v1835_v10, 0.0 }
 0x224   : > { %v1939_v39 = vmax.f32 %v1570_v60, 0.0  ;;  %v1940_v14 = vmax.f32 %v1659_v47, 0.0 }
 0x226   : > { %v5666_v26 = vpack.c.bf16 %v1939_v39, %v1935_v30  ;;  %v5668_v6 = vpack.c.bf16 %v1940_v14, %v1936_v12 }
 0x228   : > { %v1747_v61 = vpop.f32.mrf.mxu2  ;;  %v1836_v28 = vpop.f32.mrf.mxu3 }
 0x229   : > { %v1748_v5 = vadd.f32 %v1747_v61, %v5499_v38  ;;  %v1837_v20 = vadd.f32 %v1836_v28, %v5501_v50  ;;  %v1572_v40 = vpop.f32.mrf.mxu0  ;;  %v1661_v56 = vpop.f32.mrf.mxu1 }
 0x22a   : > { %v1573_v30 = vadd.f32 %v1572_v40, %v5484_v52  ;;  %v1662_v12 = vadd.f32 %v1661_v56, %v5486_v54 }
 0x22b   : > { %v1941_v60 = vmax.f32 %v1748_v5, 0.0  ;;  %v1942_v47 = vmax.f32 %v1837_v20, 0.0 }
 0x22c   : > { %2339 = vmatmul.bf16.vlgmr.msrb.gmra.mxu0 %v5505_v48  ;;  %2428 = vmatmul.bf16.vlgmr.msra.gmra.mxu1 %v5507_v63  ;;  %v1943_v10 = vmax.f32 %v1573_v30, 0.0 }
 0x22d   : > { %2517 = vmatmul.bf16.vlgmr.msrb.gmra.mxu2 %v5514_v1  ;;  %2606 = vmatmul.bf16.vlgmr.msra.gmra.mxu3 %v5516_v27  ;;  %v5678_v46 = vpack.c.bf16 %v1941_v60, %v1937_v17  ;;  %v5680_v13 = vpack.c.bf16 %v1942_v47, %v1938_v22  ;;  %v1944_v1 = vmax.f32 %v1662_v12, 0.0 }
 0x230   : > { %v1750_v39 = vpop.f32.mrf.mxu2  ;;  %v1839_v14 = vpop.f32.mrf.mxu3 }
 0x231   : > { %v1574_v5 = vpop.f32.mrf.mxu0  ;;  %v1663_v16 = vpop.f32.mrf.mxu1  ;;  %v1751_v40 = vadd.f32 %v1750_v39, %v5499_v38  ;;  %v1840_v56 = vadd.f32 %v1839_v14, %v5501_v50 }
 0x232   : > { %v1575_v48 = vadd.f32 %v1574_v5, %v5484_v52  ;;  %v1664_v63 = vadd.f32 %v1663_v16, %v5486_v54 }
 0x233   : > { %v1945_v30 = vmax.f32 %v1751_v40, 0.0  ;;  %v1946_v12 = vmax.f32 %v1840_v56, 0.0 }
 0x234   : > { %v1947_v61 = vmax.f32 %v1575_v48, 0.0  ;;  %v1948_v27 = vmax.f32 %v1664_v63, 0.0 }
 0x236   : > { %v5686_v28 = vpack.c.bf16 %v1947_v61, %v1943_v10  ;;  %v5688_v20 = vpack.c.bf16 %v1948_v27, %v1944_v1 }
 0x238   : > { %v1752_v17 = vpop.f32.mrf.mxu2  ;;  %v1841_v22 = vpop.f32.mrf.mxu3 }
 0x239   : > { %v1753_v60 = vadd.f32 %v1752_v17, %v5499_v38  ;;  %v1842_v47 = vadd.f32 %v1841_v22, %v5501_v50  ;;  %v1577_v5 = vpop.f32.mrf.mxu0  ;;  %v1666_v16 = vpop.f32.mrf.mxu1 }
 0x23a   : > { %v1578_v10 = vadd.f32 %v1577_v5, %v5484_v52  ;;  %v1667_v1 = vadd.f32 %v1666_v16, %v5486_v54 }
 0x23b   : > { %v1949_v48 = vmax.f32 %v1753_v60, 0.0  ;;  %v1950_v63 = vmax.f32 %v1842_v47, 0.0 }
 0x23c   : > { %2344 = vmatmul.bf16.gmra.mxu0 %v5529_v7  ;;  %2433 = vmatmul.bf16.gmra.mxu1 %v5531_v58  ;;  %v1951_v17 = vmax.f32 %v1578_v10, 0.0 }
 0x23d   : > { %2522 = vmatmul.bf16.gmra.mxu2 %v5538_v57  ;;  %2611 = vmatmul.bf16.gmra.mxu3 %v5540_v3  ;;  %v5698_v39 = vpack.c.bf16 %v1949_v48, %v1945_v30  ;;  %v5700_v14 = vpack.c.bf16 %v1950_v63, %v1946_v12  ;;  %v1952_v57 = vmax.f32 %v1667_v1, 0.0 }
 0x240   : > { %v1755_v61 = vpop.f32.mrf.mxu2  ;;  %v1844_v27 = vpop.f32.mrf.mxu3 }
 0x241   : > { %v1579_v40 = vpop.f32.mrf.mxu0  ;;  %v1668_v56 = vpop.f32.mrf.mxu1  ;;  %v1756_v5 = vadd.f32 %v1755_v61, %v5499_v38  ;;  %v1845_v16 = vadd.f32 %v1844_v27, %v5501_v50 }
 0x242   : > { %v1580_v7 = vadd.f32 %v1579_v40, %v5484_v52  ;;  %v1669_v58 = vadd.f32 %v1668_v56, %v5486_v54 }
 0x243   : > { %v1953_v10 = vmax.f32 %v1756_v5, 0.0  ;;  %v1954_v1 = vmax.f32 %v1845_v16, 0.0 }
 0x244   : > { %v1955_v22 = vmax.f32 %v1580_v7, 0.0  ;;  %v1956_v3 = vmax.f32 %v1669_v58, 0.0 }
 0x246   : > { %v5706_v60 = vpack.c.bf16 %v1955_v22, %v1951_v17  ;;  %v5708_v47 = vpack.c.bf16 %v1956_v3, %v1952_v57 }
 0x248   : > { %v1757_v30 = vpop.f32.mrf.mxu2  ;;  %v1846_v12 = vpop.f32.mrf.mxu3 }
 0x249   : > { %v1758_v48 = vadd.f32 %v1757_v30, %v5499_v38  ;;  %v1847_v63 = vadd.f32 %v1846_v12, %v5501_v50  ;;  %v1582_v40 = vpop.f32.mrf.mxu0  ;;  %v1671_v56 = vpop.f32.mrf.mxu1 }
 0x24a   : > { %v1583_v17 = vadd.f32 %v1582_v40, %v5484_v52  ;;  %v1672_v57 = vadd.f32 %v1671_v56, %v5486_v54 }
 0x24b   : > { %v1957_v7 = vmax.f32 %v1758_v48, 0.0  ;;  %v1958_v58 = vmax.f32 %v1847_v63, 0.0 }
 0x24c   : > { %2349 = vmatmul.bf16.gmra.mxu0 %v5553_v19  ;;  %2438 = vmatmul.bf16.gmra.mxu1 %v5555_v15  ;;  %v1959_v30 = vmax.f32 %v1583_v17, 0.0 }
 0x24d   : > { %2527 = vmatmul.bf16.gmra.mxu2 %v5562_v33  ;;  %2616 = vmatmul.bf16.gmra.mxu3 %v5564_v62  ;;  %v5718_v61 = vpack.c.bf16 %v1957_v7, %v1953_v10  ;;  %v5720_v27 = vpack.c.bf16 %v1958_v58, %v1954_v1  ;;  %v1960_v33 = vmax.f32 %v1672_v57, 0.0 }
 0x250   : > { %v1760_v22 = vpop.f32.mrf.mxu2  ;;  %v1849_v3 = vpop.f32.mrf.mxu3 }
 0x251   : > { %v1584_v5 = vpop.f32.mrf.mxu0  ;;  %v1673_v16 = vpop.f32.mrf.mxu1  ;;  %v1761_v40 = vadd.f32 %v1760_v22, %v5499_v38  ;;  %v1850_v56 = vadd.f32 %v1849_v3, %v5501_v50 }
 0x252   : > { %v1585_v19 = vadd.f32 %v1584_v5, %v5484_v52  ;;  %v1674_v15 = vadd.f32 %v1673_v16, %v5486_v54 }
 0x253   : > { %v1961_v17 = vmax.f32 %v1761_v40, 0.0  ;;  %v1962_v57 = vmax.f32 %v1850_v56, 0.0 }
 0x254   : > { %v1963_v12 = vmax.f32 %v1585_v19, 0.0  ;;  %v1964_v62 = vmax.f32 %v1674_v15, 0.0 }
 0x256   : > { %v5726_v48 = vpack.c.bf16 %v1963_v12, %v1959_v30  ;;  %v5728_v63 = vpack.c.bf16 %v1964_v62, %v1960_v33 }
 0x258   : > { %v1762_v10 = vpop.f32.mrf.mxu2  ;;  %v1851_v1 = vpop.f32.mrf.mxu3 }
 0x259   : > { %v1763_v7 = vadd.f32 %v1762_v10, %v5499_v38  ;;  %v1852_v58 = vadd.f32 %v1851_v1, %v5501_v50  ;;  %v1587_v5 = vpop.f32.mrf.mxu0  ;;  %v1676_v16 = vpop.f32.mrf.mxu1 }
 0x25a   : > { %v1588_v30 = vadd.f32 %v1587_v5, %v5484_v52  ;;  %v1677_v33 = vadd.f32 %v1676_v16, %v5486_v54 }
 0x25b   : > { %v1965_v19 = vmax.f32 %v1763_v7, 0.0  ;;  %v1966_v15 = vmax.f32 %v1852_v58, 0.0 }
 0x25c   : > { %2354 = vmatmul.bf16.gmra.mxu0 %v5577_v2  ;;  %2443 = vmatmul.bf16.gmra.mxu1 %v5579_v4  ;;  %v1967_v10 = vmax.f32 %v1588_v30, 0.0 }
 0x25d   : > { %2532 = vmatmul.bf16.gmra.mxu2 %v5586_v32  ;;  %2621 = vmatmul.bf16.gmra.mxu3 %v5588_v37  ;;  %v5738_v22 = vpack.c.bf16 %v1965_v19, %v1961_v17  ;;  %v5740_v3 = vpack.c.bf16 %v1966_v15, %v1962_v57  ;;  %v1968_v32 = vmax.f32 %v1677_v33, 0.0 }
 0x260   : > { %v1765_v12 = vpop.f32.mrf.mxu2  ;;  %v1854_v62 = vpop.f32.mrf.mxu3 }
 0x261   : > { %v1589_v40 = vpop.f32.mrf.mxu0  ;;  %v1678_v56 = vpop.f32.mrf.mxu1  ;;  %v1766_v5 = vadd.f32 %v1765_v12, %v5499_v38  ;;  %v1855_v16 = vadd.f32 %v1854_v62, %v5501_v50 }
 0x262   : > { %v1590_v2 = vadd.f32 %v1589_v40, %v5484_v52  ;;  %v1679_v4 = vadd.f32 %v1678_v56, %v5486_v54 }
 0x263   : > { %v1969_v30 = vmax.f32 %v1766_v5, 0.0  ;;  %v1970_v33 = vmax.f32 %v1855_v16, 0.0 }
 0x264   : > { %v1971_v1 = vmax.f32 %v1590_v2, 0.0  ;;  %v1972_v37 = vmax.f32 %v1679_v4, 0.0 }
 0x266   : > { %v5746_v7 = vpack.c.bf16 %v1971_v1, %v1967_v10  ;;  %v5748_v58 = vpack.c.bf16 %v1972_v37, %v1968_v32 }
 0x268   : > { %v1767_v17 = vpop.f32.mrf.mxu2  ;;  %v1856_v57 = vpop.f32.mrf.mxu3 }
 0x269   : > { %v1768_v19 = vadd.f32 %v1767_v17, %v5499_v38  ;;  %v1857_v15 = vadd.f32 %v1856_v57, %v5501_v50  ;;  %v1592_v40 = vpop.f32.mrf.mxu0  ;;  %v1681_v56 = vpop.f32.mrf.mxu1 }
 0x26a   : > { %v1593_v10 = vadd.f32 %v1592_v40, %v5484_v52  ;;  %v1682_v32 = vadd.f32 %v1681_v56, %v5486_v54 }
 0x26b   : > { %v1973_v2 = vmax.f32 %v1768_v19, 0.0  ;;  %v1974_v4 = vmax.f32 %v1857_v15, 0.0 }
 0x26c   : > { %2359 = vmatmul.bf16.gmra.mxu0 %v5601_v59  ;;  %2448 = vmatmul.bf16.gmra.mxu1 %v5603_v45  ;;  %v1975_v17 = vmax.f32 %v1593_v10, 0.0 }
 0x26d   : > { %2537 = vmatmul.bf16.gmra.mxu2 %v5610_v31  ;;  %2626 = vmatmul.bf16.gmra.mxu3 %v5612_v41  ;;  %v5758_v12 = vpack.c.bf16 %v1973_v2, %v1969_v30  ;;  %v5760_v62 = vpack.c.bf16 %v1974_v4, %v1970_v33  ;;  %v1976_v31 = vmax.f32 %v1682_v32, 0.0 }
 0x270   : > { %v1770_v1 = vpop.f32.mrf.mxu2  ;;  %v1859_v37 = vpop.f32.mrf.mxu3 }
 0x271   : > { %v1594_v5 = vpop.f32.mrf.mxu0  ;;  %v1683_v16 = vpop.f32.mrf.mxu1  ;;  %v1771_v40 = vadd.f32 %v1770_v1, %v5499_v38  ;;  %v1860_v56 = vadd.f32 %v1859_v37, %v5501_v50 }
 0x272   : > { %v1595_v59 = vadd.f32 %v1594_v5, %v5484_v52  ;;  %v1684_v45 = vadd.f32 %v1683_v16, %v5486_v54 }
 0x273   : > { %v1977_v10 = vmax.f32 %v1771_v40, 0.0  ;;  %v1978_v32 = vmax.f32 %v1860_v56, 0.0 }
 0x274   : > { %v1979_v57 = vmax.f32 %v1595_v59, 0.0  ;;  %v1980_v41 = vmax.f32 %v1684_v45, 0.0 }
 0x276   : > { %v5766_v19 = vpack.c.bf16 %v1979_v57, %v1975_v17  ;;  %v5768_v15 = vpack.c.bf16 %v1980_v41, %v1976_v31 }
 0x278   : > { %v1772_v30 = vpop.f32.mrf.mxu2  ;;  %v1861_v33 = vpop.f32.mrf.mxu3 }
 0x279   : > { %v1773_v2 = vadd.f32 %v1772_v30, %v5499_v38  ;;  %v1862_v4 = vadd.f32 %v1861_v33, %v5501_v50  ;;  %v1597_v5 = vpop.f32.mrf.mxu0  ;;  %v1686_v16 = vpop.f32.mrf.mxu1 }
 0x27a   : > { %v1598_v17 = vadd.f32 %v1597_v5, %v5484_v52  ;;  %v1687_v31 = vadd.f32 %v1686_v16, %v5486_v54 }
 0x27b   : > { %v1981_v59 = vmax.f32 %v1773_v2, 0.0  ;;  %v1982_v45 = vmax.f32 %v1862_v4, 0.0 }
 0x27c   : > { %2364 = vmatmul.bf16.gmra.mxu0 %v5625_v8  ;;  %2453 = vmatmul.bf16.gmra.mxu1 %v5627_v24  ;;  %v1983_v30 = vmax.f32 %v1598_v17, 0.0 }
 0x27d   : > { %2542 = vmatmul.bf16.gmra.mxu2 %v5634_v23  ;;  %2631 = vmatmul.bf16.gmra.mxu3 %v5636_v9  ;;  %v5778_v1 = vpack.c.bf16 %v1981_v59, %v1977_v10  ;;  %v5780_v37 = vpack.c.bf16 %v1982_v45, %v1978_v32  ;;  %v1984_v23 = vmax.f32 %v1687_v31, 0.0 }
 0x280   : > { %v1775_v57 = vpop.f32.mrf.mxu2  ;;  %v1864_v41 = vpop.f32.mrf.mxu3 }
 0x281   : > { %v1599_v40 = vpop.f32.mrf.mxu0  ;;  %v1688_v56 = vpop.f32.mrf.mxu1  ;;  %v1776_v5 = vadd.f32 %v1775_v57, %v5499_v38  ;;  %v1865_v16 = vadd.f32 %v1864_v41, %v5501_v50 }
 0x282   : > { %v1600_v8 = vadd.f32 %v1599_v40, %v5484_v52  ;;  %v1689_v24 = vadd.f32 %v1688_v56, %v5486_v54 }
 0x283   : > { %v1985_v17 = vmax.f32 %v1776_v5, 0.0  ;;  %v1986_v31 = vmax.f32 %v1865_v16, 0.0 }
 0x284   : > { %v1987_v33 = vmax.f32 %v1600_v8, 0.0  ;;  %v1988_v9 = vmax.f32 %v1689_v24, 0.0 }
 0x286   : > { %v5786_v2 = vpack.c.bf16 %v1987_v33, %v1983_v30  ;;  %v5788_v4 = vpack.c.bf16 %v1988_v9, %v1984_v23 }
 0x288   : > { %v1777_v10 = vpop.f32.mrf.mxu2  ;;  %v1866_v32 = vpop.f32.mrf.mxu3 }
 0x289   : > { %v1778_v59 = vadd.f32 %v1777_v10, %v5499_v38  ;;  %v1867_v45 = vadd.f32 %v1866_v32, %v5501_v50  ;;  %v1602_v40 = vpop.f32.mrf.mxu0  ;;  %v1691_v56 = vpop.f32.mrf.mxu1 }
 0x28a   : > { %v1603_v30 = vadd.f32 %v1602_v40, %v5484_v52  ;;  %v1692_v23 = vadd.f32 %v1691_v56, %v5486_v54 }
 0x28b   : > { %v1989_v8 = vmax.f32 %v1778_v59, 0.0  ;;  %v1990_v24 = vmax.f32 %v1867_v45, 0.0 }
 0x28c   : > { %2369 = vmatmul.bf16.gmra.mxu0 %v5649_v21  ;;  %2458 = vmatmul.bf16.gmra.mxu1 %v5651_v25  ;;  %v1991_v10 = vmax.f32 %v1603_v30, 0.0 }
 0x28d   : > { %2547 = vmatmul.bf16.gmra.mxu2 %v5658_v55  ;;  %2636 = vmatmul.bf16.gmra.mxu3 %v5660_v11  ;;  %v5798_v57 = vpack.c.bf16 %v1989_v8, %v1985_v17  ;;  %v5800_v41 = vpack.c.bf16 %v1990_v24, %v1986_v31  ;;  %v1992_v55 = vmax.f32 %v1692_v23, 0.0 }
 0x290   : > { %v1780_v33 = vpop.f32.mrf.mxu2  ;;  %v1869_v9 = vpop.f32.mrf.mxu3 }
 0x291   : > { %v1604_v5 = vpop.f32.mrf.mxu0  ;;  %v1693_v16 = vpop.f32.mrf.mxu1  ;;  %v1781_v40 = vadd.f32 %v1780_v33, %v5499_v38  ;;  %v1870_v56 = vadd.f32 %v1869_v9, %v5501_v50 }
 0x292   : > { %v1605_v21 = vadd.f32 %v1604_v5, %v5484_v52  ;;  %v1694_v25 = vadd.f32 %v1693_v16, %v5486_v54 }
 0x293   : > { %v1993_v30 = vmax.f32 %v1781_v40, 0.0  ;;  %v1994_v23 = vmax.f32 %v1870_v56, 0.0 }
 0x294   : > { %v1995_v32 = vmax.f32 %v1605_v21, 0.0  ;;  %v1996_v11 = vmax.f32 %v1694_v25, 0.0 }
 0x296   : > { %v5806_v59 = vpack.c.bf16 %v1995_v32, %v1991_v10  ;;  %v5808_v45 = vpack.c.bf16 %v1996_v11, %v1992_v55 }
 0x298   : > { %v1782_v17 = vpop.f32.mrf.mxu2  ;;  %v1871_v31 = vpop.f32.mrf.mxu3 }
 0x299   : > { %v1783_v8 = vadd.f32 %v1782_v17, %v5499_v38  ;;  %v1872_v24 = vadd.f32 %v1871_v31, %v5501_v50  ;;  %v1607_v5 = vpop.f32.mrf.mxu0  ;;  %v1696_v16 = vpop.f32.mrf.mxu1 }
 0x29a   : > { %v1608_v10 = vadd.f32 %v1607_v5, %v5484_v52  ;;  %v1697_v55 = vadd.f32 %v1696_v16, %v5486_v54 }
 0x29b   : > { %v1997_v21 = vmax.f32 %v1783_v8, 0.0  ;;  %v1998_v25 = vmax.f32 %v1872_v24, 0.0  ;;  %v5829_v8 = vld [vmem:[%s6476_s19] ss:$0 sm:$0xff] }
 0x29c   : > { %2374 = vmatmul.bf16.gmra.mxu0 %v5666_v26  ;;  %2463 = vmatmul.bf16.gmra.mxu1 %v5668_v6  ;;  %v1999_v17 = vmax.f32 %v1608_v10, 0.0 }
 0x29d   : > { %2552 = vmatmul.bf16.gmra.mxu2 %v5678_v46  ;;  %2641 = vmatmul.bf16.gmra.mxu3 %v5680_v13  ;;  %v5818_v33 = vpack.c.bf16 %v1997_v21, %v1993_v30  ;;  %v5820_v9 = vpack.c.bf16 %v1998_v25, %v1994_v23  ;;  %v2000_v46 = vmax.f32 %v1697_v55, 0.0 }
 0x2a0   : > { %v1785_v32 = vpop.f32.mrf.mxu2  ;;  %v1874_v11 = vpop.f32.mrf.mxu3 }
 0x2a1   : > { %v1609_v40 = vpop.f32.mrf.mxu0  ;;  %v1698_v56 = vpop.f32.mrf.mxu1  ;;  %v1786_v16 = vadd.f32 %v1785_v32, %v5499_v38  ;;  %v1875_v30 = vadd.f32 %v1874_v11, %v5501_v50 }
 0x2a2   : > { %v1610_v26 = vadd.f32 %v1609_v40, %v5484_v52  ;;  %v1699_v6 = vadd.f32 %v1698_v56, %v5486_v54 }
 0x2a3   : > { %v2001_v40 = vmax.f32 %v1786_v16, 0.0  ;;  %v2002_v56 = vmax.f32 %v1875_v30, 0.0 }
 0x2a4   : > { %v2003_v31 = vmax.f32 %v1610_v26, 0.0  ;;  %v2004_v13 = vmax.f32 %v1699_v6, 0.0 }
 0x2a6   : > { %v5831_v24 = vpack.c.bf16 %v2003_v31, %v1999_v17  ;;  %v5833_v5 = vpack.c.bf16 %v2004_v13, %v2000_v46 }
 0x2a8   : > { %v1787_v52 = vpop.f32.mrf.mxu2  ;;  %v1876_v23 = vpop.f32.mrf.mxu3 }
 0x2a9   : > { %v1788_v54 = vadd.f32 %v1787_v52, %v5499_v38  ;;  %v1877_v21 = vadd.f32 %v1876_v23, %v5501_v50  ;;  %v2340_v25 = vpop.f32.mrf.mxu0  ;;  %v2429_v10 = vpop.f32.mrf.mxu1 }
 0x2aa   : > { %v2341_v55 = vadd.f32 %v5829_v8, %v2340_v25 }
 0x2ab   : > { %v2005_v26 = vmax.f32 %v1788_v54, 0.0  ;;  %v2006_v6 = vmax.f32 %v1877_v21, 0.0 }
 0x2ac   : > { %v2430_v17 = vadd.f32 %v2429_v10, %v2341_v55  ;;  %2379 = vmatmul.bf16.gmra.mxu0 %v5686_v28  ;;  %2468 = vmatmul.bf16.gmra.mxu1 %v5688_v20 }
 0x2ad   : > { %2557 = vmatmul.bf16.gmra.mxu2 %v5698_v39  ;;  %2646 = vmatmul.bf16.gmra.mxu3 %v5700_v14  ;;  %v5844_v38 = vpack.c.bf16 %v2005_v26, %v2001_v40  ;;  %v5846_v50 = vpack.c.bf16 %v2006_v6, %v2002_v56 }
 0x2b0   : > { %v2518_v32 = vpop.f32.mrf.mxu2  ;;  %v2607_v11 = vpop.f32.mrf.mxu3 }
 0x2b1   : > { %v2519_v46 = vadd.f32 %v2518_v32, %v2430_v17  ;;  %v2342_v31 = vpop.f32.mrf.mxu0  ;;  %v2431_v13 = vpop.f32.mrf.mxu1 }
 0x2b2   : > { %v2343_v16 = vadd.f32 %v5829_v8, %v2342_v31 }
 0x2b3   : > { %v2608_v30 = vadd.f32 %v2607_v11, %v2519_v46 }
 0x2b4   : > { %v2432_v52 = vadd.f32 %v2431_v13, %v2343_v16 }
 0x2b8   : > { %v2520_v28 = vpop.f32.mrf.mxu2  ;;  %v2609_v23 = vpop.f32.mrf.mxu3 }
 0x2b9   : > { %v2521_v20 = vadd.f32 %v2520_v28, %v2432_v52  ;;  %v2345_v54 = vpop.f32.mrf.mxu0  ;;  %v2434_v39 = vpop.f32.mrf.mxu1 }
 0x2ba   : > { %v2346_v14 = vadd.f32 %v5829_v8, %v2345_v54 }
 0x2bb   : > { %v2610_v21 = vadd.f32 %v2609_v23, %v2521_v20 }
 0x2bc   : > { %v2435_v25 = vadd.f32 %v2434_v39, %v2346_v14  ;;  %2384 = vmatmul.bf16.gmra.mxu0 %v5706_v60  ;;  %2473 = vmatmul.bf16.gmra.mxu1 %v5708_v47 }
 0x2bd   : > { %v2687_v10 = vmax.f32 %v2608_v30, %v2610_v21  ;;  %2562 = vmatmul.bf16.gmra.mxu2 %v5718_v61  ;;  %2651 = vmatmul.bf16.gmra.mxu3 %v5720_v27 }
 0x2bf   : > { %v2688_v55 = vrot.slane %v2687_v10, 4 }
 0x2c0   : > { %v2523_v40 = vpop.f32.mrf.mxu2  ;;  %v2612_v56 = vpop.f32.mrf.mxu3 }
 0x2c1   : > { %v2689_v26 = vmax.f32 %v2687_v10, %v2688_v55  ;;  %v2524_v6 = vadd.f32 %v2523_v40, %v2435_v25  ;;  %v2347_v17 = vpop.f32.mrf.mxu0  ;;  %v2436_v32 = vpop.f32.mrf.mxu1 }
 0x2c2   : > { %v2348_v11 = vadd.f32 %v5829_v8, %v2347_v17 }
 0x2c3   : > { %v2690_v46 = vrot.slane %v2689_v26, 2  ;;  %v2613_v31 = vadd.f32 %v2612_v56, %v2524_v6 }
 0x2c4   : > { %v2437_v13 = vadd.f32 %v2436_v32, %v2348_v11 }
 0x2c5   : > { %v2691_v60 = vmax.f32 %v2689_v26, %v2690_v46 }
 0x2c7   : > { %v2692_v16 = vrot.slane %v2691_v60, 1 }
 0x2c8   : > { %v2525_v47 = vpop.f32.mrf.mxu2  ;;  %v2614_v52 = vpop.f32.mrf.mxu3 }
 0x2c9   : > { %v2693_v28 = vmax.f32 %v2691_v60, %v2692_v16  ;;  %v2526_v61 = vadd.f32 %v2525_v47, %v2437_v13  ;;  %v2350_v23 = vpop.f32.mrf.mxu0  ;;  %v2439_v27 = vpop.f32.mrf.mxu1 }
 0x2ca   : > { %v2351_v20 = vadd.f32 %v5829_v8, %v2350_v23 }
 0x2cb   : > { %v2799_v54 = vsub.f32 %v2608_v30, %v2693_v28  ;;  %v2800_v39 = vsub.f32 %v2610_v21, %v2693_v28  ;;  %v2615_v14 = vadd.f32 %v2614_v52, %v2526_v61 }
 0x2cc   : > { %v2440_v25 = vadd.f32 %v2439_v27, %v2351_v20  ;;  %2389 = vmatmul.bf16.gmra.mxu0 %v5726_v48  ;;  %2478 = vmatmul.bf16.gmra.mxu1 %v5728_v63 }
 0x2cd   : > { %v2831_v10 = vmul.f32 1.442695, %v2799_v54  ;;  %v2833_v55 = vmul.f32 1.442695, %v2800_v39  ;;  %v2694_v40 = vmax.f32 %v2613_v31, %v2615_v14  ;;  %2567 = vmatmul.bf16.gmra.mxu2 %v5738_v22  ;;  %2656 = vmatmul.bf16.gmra.mxu3 %v5740_v3 }
 0x2cf   : > { %4359 = vpow2.f32 %v2831_v10  ;;  %v2695_v56 = vrot.slane %v2694_v40, 4 }
 0x2d0   : > { %4361 = vpow2.f32 %v2833_v55  ;;  %v2528_v26 = vpop.f32.mrf.mxu2  ;;  %v2617_v6 = vpop.f32.mrf.mxu3 }
 0x2d1   : > { %v2696_v30 = vmax.f32 %v2694_v40, %v2695_v56  ;;  %v2529_v21 = vadd.f32 %v2528_v26, %v2440_v25  ;;  %v2352_v17 = vpop.f32.mrf.mxu0  ;;  %v2441_v32 = vpop.f32.mrf.mxu1 }
 0x2d2   : > { %v2353_v48 = vadd.f32 %v5829_v8, %v2352_v17 }
 0x2d3   : > { %v2697_v11 = vrot.slane %v2696_v30, 2  ;;  %v5861_v63 = vadd.f32 %v2617_v6, %v2529_v21 }
 0x2d4   : > { %v2442_v46 = vadd.f32 %v2441_v32, %v2353_v48 }
 0x2d5   : > { %v5863_v13 = vpop.eup %4359  ;;  %v2698_v22 = vmax.f32 %v2696_v30, %v2697_v11 }
 0x2d6   : > { %v5865_v60 = vpop.eup %4361 }
 0x2d7   : > { %v2895_v3 = vadd.f32 %v5865_v60, %v5863_v13  ;;  %v2699_v16 = vrot.slane %v2698_v22, 1 }
 0x2d8   : > { %v2530_v47 = vpop.f32.mrf.mxu2  ;;  %v2619_v52 = vpop.f32.mrf.mxu3 }
 0x2d9   : > { %v2896_v28 = vrot.slane %v2895_v3, 4  ;;  %v2700_v61 = vmax.f32 %v2698_v22, %v2699_v16  ;;  %v2531_v23 = vadd.f32 %v2530_v47, %v2442_v46  ;;  %v2355_v27 = vpop.f32.mrf.mxu0  ;;  %v2444_v20 = vpop.f32.mrf.mxu1 }
 0x2da   : > { %v2356_v54 = vadd.f32 %v5829_v8, %v2355_v27 }
 0x2db   : > { %v2897_v39 = vadd.f32 %v2896_v28, %v2895_v3  ;;  %v2801_v25 = vsub.f32 %v2613_v31, %v2700_v61  ;;  %v2802_v10 = vsub.f32 %v2615_v14, %v2700_v61  ;;  %v2620_v55 = vadd.f32 %v2619_v52, %v2531_v23 }
 0x2dc   : > { %v2445_v40 = vadd.f32 %v2444_v20, %v2356_v54  ;;  %2394 = vmatmul.bf16.gmra.mxu0 %v5746_v7  ;;  %2483 = vmatmul.bf16.gmra.mxu1 %v5748_v58 }
 0x2dd   : > { %v2898_v56 = vrot.slane %v2897_v39, 2  ;;  %v2835_v26 = vmul.f32 1.442695, %v2801_v25  ;;  %v2837_v6 = vmul.f32 1.442695, %v2802_v10  ;;  %v2701_v30 = vmax.f32 %v5861_v63, %v2620_v55  ;;  %2572 = vmatmul.bf16.gmra.mxu2 %v5758_v12  ;;  %2661 = vmatmul.bf16.gmra.mxu3 %v5760_v62 }
 0x2df   : > { %v2899_v21 = vadd.f32 %v2898_v56, %v2897_v39  ;;  %4363 = vpow2.f32 %v2835_v26  ;;  %v2702_v17 = vrot.slane %v2701_v30, 4 }
 0x2e0   : > { %4365 = vpow2.f32 %v2837_v6  ;;  %v2533_v31 = vpop.f32.mrf.mxu2  ;;  %v2622_v14 = vpop.f32.mrf.mxu3 }
 0x2e1   : > { %v2900_v32 = vrot.slane %v2899_v21, 1  ;;  %v2703_v48 = vmax.f32 %v2701_v30, %v2702_v17  ;;  %v2534_v7 = vadd.f32 %v2533_v31, %v2445_v40  ;;  %v2357_v11 = vpop.f32.mrf.mxu0  ;;  %v2446_v58 = vpop.f32.mrf.mxu1 }
 0x2e2   : > { %v2358_v16 = vadd.f32 %v5829_v8, %v2357_v11 }
 0x2e3   : > { %v2901_v46 = vadd.f32 %v2900_v32, %v2899_v21  ;;  %v2704_v22 = vrot.slane %v2703_v48, 2  ;;  %v5875_v3 = vadd.f32 %v2622_v14, %v2534_v7 }
 0x2e4   : > { %v2447_v28 = vadd.f32 %v2446_v58, %v2358_v16 }
 0x2e5   : > { %v5878_v12 = vpop.eup %4363  ;;  %4367 = vrcp.f32 %v2901_v46  ;;  %v2705_v47 = vmax.f32 %v2703_v48, %v2704_v22  ;;  %v3018_v7 = vand.u32 2147483648, %v2901_v46  ;;  %vm3012_vm1 = vweird.f32 %v2901_v46 }
 0x2e6   : > { %v5880_v62 = vpop.eup %4365 }
 0x2e7   : > { %v2902_v52 = vadd.f32 %v5880_v62, %v5878_v12  ;;  %v2706_v61 = vrot.slane %v2705_v47, 1 }
 0x2e8   : > { %v2535_v23 = vpop.f32.mrf.mxu2  ;;  %v2624_v27 = vpop.f32.mrf.mxu3 }
 0x2e9   : > { %v2903_v20 = vrot.slane %v2902_v52, 4  ;;  %v2536_v54 = vadd.f32 %v2535_v23, %v2447_v28  ;;  %v2360_v39 = vpop.f32.mrf.mxu0  ;;  %v2449_v25 = vpop.f32.mrf.mxu1  ;;  %v2707_v10 = vmax.f32 %v2705_v47, %v2706_v61  ;;  %v3019_v28 = vor.u32 1.1754944e-38, %v3018_v7 }
 0x2ea   : > { %v2361_v47 = vadd.f32 %v5829_v8, %v2360_v39  ;;  %v3263_v39 = vadd.f32 %v5281_v51, %v5258_v35 }
 0x2eb   : > { %v4368_v40 = vpop.eup %4367  ;;  %v2904_v56 = vadd.f32 %v2903_v20, %v2902_v52  ;;  %v5884_v26 = vadd.f32 %v2624_v27, %v2536_v54  ;;  %v2803_v30 = vsub.f32 %v5861_v63, %v2707_v10  ;;  %v2804_v21 = vsub.f32 %v2620_v55, %v2707_v10 }
 0x2ec   : > { %v3008_v6 = vmul.f32 %v4368_v40, %v2901_v46  ;;  %2399 = vmatmul.bf16.gmra.mxu0 %v5766_v19  ;;  %2488 = vmatmul.bf16.gmra.mxu1 %v5768_v15  ;;  %vm3013_vm0 = vweird.f32 %v4368_v40  ;;  %v3016_v55 = vand.u32 2147483647, %v2901_v46  ;;  %v2450_v10 = vadd.f32 %v2449_v25, %v2361_v47 }
 0x2ed   : > { %v2905_v17 = vrot.slane %v2904_v56, 2  ;;  %v2708_v31 = vmax.f32 %v5875_v3, %v5884_v26  ;;  %2577 = vmatmul.bf16.gmra.mxu2 %v5778_v1  ;;  %2666 = vmatmul.bf16.gmra.mxu3 %v5780_v37  ;;  %v2839_v32 = vmul.f32 1.442695, %v2803_v30  ;;  %v2841_v48 = vmul.f32 1.442695, %v2804_v21  ;;  %vm3014_vm2 = vmor %vm3012_vm1, %vm3013_vm0 }
 0x2ee   : > { %v3009_v14 = vsub.f32 1.0, %v3008_v6  ;;  %vm3017_vm3 = vcmp.eq.f32.partialorder %v3016_v55, 8.507059e+37  ;;  %v3264_v46 = vadd.f32 %v5284_v53, %v5266_v44 }
 0x2ef   : > { %v2906_v11 = vadd.f32 %v2905_v17, %v2904_v56  ;;  %v2709_v58 = vrot.slane %v2708_v31, 4  ;;  %4369 = vpow2.f32 %v2839_v32 }
 0x2f0   : > { %v3010_v63 = vmul.f32 %v4368_v40, %v3009_v14  ;;  %v2538_v19 = vpop.f32.mrf.mxu2  ;;  %v2627_v15 = vpop.f32.mrf.mxu3  ;;  %4371 = vpow2.f32 %v2841_v48 }
 0x2f1   : > { %v2907_v22 = vrot.slane %v2906_v11, 1  ;;  %v2710_v16 = vmax.f32 %v2708_v31, %v2709_v58  ;;  %v2362_v1 = vpop.f32.mrf.mxu0  ;;  %v2451_v52 = vpop.f32.mrf.mxu1  ;;  %v2539_v17 = vadd.f32 %v2538_v19, %v2450_v10 }
 0x2f2   : > { %v3011_v37 = vadd.f32 %v4368_v40, %v3010_v63  ;;  %v2363_v27 = vadd.f32 %v5829_v8, %v2362_v1 }
 0x2f3   : > { %v5894_v61 = vadd.f32 %v2907_v22, %v2906_v11  ;;  %v2711_v23 = vrot.slane %v2710_v16, 2  ;;  %v5910_v22 = vadd.f32 %v2627_v15, %v2539_v17 }
 0x2f4   : > { %v3015_v20 = vsel %vm3014_vm2, %v4368_v40, %v3011_v37  ;;  %v2452_v31 = vadd.f32 %v2451_v52, %v2363_v27 }
 0x2f5   : > { %v3020_v54 = vsel %vm3017_vm3, %v3019_v28, %v3015_v20  ;;  %4373 = vrcp.f32 %v5894_v61  ;;  %v5898_v56 = vpop.eup %4369  ;;  %v2712_v40 = vmax.f32 %v2710_v16, %v2711_v23  ;;  %v3032_v23 = vand.u32 2147483648, %v5894_v61 }
 0x2f6   : > { %v3231_v6 = vmul.f32 %v5863_v13, %v3020_v54  ;;  %v3232_v30 = vmul.f32 %v5865_v60, %v3020_v54  ;;  %v5906_v21 = vpop.eup %4371  ;;  %vm3026_vm5 = vweird.f32 %v5894_v61 }
 0x2f7   : > { %v2909_v25 = vadd.f32 %v5906_v21, %v5898_v56  ;;  %v2713_v51 = vrot.slane %v2712_v40, 1  ;;  %v3033_v17 = vor.u32 1.1754944e-38, %v3032_v23 }
 0x2f8   : > { %v3295_v14 = vmul.f32 %v3263_v39, %v3231_v6  ;;  %v3296_v32 = vmul.f32 %v3264_v46, %v3232_v30  ;;  %v2540_v48 = vpop.f32.mrf.mxu2  ;;  %v2629_v7 = vpop.f32.mrf.mxu3 }
 0x2f9   : > { %v2541_v11 = vadd.f32 %v2540_v48, %v2452_v31  ;;  %v2365_v58 = vpop.f32.mrf.mxu0  ;;  %v2454_v53 = vpop.f32.mrf.mxu1  ;;  %v2910_v13 = vrot.slane %v2909_v25, 4  ;;  %v2714_v60 = vmax.f32 %v2712_v40, %v2713_v51  ;;  %v3266_v48 = vadd.f32 %v5336_v0, %v5266_v44 }
 0x2fa   : > { %v3327_v63 = vadd.f32 %v3296_v32, %v3295_v14  ;;  %v2366_v39 = vadd.f32 %v5829_v8, %v2365_v58  ;;  %v3265_v32 = vadd.f32 %v5327_v49, %v5258_v35 }
 0x2fb   : > { %v4374_v55 = vpop.eup %4373  ;;  %v5912_v16 = vadd.f32 %v2629_v7, %v2541_v11  ;;  %v2911_v47 = vadd.f32 %v2910_v13, %v2909_v25  ;;  %v2805_v1 = vsub.f32 %v5875_v3, %v2714_v60  ;;  %v2806_v52 = vsub.f32 %v5884_v26, %v2714_v60 }
 0x2fc   : > { %v3022_v19 = vmul.f32 %v4374_v55, %v5894_v61  ;;  %2404 = vmatmul.bf16.gmra.mxu0 %v5786_v2  ;;  %2493 = vmatmul.bf16.gmra.mxu1 %v5788_v4  ;;  %vm3027_vm4 = vweird.f32 %v4374_v55  ;;  %v3030_v4 = vand.u32 2147483647, %v5894_v61  ;;  %v3328_v6 = vrot.slane %v3327_v63, 4 }
 0x2fd   : > { %v2715_v37 = vmax.f32 %v5910_v22, %v5912_v16  ;;  %2582 = vmatmul.bf16.gmra.mxu2 %v5798_v57  ;;  %v2912_v28 = vrot.slane %v2911_v47, 2  ;;  %2671 = vmatmul.bf16.gmra.mxu3 %v5800_v41  ;;  %v2843_v27 = vmul.f32 1.442695, %v2805_v1  ;;  %v2845_v20 = vmul.f32 1.442695, %v2806_v52  ;;  %vm3028_vm6 = vmor %vm3026_vm5, %vm3027_vm4 }
 0x2fe   : > { %v3023_v15 = vsub.f32 1.0, %v3022_v19  ;;  %vm3031_vm7 = vcmp.eq.f32.partialorder %v3030_v4, 8.507059e+37  ;;  %v2455_v11 = vadd.f32 %v2454_v53, %v2366_v39  ;;  %v3329_v58 = vadd.f32 %v3328_v6, %v3327_v63 }
 0x2ff   : > { %v2716_v2 = vrot.slane %v2715_v37, 4  ;;  %v2913_v3 = vadd.f32 %v2912_v28, %v2911_v47  ;;  %4375 = vpow2.f32 %v2843_v27 }
 0x300   : > { %v3024_v54 = vmul.f32 %v4374_v55, %v3023_v15  ;;  %v2543_v26 = vpop.f32.mrf.mxu2  ;;  %v2632_v10 = vpop.f32.mrf.mxu3  ;;  %4377 = vpow2.f32 %v2845_v20 }
 0x301   : > { %v2717_v57 = vmax.f32 %v2715_v37, %v2716_v2  ;;  %v2367_v46 = vpop.f32.mrf.mxu0  ;;  %v2456_v41 = vpop.f32.mrf.mxu1  ;;  %v2914_v40 = vrot.slane %v2913_v3, 1  ;;  %v2544_v49 = vadd.f32 %v2543_v26, %v2455_v11 }
 0x302   : > { %v3025_v30 = vadd.f32 %v4374_v55, %v3024_v54  ;;  %v2368_v14 = vadd.f32 %v5829_v8, %v2367_v46 }
 0x303   : > { %v2718_v31 = vrot.slane %v2717_v57, 2  ;;  %v5931_v25 = vadd.f32 %v2914_v40, %v2913_v3  ;;  %v5944_v2 = vadd.f32 %v2632_v10, %v2544_v49 }
 0x304   : > { %v3029_v61 = vsel %vm3028_vm6, %v4374_v55, %v3025_v30  ;;  %v2457_v55 = vadd.f32 %v2456_v41, %v2368_v14  ;;  %vm3459_vm6 = vcmask 1043459  }
 0x305   : > { %v3034_v7 = vsel %vm3031_vm7, %v3033_v17, %v3029_v61  ;;  %v2719_v51 = vmax.f32 %v2717_v57, %v2718_v31  ;;  %4379 = vrcp.f32 %v5931_v25  ;;  %v5938_v19 = vpop.eup %4375  ;;  %v3046_v31 = vand.u32 2147483648, %v5931_v25 }
 0x306   : > { %v3233_v13 = vmul.f32 %v5878_v12, %v3034_v7  ;;  %v3234_v60 = vmul.f32 %v5880_v62, %v3034_v7  ;;  %v5940_v47 = vpop.eup %4377  ;;  %v3330_v62 = vrot.slane %v3329_v58, 2  ;;  %vm3040_vm9 = vweird.f32 %v5931_v25 }
 0x307   : > { %v2720_v37 = vrot.slane %v2719_v51, 1  ;;  %v2916_v53 = vadd.f32 %v5940_v47, %v5938_v19 }
 0x308   : > { %v3297_v1 = vmul.f32 %v3265_v32, %v3233_v13  ;;  %v3298_v52 = vmul.f32 %v3266_v48, %v3234_v60  ;;  %v2545_v0 = vpop.f32.mrf.mxu2  ;;  %v2634_v15 = vpop.f32.mrf.mxu3  ;;  %v3331_v10 = vadd.f32 %v3330_v62, %v3329_v58 }
 0x309   : > { %v2546_v63 = vadd.f32 %v2545_v0, %v2457_v55  ;;  %v2370_v12 = vpop.f32.mrf.mxu0  ;;  %v2459_v28 = vpop.f32.mrf.mxu1  ;;  %v2721_v27 = vmax.f32 %v2719_v51, %v2720_v37  ;;  %v2917_v20 = vrot.slane %v2916_v53, 4 }
 0x30a   : > { %v3334_v23 = vadd.f32 %v3298_v52, %v3297_v1  ;;  %v3332_v11 = vrot.slane %v3331_v10, 1  ;;  %v2371_v13 = vadd.f32 %v5829_v8, %v2370_v12  ;;  %v3047_v52 = vor.u32 1.1754944e-38, %v3046_v31 }
 0x30b   : > { %v5946_v54 = vadd.f32 %v2634_v15, %v2546_v63  ;;  %v4380_v4 = vpop.eup %4379  ;;  %v2807_v26 = vsub.f32 %v5910_v22, %v2721_v27  ;;  %v2808_v57 = vsub.f32 %v5912_v16, %v2721_v27  ;;  %v2918_v46 = vadd.f32 %v2917_v20, %v2916_v53 }
 0x30c   : > { %v3335_v3 = vrot.slane %v3334_v23, 4  ;;  %2409 = vmatmul.bf16.gmra.mxu0 %v5806_v59  ;;  %2498 = vmatmul.bf16.gmra.mxu1 %v5808_v45  ;;  %v3036_v39 = vmul.f32 %v4380_v4, %v5931_v25  ;;  %v3044_v16 = vand.u32 2147483647, %v5931_v25  ;;  %vm3041_vm8 = vweird.f32 %v4380_v4 }
 0x30d   : > { %v2722_v41 = vmax.f32 %v5944_v2, %v5946_v54  ;;  %2587 = vmatmul.bf16.gmra.mxu2 %v5818_v33  ;;  %v2847_v30 = vmul.f32 1.442695, %v2807_v26  ;;  %v2849_v40 = vmul.f32 1.442695, %v2808_v57  ;;  %2676 = vmatmul.bf16.gmra.mxu3 %v5820_v9  ;;  %v2919_v59 = vrot.slane %v2918_v46, 2  ;;  %vm3042_vm11 = vmor %vm3040_vm9, %vm3041_vm8 }
 0x30e   : > { %v3336_v6 = vadd.f32 %v3335_v3, %v3334_v23  ;;  %v3037_v22 = vsub.f32 1.0, %v3036_v39  ;;  %v3267_v9 = vadd.f32 %v5401_v29, %v5258_v35  ;;  %vm3045_vm12 = vcmp.eq.f32.partialorder %v3044_v16, 8.507059e+37 }
 0x30f   : > { %v2723_v17 = vrot.slane %v2722_v41, 4  ;;  %4381 = vpow2.f32 %v2847_v30  ;;  %v2920_v33 = vadd.f32 %v2919_v59, %v2918_v46  ;;  %v3333_v63 = vadd.f32 %v3332_v11, %v3331_v10 }
 0x310   : > { %v3337_v45 = vrot.slane %v3336_v6, 2  ;;  %v2548_v14 = vpop.f32.mrf.mxu2  ;;  %v2637_v32 = vpop.f32.mrf.mxu3  ;;  %v3038_v61 = vmul.f32 %v4380_v4, %v3037_v22  ;;  %4383 = vpow2.f32 %v2849_v40  ;;  %v2460_v25 = vadd.f32 %v2459_v28, %v2371_v13 }
 0x311   : > { %v2724_v48 = vmax.f32 %v2722_v41, %v2723_v17  ;;  %v2372_v7 = vpop.f32.mrf.mxu0  ;;  %v2461_v51 = vpop.f32.mrf.mxu1  ;;  %v2921_v49 = vrot.slane %v2920_v33, 1  ;;  %v3268_v27 = vadd.f32 %v5405_v36, %v5266_v44 }
 0x312   : > { %v3338_v58 = vadd.f32 %v3337_v45, %v3336_v6  ;;  %v3039_v60 = vadd.f32 %v4380_v4, %v3038_v61  ;;  %v2373_v37 = vadd.f32 %v5829_v8, %v2372_v7  ;;  %v2549_v26 = vadd.f32 %v2548_v14, %v2460_v25 }
 0x313   : > { %v2725_v55 = vrot.slane %v2724_v48, 2  ;;  %v5965_v15 = vadd.f32 %v2921_v49, %v2920_v33 }
 0x314   : > { %v3339_v1 = vrot.slane %v3338_v58, 1  ;;  %v3043_v0 = vsel %vm3042_vm11, %v4380_v4, %v3039_v60  ;;  %v2462_v57 = vadd.f32 %v2461_v51, %v2373_v37  ;;  %v5981_v16 = vadd.f32 %v2637_v32, %v2549_v26 }
 0x315   : > { %v2726_v29 = vmax.f32 %v2724_v48, %v2725_v55  ;;  %v5967_v53 = vpop.eup %4381  ;;  %v3048_v62 = vsel %vm3045_vm12, %v3047_v52, %v3043_v0  ;;  %4385 = vrcp.f32 %v5965_v15  ;;  %v3060_v13 = vand.u32 2147483648, %v5965_v15 }
 0x316   : > { %v3340_v12 = vadd.f32 %v3339_v1, %v3338_v58  ;;  %v5969_v23 = vpop.eup %4383  ;;  %v3235_v20 = vmul.f32 %v5898_v56, %v3048_v62  ;;  %v3236_v3 = vmul.f32 %v5906_v21, %v3048_v62  ;;  %vm3054_vm14 = vweird.f32 %v5965_v15 }
 0x317   : > { %v2923_v10 = vadd.f32 %v5969_v23, %v5967_v53  ;;  %v2727_v6 = vrot.slane %v2726_v29, 1  ;;  %v3061_v25 = vor.u32 1.1754944e-38, %v3060_v13  ;;  %vm3461_vm12 = vcmask 1044484  }
 0x318   : > { %v5977_v4 = vsel %vm3455_vm10, %v3340_v12, %v3333_v63  ;;  %v2550_v39 = vpop.f32.mrf.mxu2  ;;  %v2639_v46 = vpop.f32.mrf.mxu3  ;;  %v3299_v41 = vmul.f32 %v3267_v9, %v3235_v20  ;;  %v3300_v28 = vmul.f32 %v3268_v27, %v3236_v3  ;;  %v3058_v9 = vand.u32 2147483647, %v5965_v15 }
 0x319   : > { %v2375_v36 = vpop.f32.mrf.mxu0  ;;  %v2464_v30 = vpop.f32.mrf.mxu1  ;;  %v2551_v56 = vadd.f32 %v2550_v39, %v2462_v57  ;;  %v2924_v21 = vrot.slane %v2923_v10, 4  ;;  %v2728_v22 = vmax.f32 %v2726_v29, %v2727_v6 }
 0x31a   : > { %v3341_v40 = vadd.f32 %v3300_v28, %v3299_v41  ;;  %vm3059_vm1 = vcmp.eq.f32.partialorder %v3058_v9, 8.507059e+37  ;;  %v3269_v28 = vadd.f32 %v5425_v18, %v5258_v35 }
 0x31b   : > { %v5983_v59 = vadd.f32 %v2639_v46, %v2551_v56  ;;  %v4386_v17 = vpop.eup %4385  ;;  %v2925_v31 = vadd.f32 %v2924_v21, %v2923_v10  ;;  %v2809_v14 = vsub.f32 %v5944_v2, %v2728_v22  ;;  %v2810_v61 = vsub.f32 %v5946_v54, %v2728_v22 }
 0x31c   : > { %2414 = vmatmul.bf16.gmra.mxu0 %v5831_v24  ;;  %2503 = vmatmul.bf16.gmra.mxu1 %v5833_v5  ;;  %v3342_v45 = vrot.slane %v3341_v40, 4  ;;  %v3050_v33 = vmul.f32 %v4386_v17, %v5965_v15  ;;  %v2376_v2 = vadd.f32 %v5829_v8, %v2375_v36  ;;  %vm3055_vm13 = vweird.f32 %v4386_v17 }
 0x31d   : > { %2592 = vmatmul.bf16.gmra.mxu2 %v5844_v38  ;;  %v2729_v32 = vmax.f32 %v5981_v16, %v5983_v59  ;;  %2681 = vmatmul.bf16.gmra.mxu3 %v5846_v50  ;;  %v2926_v24 = vrot.slane %v2925_v31, 2  ;;  %v2851_v7 = vmul.f32 1.442695, %v2809_v14  ;;  %v2853_v5 = vmul.f32 1.442695, %v2810_v61  ;;  %vm3056_vm0 = vmor %vm3054_vm14, %vm3055_vm13 }
 0x31e   : > { %v3343_v48 = vadd.f32 %v3342_v45, %v3341_v40  ;;  %v3051_v51 = vsub.f32 1.0, %v3050_v33  ;;  %v2465_v12 = vadd.f32 %v2464_v30, %v2376_v2  ;;  %v3270_v10 = vadd.f32 %v5429_v42, %v5266_v44 }
 0x31f   : > { %v2730_v11 = vrot.slane %v2729_v32, 4  ;;  %v2927_v60 = vadd.f32 %v2926_v24, %v2925_v31  ;;  %4387 = vpow2.f32 %v2851_v7 }
 0x320   : > { %v2553_v54 = vpop.f32.mrf.mxu2  ;;  %v2642_v58 = vpop.f32.mrf.mxu3  ;;  %v3344_v38 = vrot.slane %v3343_v48, 2  ;;  %v3052_v50 = vmul.f32 %v4386_v17, %v3051_v51  ;;  %4389 = vpow2.f32 %v2853_v5 }
 0x321   : > { %v2377_v49 = vpop.f32.mrf.mxu0  ;;  %v2466_v55 = vpop.f32.mrf.mxu1  ;;  %v2731_v1 = vmax.f32 %v2729_v32, %v2730_v11  ;;  %v2928_v37 = vrot.slane %v2927_v60, 1  ;;  %v2554_v26 = vadd.f32 %v2553_v54, %v2465_v12 }
 0x322   : > { %v3345_v52 = vadd.f32 %v3344_v38, %v3343_v48  ;;  %v2378_v0 = vadd.f32 %v5829_v8, %v2377_v49  ;;  %v3053_v29 = vadd.f32 %v4386_v17, %v3052_v50 }
 0x323   : > { %v2732_v63 = vrot.slane %v2731_v1, 2  ;;  %v5999_v27 = vadd.f32 %v2928_v37, %v2927_v60  ;;  %v6018_v42 = vadd.f32 %v2642_v58, %v2554_v26 }
 0x324   : > { %v3346_v62 = vrot.slane %v3345_v52, 1  ;;  %v3057_v20 = vsel %vm3056_vm0, %v4386_v17, %v3053_v29  ;;  %v2467_v41 = vadd.f32 %v2466_v55, %v2378_v0 }
 0x325   : > { %v2733_v3 = vmax.f32 %v2731_v1, %v2732_v63  ;;  %v6001_v57 = vpop.eup %4387  ;;  %v3062_v46 = vsel %vm3059_vm1, %v3061_v25, %v3057_v20  ;;  %4391 = vrcp.f32 %v5999_v27  ;;  %v3072_v11 = vand.u32 2147483647, %v5999_v27 }
 0x326   : > { %v3347_v39 = vadd.f32 %v3346_v62, %v3345_v52  ;;  %v6004_v15 = vpop.eup %4389  ;;  %v3237_v6 = vmul.f32 %v5938_v19, %v3062_v46  ;;  %v3238_v36 = vmul.f32 %v5940_v47, %v3062_v46  ;;  %vm3068_vm3 = vweird.f32 %v5999_v27 }
 0x327   : > { %v2930_v21 = vadd.f32 %v6004_v15, %v6001_v57  ;;  %v2734_v22 = vrot.slane %v2733_v3, 1  ;;  %vm3073_vm5 = vcmp.eq.f32.partialorder %v3072_v11, 8.507059e+37 }
 0x328   : > { %v2555_v30 = vpop.f32.mrf.mxu2  ;;  %v2644_v56 = vpop.f32.mrf.mxu3  ;;  %v6014_v40 = vsel %vm3457_vm15, %v3347_v39, %v5977_v4  ;;  %v3301_v31 = vmul.f32 %v3269_v28, %v3237_v6  ;;  %v3302_v14 = vmul.f32 %v3270_v10, %v3238_v36 }
 0x329   : > { %v2556_v17 = vadd.f32 %v2555_v30, %v2467_v41  ;;  %v2380_v45 = vpop.f32.mrf.mxu0  ;;  %v2469_v18 = vpop.f32.mrf.mxu1  ;;  %v2931_v19 = vrot.slane %v2930_v21, 4  ;;  %v2735_v61 = vmax.f32 %v2733_v3, %v2734_v22 }
 0x32a   : > { %v2381_v33 = vadd.f32 %v5829_v8, %v2380_v45  ;;  %v3348_v32 = vadd.f32 %v3302_v14, %v3301_v31  ;;  %v3272_v45 = vadd.f32 %v5451_v43, %v5266_v44 }
 0x32b   : > { %v6020_v47 = vadd.f32 %v2644_v56, %v2556_v17  ;;  %v4392_v4 = vpop.eup %4391  ;;  %v2932_v48 = vadd.f32 %v2931_v19, %v2930_v21  ;;  %v2811_v24 = vsub.f32 %v5981_v16, %v2735_v61  ;;  %v2812_v7 = vsub.f32 %v5983_v59, %v2735_v61 }
 0x32c   : > { %v3349_v51 = vrot.slane %v3348_v32, 4  ;;  %v3064_v9 = vmul.f32 %v4392_v4, %v5999_v27  ;;  %v2470_v2 = vadd.f32 %v2469_v18, %v2381_v33  ;;  %vm3069_vm2 = vweird.f32 %v4392_v4 }
 0x32d   : > { %v2736_v5 = vmax.f32 %v6018_v42, %v6020_v47  ;;  %v2933_v54 = vrot.slane %v2932_v48, 2  ;;  %v2855_v58 = vmul.f32 1.442695, %v2811_v24  ;;  %v2857_v38 = vmul.f32 1.442695, %v2812_v7  ;;  %vm3070_vm4 = vmor %vm3068_vm3, %vm3069_vm2 }
 0x32e   : > { %v3350_v60 = vadd.f32 %v3349_v51, %v3348_v32  ;;  %v3065_v49 = vsub.f32 1.0, %v3064_v9  ;;  %v3074_v16 = vand.u32 2147483648, %v5999_v27  ;;  %v3271_v56 = vadd.f32 %v5447_v34, %v5258_v35 }
 0x32f   : > { %v2737_v13 = vrot.slane %v2736_v5, 4  ;;  %v2934_v50 = vadd.f32 %v2933_v54, %v2932_v48  ;;  %4393 = vpow2.f32 %v2855_v58  ;;  %vm3463_vm2 = vcmask 1045509  }
 0x330   : > { %v2558_v55 = vpop.f32.mrf.mxu2  ;;  %v2647_v59 = vpop.f32.mrf.mxu3  ;;  %v3351_v29 = vrot.slane %v3350_v60, 2  ;;  %v3066_v63 = vmul.f32 %v4392_v4, %v3065_v49  ;;  %4395 = vpow2.f32 %v2857_v38  ;;  %v3075_v46 = vor.u32 1.1754944e-38, %v3074_v16 }
 0x331   : > { %v2738_v1 = vmax.f32 %v2736_v5, %v2737_v13  ;;  %v2559_v52 = vadd.f32 %v2558_v55, %v2470_v2  ;;  %v2382_v37 = vpop.f32.mrf.mxu0  ;;  %v2471_v0 = vpop.f32.mrf.mxu1  ;;  %v2935_v62 = vrot.slane %v2934_v50, 1 }
 0x332   : > { %v2383_v12 = vadd.f32 %v5829_v8, %v2382_v37  ;;  %v3352_v3 = vadd.f32 %v3351_v29, %v3350_v60  ;;  %v3067_v26 = vadd.f32 %v4392_v4, %v3066_v63 }
 0x333   : > { %v2739_v25 = vrot.slane %v2738_v1, 2  ;;  %v6031_v20 = vadd.f32 %v2647_v59, %v2559_v52  ;;  %v6035_v41 = vadd.f32 %v2935_v62, %v2934_v50 }
 0x334   : > { %v2472_v39 = vadd.f32 %v2471_v0, %v2383_v12  ;;  %v3353_v10 = vrot.slane %v3352_v3, 1  ;;  %v3071_v6 = vsel %vm3070_vm4, %v4392_v4, %v3067_v26  ;;  %v6067_v12 = vld [vmem:[%s6476_s19] ss:$0 sm:$0xff] }
 0x335   : > { %v2740_v28 = vmax.f32 %v2738_v1, %v2739_v25  ;;  %v6037_v36 = vpop.eup %4393  ;;  %v3076_v30 = vsel %vm3073_vm5, %v3075_v46, %v3071_v6  ;;  %4397 = vrcp.f32 %v6035_v41  ;;  %v3086_v58 = vand.u32 2147483647, %v6035_v41 }
 0x336   : > { %v6042_v27 = vpop.eup %4395  ;;  %v3354_v21 = vadd.f32 %v3353_v10, %v3352_v3  ;;  %v3239_v22 = vmul.f32 %v5967_v53, %v3076_v30  ;;  %v3240_v17 = vmul.f32 %v5969_v23, %v3076_v30  ;;  %vm3082_vm8 = vweird.f32 %v6035_v41 }
 0x337   : > { %v2937_v14 = vadd.f32 %v6042_v27, %v6037_v36  ;;  %v2741_v19 = vrot.slane %v2740_v28, 1  ;;  %vm3087_vm11 = vcmp.eq.f32.partialorder %v3086_v58, 8.507059e+37 }
 0x338   : > { %v2560_v18 = vpop.f32.mrf.mxu2  ;;  %v2649_v31 = vpop.f32.mrf.mxu3  ;;  %v6052_v32 = vsel %vm3459_vm6, %v3354_v21, %v6014_v40  ;;  %v3303_v4 = vmul.f32 %v3271_v56, %v3239_v22  ;;  %v3304_v53 = vmul.f32 %v3272_v45, %v3240_v17  ;;  %v6477_v17 = vld [vmem:[#allocation39_spill] sm:$0xff] }
 0x339   : > { %v2561_v61 = vadd.f32 %v2560_v18, %v2472_v39  ;;  %v2385_v34 = vpop.f32.mrf.mxu0  ;;  %v2474_v33 = vpop.f32.mrf.mxu1  ;;  %v2938_v48 = vrot.slane %v2937_v14, 4  ;;  %v2742_v23 = vmax.f32 %v2740_v28, %v2741_v19  ;;  %v3273_v45 = vadd.f32 %v6477_v17, %v5258_v35  ;;  %v6478_v18 = vld [vmem:[#allocation40_spill] sm:$0xff] }
 0x33a   : > { %v2386_v43 = vadd.f32 %v5829_v8, %v2385_v34  ;;  %v3355_v7 = vadd.f32 %v3304_v53, %v3303_v4 }
 0x33b   : > { %v6054_v24 = vadd.f32 %v2649_v31, %v2561_v61  ;;  %v4398_v5 = vpop.eup %4397  ;;  %v2939_v51 = vadd.f32 %v2938_v48, %v2937_v14  ;;  %v2813_v9 = vsub.f32 %v6018_v42, %v2742_v23  ;;  %v2814_v11 = vsub.f32 %v6020_v47, %v2742_v23 }
 0x33c   : > { %v3356_v40 = vrot.slane %v3355_v7, 4  ;;  %v3078_v54 = vmul.f32 %v4398_v5, %v6035_v41  ;;  %v2475_v38 = vadd.f32 %v2474_v33, %v2386_v43  ;;  %vm3083_vm7 = vweird.f32 %v4398_v5 }
 0x33d   : > { %v2743_v2 = vmax.f32 %v6031_v20, %v6054_v24  ;;  %v2940_v13 = vrot.slane %v2939_v51, 2  ;;  %v2859_v60 = vmul.f32 1.442695, %v2813_v9  ;;  %v2861_v49 = vmul.f32 1.442695, %v2814_v11  ;;  %vm3084_vm9 = vmor %vm3082_vm8, %vm3083_vm7 }
 0x33e   : > { %v3357_v16 = vadd.f32 %v3356_v40, %v3355_v7  ;;  %v3079_v55 = vsub.f32 1.0, %v3078_v54  ;;  %v3088_v42 = vand.u32 2147483648, %v6035_v41  ;;  %v3274_v31 = vadd.f32 %v6478_v18, %v5266_v44 }
 0x33f   : > { %v2744_v8 = vrot.slane %v2743_v2, 4  ;;  %v2941_v50 = vadd.f32 %v2940_v13, %v2939_v51  ;;  %4399 = vpow2.f32 %v2859_v60  ;;  %vm3465_vm8 = vcmask 1046534  }
 0x340   : > { %v2563_v59 = vpop.f32.mrf.mxu2  ;;  %v2652_v47 = vpop.f32.mrf.mxu3  ;;  %v3358_v29 = vrot.slane %v3357_v16, 2  ;;  %v3080_v63 = vmul.f32 %v4398_v5, %v3079_v55  ;;  %4401 = vpow2.f32 %v2861_v49  ;;  %v3089_v10 = vor.u32 1.1754944e-38, %v3088_v42 }
 0x341   : > { %v2745_v1 = vmax.f32 %v2743_v2, %v2744_v8  ;;  %v2564_v52 = vadd.f32 %v2563_v59, %v2475_v38  ;;  %v2387_v37 = vpop.f32.mrf.mxu0  ;;  %v2476_v0 = vpop.f32.mrf.mxu1  ;;  %v2942_v25 = vrot.slane %v2941_v50, 1 }
 0x342   : > { %v2388_v62 = vadd.f32 %v6067_v12, %v2387_v37  ;;  %v3359_v39 = vadd.f32 %v3358_v29, %v3357_v16  ;;  %v3081_v46 = vadd.f32 %v4398_v5, %v3080_v63 }
 0x343   : > { %v2746_v3 = vrot.slane %v2745_v1, 2  ;;  %v6070_v26 = vadd.f32 %v2652_v47, %v2564_v52  ;;  %v6074_v6 = vadd.f32 %v2942_v25, %v2941_v50 }
 0x344   : > { %v2477_v28 = vadd.f32 %v2476_v0, %v2388_v62  ;;  %v3360_v56 = vrot.slane %v3359_v39, 1  ;;  %v3085_v21 = vsel %vm3084_vm9, %v4398_v5, %v3081_v46 }
 0x345   : > { %v2747_v30 = vmax.f32 %v2745_v1, %v2746_v3  ;;  %v6076_v22 = vpop.eup %4399  ;;  %v3090_v14 = vsel %vm3087_vm11, %v3089_v10, %v3085_v21  ;;  %4403 = vrcp.f32 %v6074_v6  ;;  %v3100_v55 = vand.u32 2147483647, %v6074_v6 }
 0x346   : > { %v6083_v41 = vpop.eup %4401  ;;  %v3361_v19 = vadd.f32 %v3360_v56, %v3359_v39  ;;  %v3241_v61 = vmul.f32 %v6001_v57, %v3090_v14  ;;  %v3242_v34 = vmul.f32 %v6004_v15, %v3090_v14  ;;  %v3102_v52 = vand.u32 2147483648, %v6074_v6 }
 0x347   : > { %v2944_v53 = vadd.f32 %v6083_v41, %v6076_v22  ;;  %v2748_v48 = vrot.slane %v2747_v30, 1  ;;  %vm3096_vm14 = vweird.f32 %v6074_v6  ;;  %vm3101_vm1 = vcmp.eq.f32.partialorder %v3100_v55, 8.507059e+37 }
 0x348   : > { %v2565_v33 = vpop.f32.mrf.mxu2  ;;  %v2654_v4 = vpop.f32.mrf.mxu3  ;;  %v3305_v5 = vmul.f32 %v3273_v45, %v3241_v61  ;;  %v3306_v51 = vmul.f32 %v3274_v31, %v3242_v34  ;;  %v6094_v57 = vsel %vm3461_vm12, %v3361_v19, %v6052_v32  ;;  %v3103_v17 = vor.u32 1.1754944e-38, %v3102_v52  ;;  %v6479_v61 = vld [vmem:[#allocation34_spill] sm:$0xff] }
 0x349   : > { %v2566_v23 = vadd.f32 %v2565_v33, %v2477_v28  ;;  %v2390_v43 = vpop.f32.mrf.mxu0  ;;  %v2479_v7 = vpop.f32.mrf.mxu1  ;;  %v2945_v11 = vrot.slane %v2944_v53, 4  ;;  %v2749_v2 = vmax.f32 %v2747_v30, %v2748_v48  ;;  %v3275_v34 = vadd.f32 %v6479_v61, %v5258_v35  ;;  %v6480_v33 = vld [vmem:[#allocation33_spill] sm:$0xff] }
 0x34a   : > { %v2391_v9 = vadd.f32 %v6067_v12, %v2390_v43  ;;  %v3362_v15 = vadd.f32 %v3306_v51, %v3305_v5 }
 0x34b   : > { %v6090_v40 = vadd.f32 %v2654_v4, %v2566_v23  ;;  %v4404_v58 = vpop.eup %4403  ;;  %v2946_v38 = vadd.f32 %v2945_v11, %v2944_v53  ;;  %v2815_v13 = vsub.f32 %v6031_v20, %v2749_v2  ;;  %v2816_v60 = vsub.f32 %v6054_v24, %v2749_v2 }
 0x34c   : > { %v2480_v54 = vadd.f32 %v2479_v7, %v2391_v9  ;;  %v3363_v8 = vrot.slane %v3362_v15, 4  ;;  %v3092_v16 = vmul.f32 %v4404_v58, %v6074_v6  ;;  %vm3097_vm13 = vweird.f32 %v4404_v58 }
 0x34d   : > { %v2750_v49 = vmax.f32 %v6070_v26, %v6090_v40  ;;  %v2947_v42 = vrot.slane %v2946_v38, 2  ;;  %v2863_v59 = vmul.f32 1.442695, %v2815_v13  ;;  %v2865_v32 = vmul.f32 1.442695, %v2816_v60  ;;  %vm3098_vm0 = vmor %vm3096_vm14, %vm3097_vm13 }
 0x34e   : > { %v3364_v50 = vadd.f32 %v3363_v8, %v3362_v15  ;;  %v3093_v1 = vsub.f32 1.0, %v3092_v16  ;;  %v3276_v4 = vadd.f32 %v6480_v33, %v5266_v44  ;;  %v6481_v33 = vld [vmem:[#allocation36_spill] sm:$0xff] }
 0x34f   : > { %v2751_v47 = vrot.slane %v2750_v49, 4  ;;  %v2948_v24 = vadd.f32 %v2947_v42, %v2946_v38  ;;  %4405 = vpow2.f32 %v2863_v59 }
 0x350   : > { %v2568_v20 = vpop.f32.mrf.mxu2  ;;  %v2657_v37 = vpop.f32.mrf.mxu3  ;;  %v3365_v25 = vrot.slane %v3364_v50, 2  ;;  %v3094_v3 = vmul.f32 %v4404_v58, %v3093_v1  ;;  %4407 = vpow2.f32 %v2865_v32 }
 0x351   : > { %v2752_v0 = vmax.f32 %v2750_v49, %v2751_v47  ;;  %v2569_v29 = vadd.f32 %v2568_v20, %v2480_v54  ;;  %v2392_v63 = vpop.f32.mrf.mxu0  ;;  %v2481_v62 = vpop.f32.mrf.mxu1  ;;  %v2949_v46 = vrot.slane %v2948_v24, 1 }
 0x352   : > { %v2393_v39 = vadd.f32 %v6067_v12, %v2392_v63  ;;  %v3366_v30 = vadd.f32 %v3365_v25, %v3364_v50  ;;  %v3095_v56 = vadd.f32 %v4404_v58, %v3094_v3 }
 0x353   : > { %v2753_v28 = vrot.slane %v2752_v0, 2  ;;  %v6104_v10 = vadd.f32 %v2657_v37, %v2569_v29  ;;  %v6108_v45 = vadd.f32 %v2949_v46, %v2948_v24 }
 0x354   : > { %v2482_v21 = vadd.f32 %v2481_v62, %v2393_v39  ;;  %v3367_v31 = vrot.slane %v3366_v30, 1  ;;  %v3099_v14 = vsel %vm3098_vm0, %v4404_v58, %v3095_v56  ;;  %vm3467_vm0 = vcmask 1047559  }
 0x355   : > { %v2754_v18 = vmax.f32 %v2752_v0, %v2753_v28  ;;  %v6110_v19 = vpop.eup %4405  ;;  %v3104_v53 = vsel %vm3101_vm1, %v3103_v17, %v3099_v14  ;;  %4409 = vrcp.f32 %v6108_v45  ;;  %v3114_v0 = vand.u32 2147483647, %v6108_v45 }
 0x356   : > { %v6117_v6 = vpop.eup %4407  ;;  %v3368_v48 = vadd.f32 %v3367_v31, %v3366_v30  ;;  %v3243_v23 = vmul.f32 %v6037_v36, %v3104_v53  ;;  %v3244_v43 = vmul.f32 %v6042_v27, %v3104_v53  ;;  %v3116_v29 = vand.u32 2147483648, %v6108_v45 }
 0x357   : > { %v2951_v51 = vadd.f32 %v6117_v6, %v6110_v19  ;;  %v2755_v9 = vrot.slane %v2754_v18, 1  ;;  %vm3110_vm4 = vweird.f32 %v6108_v45  ;;  %vm3115_vm7 = vcmp.eq.f32.partialorder %v3114_v0, 8.507059e+37 }
 0x358   : > { %v2570_v7 = vpop.f32.mrf.mxu2  ;;  %v2659_v5 = vpop.f32.mrf.mxu3  ;;  %v3307_v54 = vmul.f32 %v3275_v34, %v3243_v23  ;;  %v3308_v58 = vmul.f32 %v3276_v4, %v3244_v43  ;;  %v6128_v36 = vsel %vm3463_vm2, %v3368_v48, %v6094_v57  ;;  %v3117_v14 = vor.u32 1.1754944e-38, %v3116_v29  ;;  %v6482_v43 = vld [vmem:[#allocation38_spill] sm:$0xff] }
 0x359   : > { %v2571_v11 = vadd.f32 %v2570_v7, %v2482_v21  ;;  %v2395_v2 = vpop.f32.mrf.mxu0  ;;  %v2484_v15 = vpop.f32.mrf.mxu1  ;;  %v2952_v13 = vrot.slane %v2951_v51, 4  ;;  %v2756_v60 = vmax.f32 %v2754_v18, %v2755_v9  ;;  %v3277_v4 = vadd.f32 %v6481_v33, %v5258_v35  ;;  %v6483_v33 = vld [vmem:[#allocation46_spill] sm:$0xff] }
 0x35a   : > { %v2396_v38 = vadd.f32 %v6067_v12, %v2395_v2  ;;  %v3369_v27 = vadd.f32 %v3308_v58, %v3307_v54  ;;  %v3278_v7 = vadd.f32 %v6482_v43, %v5266_v44 }
 0x35b   : > { %v6124_v49 = vadd.f32 %v2659_v5, %v2571_v11  ;;  %v4410_v16 = vpop.eup %4409  ;;  %v2953_v55 = vadd.f32 %v2952_v13, %v2951_v51  ;;  %v2817_v42 = vsub.f32 %v6070_v26, %v2756_v60  ;;  %v2818_v59 = vsub.f32 %v6090_v40, %v2756_v60 }
 0x35c   : > { %v2485_v8 = vadd.f32 %v2484_v15, %v2396_v38  ;;  %v3370_v47 = vrot.slane %v3369_v27, 4  ;;  %v3106_v50 = vmul.f32 %v4410_v16, %v6108_v45  ;;  %vm3111_vm3 = vweird.f32 %v4410_v16 }
 0x35d   : > { %v2757_v32 = vmax.f32 %v6104_v10, %v6124_v49  ;;  %v2954_v1 = vrot.slane %v2953_v55, 2  ;;  %v2867_v52 = vmul.f32 1.442695, %v2817_v42  ;;  %v2869_v20 = vmul.f32 1.442695, %v2818_v59  ;;  %vm3112_vm5 = vmor %vm3110_vm4, %vm3111_vm3 }
 0x35e   : > { %v3371_v57 = vadd.f32 %v3370_v47, %v3369_v27  ;;  %v3107_v24 = vsub.f32 1.0, %v3106_v50 }
 0x35f   : > { %v2758_v37 = vrot.slane %v2757_v32, 4  ;;  %v2955_v62 = vadd.f32 %v2954_v1, %v2953_v55  ;;  %4411 = vpow2.f32 %v2867_v52 }
 0x360   : > { %v2573_v63 = vpop.f32.mrf.mxu2  ;;  %v2662_v26 = vpop.f32.mrf.mxu3  ;;  %v3372_v46 = vrot.slane %v3371_v57, 2  ;;  %v3108_v28 = vmul.f32 %v4410_v16, %v3107_v24  ;;  %4413 = vpow2.f32 %v2869_v20 }
 0x361   : > { %v2759_v40 = vmax.f32 %v2757_v32, %v2758_v37  ;;  %v2574_v25 = vadd.f32 %v2573_v63, %v2485_v8  ;;  %v2397_v3 = vpop.f32.mrf.mxu0  ;;  %v2486_v39 = vpop.f32.mrf.mxu1  ;;  %v2956_v30 = vrot.slane %v2955_v62, 1 }
 0x362   : > { %v2398_v17 = vadd.f32 %v6067_v12, %v2397_v3  ;;  %v3373_v18 = vadd.f32 %v3372_v46, %v3371_v57  ;;  %v3109_v31 = vadd.f32 %v4410_v16, %v3108_v28 }
 0x363   : > { %v2760_v56 = vrot.slane %v2759_v40, 2  ;;  %v6137_v21 = vadd.f32 %v2662_v26, %v2574_v25  ;;  %v6141_v61 = vadd.f32 %v2956_v30, %v2955_v62 }
 0x364   : > { %v3374_v53 = vrot.slane %v3373_v18, 1  ;;  %v3113_v48 = vsel %vm3112_vm5, %v4410_v16, %v3109_v31  ;;  %v2487_v45 = vadd.f32 %v2486_v39, %v2398_v17 }
 0x365   : > { %v2761_v34 = vmax.f32 %v2759_v40, %v2760_v56  ;;  %v6145_v23 = vpop.eup %4411  ;;  %v3118_v5 = vsel %vm3115_vm7, %v3117_v14, %v3113_v48  ;;  %4415 = vrcp.f32 %v6141_v61  ;;  %v3128_v26 = vand.u32 2147483647, %v6141_v61 }
 0x366   : > { %v6150_v51 = vpop.eup %4413  ;;  %v3375_v9 = vadd.f32 %v3374_v53, %v3373_v18  ;;  %v3245_v11 = vmul.f32 %v6076_v22, %v3118_v5  ;;  %v3246_v2 = vmul.f32 %v6083_v41, %v3118_v5  ;;  %vm3124_vm11 = vweird.f32 %v6141_v61 }
 0x367   : > { %v2958_v58 = vadd.f32 %v6150_v51, %v6145_v23  ;;  %v2762_v38 = vrot.slane %v2761_v34, 1  ;;  %vm3129_vm14 = vcmp.eq.f32.partialorder %v3128_v26, 8.507059e+37 }
 0x368   : > { %v2575_v15 = vpop.f32.mrf.mxu2  ;;  %v2664_v54 = vpop.f32.mrf.mxu3  ;;  %v3309_v8 = vmul.f32 %v3277_v4, %v3245_v11  ;;  %v3310_v16 = vmul.f32 %v3278_v7, %v3246_v2  ;;  %v6160_v22 = vsel %vm3465_vm8, %v3375_v9, %v6128_v36  ;;  %v3279_v4 = vadd.f32 %v6483_v33, %v5258_v35  ;;  %v6484_v11 = vld [vmem:[#allocation45_spill] sm:$0xff] }
 0x369   : > { %v2576_v13 = vadd.f32 %v2575_v15, %v2487_v45  ;;  %v2400_v60 = vpop.f32.mrf.mxu0  ;;  %v2489_v27 = vpop.f32.mrf.mxu1  ;;  %v2959_v55 = vrot.slane %v2958_v58, 4  ;;  %v2763_v42 = vmax.f32 %v2761_v34, %v2762_v38  ;;  %v3280_v2 = vadd.f32 %v6484_v11, %v5266_v44 }
 0x36a   : > { %v3376_v41 = vadd.f32 %v3310_v16, %v3309_v8  ;;  %v2401_v62 = vadd.f32 %v6067_v12, %v2400_v60 }
 0x36b   : > { %v6156_v59 = vadd.f32 %v2664_v54, %v2576_v13  ;;  %v4416_v32 = vpop.eup %4415  ;;  %v2960_v47 = vadd.f32 %v2959_v55, %v2958_v58  ;;  %v2819_v50 = vsub.f32 %v6104_v10, %v2763_v42  ;;  %v2820_v1 = vsub.f32 %v6124_v49, %v2763_v42 }
 0x36c   : > { %v3377_v20 = vrot.slane %v3376_v41, 4  ;;  %v3120_v37 = vmul.f32 %v4416_v32, %v6141_v61  ;;  %v3130_v49 = vand.u32 2147483648, %v6141_v61  ;;  %vm3125_vm9 = vweird.f32 %v4416_v32 }
 0x36d   : > { %v2764_v52 = vmax.f32 %v6137_v21, %v6156_v59  ;;  %v2961_v57 = vrot.slane %v2960_v47, 2  ;;  %v2871_v24 = vmul.f32 1.442695, %v2819_v50  ;;  %v2873_v0 = vmul.f32 1.442695, %v2820_v1  ;;  %vm3126_vm13 = vmor %vm3124_vm11, %vm3125_vm9 }
 0x36e   : > { %v3378_v63 = vadd.f32 %v3377_v20, %v3376_v41  ;;  %v3121_v36 = vsub.f32 1.0, %v3120_v37  ;;  %v2490_v34 = vadd.f32 %v2489_v27, %v2401_v62  ;;  %v3131_v53 = vor.u32 1.1754944e-38, %v3130_v49 }
 0x36f   : > { %v2765_v29 = vrot.slane %v2764_v52, 4  ;;  %v2962_v25 = vadd.f32 %v2961_v57, %v2960_v47  ;;  %4417 = vpow2.f32 %v2871_v24 }
 0x370   : > { %v2578_v40 = vpop.f32.mrf.mxu2  ;;  %v2667_v10 = vpop.f32.mrf.mxu3  ;;  %v3379_v28 = vrot.slane %v3378_v63, 2  ;;  %v3122_v30 = vmul.f32 %v4416_v32, %v3121_v36  ;;  %4419 = vpow2.f32 %v2873_v0 }
 0x371   : > { %v2766_v3 = vmax.f32 %v2764_v52, %v2765_v29  ;;  %v2402_v39 = vpop.f32.mrf.mxu0  ;;  %v2491_v46 = vpop.f32.mrf.mxu1  ;;  %v2963_v56 = vrot.slane %v2962_v25, 1  ;;  %v2579_v45 = vadd.f32 %v2578_v40, %v2490_v34 }
 0x372   : > { %v2403_v18 = vadd.f32 %v6067_v12, %v2402_v39  ;;  %v3380_v31 = vadd.f32 %v3379_v28, %v3378_v63  ;;  %v3123_v14 = vadd.f32 %v4416_v32, %v3122_v30 }
 0x373   : > { %v2767_v17 = vrot.slane %v2766_v3, 2  ;;  %v6174_v48 = vadd.f32 %v2963_v56, %v2962_v25  ;;  %v6187_v50 = vadd.f32 %v2667_v10, %v2579_v45 }
 0x374   : > { %v3381_v7 = vrot.slane %v3380_v31, 1  ;;  %v3127_v5 = vsel %vm3126_vm13, %v4416_v32, %v3123_v14  ;;  %v2492_v61 = vadd.f32 %v2491_v46, %v2403_v18 }
 0x375   : > { %v2768_v43 = vmax.f32 %v2766_v3, %v2767_v17  ;;  %v6176_v9 = vpop.eup %4417  ;;  %v3132_v15 = vsel %vm3129_vm14, %v3131_v53, %v3127_v5  ;;  %4421 = vrcp.f32 %v6174_v48  ;;  %v3142_v10 = vand.u32 2147483647, %v6174_v48 }
 0x376   : > { %v6181_v54 = vpop.eup %4419  ;;  %v3382_v58 = vadd.f32 %v3381_v7, %v3380_v31  ;;  %v3247_v38 = vmul.f32 %v6110_v19, %v3132_v15  ;;  %v3248_v13 = vmul.f32 %v6117_v6, %v3132_v15  ;;  %v3144_v49 = vand.u32 2147483648, %v6174_v48 }
 0x377   : > { %v2965_v8 = vadd.f32 %v6181_v54, %v6176_v9  ;;  %v2769_v16 = vrot.slane %v2768_v43, 1  ;;  %vm3138_vm3 = vweird.f32 %v6174_v48  ;;  %vm3143_vm5 = vcmp.eq.f32.partialorder %v3142_v10, 8.507059e+37 }
 0x378   : > { %v2580_v60 = vpop.f32.mrf.mxu2  ;;  %v2669_v27 = vpop.f32.mrf.mxu3  ;;  %v3311_v32 = vmul.f32 %v3279_v4, %v3247_v38  ;;  %v3312_v47 = vmul.f32 %v3280_v2, %v3248_v13  ;;  %v3468_v6 = vsel %vm3467_vm0, %v3382_v58, %v6160_v22  ;;  %v3145_v34 = vor.u32 1.1754944e-38, %v3144_v49  ;;  %v6486_v58 = vld [vmem:[#allocation47_spill] sm:$0xff] }
 0x379   : > { %v2581_v55 = vadd.f32 %v2580_v60, %v2492_v61  ;;  %v2405_v42 = vpop.f32.mrf.mxu0  ;;  %v2494_v41 = vpop.f32.mrf.mxu1  ;;  %v2966_v1 = vrot.slane %v2965_v8, 4  ;;  %v2770_v52 = vmax.f32 %v2768_v43, %v2769_v16  ;;  %3478 = vst [vmem:[%s6194_s4] sm:$0xff] %v3468_v6  ;;  %v3282_v38 = vadd.f32 %v6486_v58, %v5266_v44 }
 0x37a   : > { %v3383_v20 = vadd.f32 %v3312_v47, %v3311_v32 }
 0x37b   : > { %v6189_v19 = vadd.f32 %v2669_v27, %v2581_v55  ;;  %v4422_v37 = vpop.eup %4421  ;;  %v2967_v57 = vadd.f32 %v2966_v1, %v2965_v8  ;;  %v2821_v24 = vsub.f32 %v6137_v21, %v2770_v52  ;;  %v2822_v0 = vsub.f32 %v6156_v59, %v2770_v52 }
 0x37c   : > { %v3134_v63 = vmul.f32 %v4422_v37, %v6174_v48  ;;  %v2406_v59 = vadd.f32 %v6067_v12, %v2405_v42  ;;  %v3384_v28 = vrot.slane %v3383_v20, 4  ;;  %vm3139_vm1 = vweird.f32 %v4422_v37  ;;  %v6485_v48 = vld [vmem:[#allocation48_spill] sm:$0xff] }
 0x37d   : > { %v2771_v29 = vmax.f32 %v6187_v50, %v6189_v19  ;;  %v2968_v36 = vrot.slane %v2967_v57, 2  ;;  %v2875_v26 = vmul.f32 1.442695, %v2821_v24  ;;  %v2877_v62 = vmul.f32 1.442695, %v2822_v0  ;;  %vm3140_vm4 = vmor %vm3138_vm3, %vm3139_vm1 }
 0x37e   : > { %v3135_v40 = vsub.f32 1.0, %v3134_v63  ;;  %v2495_v53 = vadd.f32 %v2494_v41, %v2406_v59  ;;  %v3385_v43 = vadd.f32 %v3384_v28, %v3383_v20  ;;  %v3281_v61 = vadd.f32 %v6485_v48, %v5258_v35 }
 0x37f   : > { %v2772_v22 = vrot.slane %v2771_v29, 4  ;;  %v2969_v3 = vadd.f32 %v2968_v36, %v2967_v57  ;;  %4423 = vpow2.f32 %v2875_v26 }
 0x380   : > { %v2583_v25 = vpop.f32.mrf.mxu2  ;;  %v2672_v39 = vpop.f32.mrf.mxu3  ;;  %v3136_v30 = vmul.f32 %v4422_v37, %v3135_v40  ;;  %4425 = vpow2.f32 %v2877_v62  ;;  %v3386_v32 = vrot.slane %v3385_v43, 2 }
 0x381   : > { %v2773_v21 = vmax.f32 %v2771_v29, %v2772_v22  ;;  %v2407_v46 = vpop.f32.mrf.mxu0  ;;  %v2496_v56 = vpop.f32.mrf.mxu1  ;;  %v2970_v17 = vrot.slane %v2969_v3, 1  ;;  %v2584_v11 = vadd.f32 %v2583_v25, %v2495_v53 }
 0x382   : > { %v2408_v31 = vadd.f32 %v6067_v12, %v2407_v46  ;;  %v3137_v14 = vadd.f32 %v4422_v37, %v3136_v30  ;;  %v3387_v36 = vadd.f32 %v3386_v32, %v3385_v43 }
 0x383   : > { %v2774_v18 = vrot.slane %v2773_v21, 2  ;;  %v6207_v33 = vadd.f32 %v2970_v17, %v2969_v3 }
 0x384   : > { %v3141_v7 = vsel %vm3140_vm4, %v4422_v37, %v3137_v14  ;;  %v2497_v2 = vadd.f32 %v2496_v56, %v2408_v31  ;;  %v6222_v37 = vadd.f32 %v2672_v39, %v2584_v11  ;;  %v6487_v31 = vld [vmem:[#allocation41_spill] sm:$0xff]  ;;  %v3388_v43 = vrot.slane %v3387_v36, 1 }
 0x385   : > { %v2775_v4 = vmax.f32 %v2773_v21, %v2774_v18  ;;  %v6209_v5 = vpop.eup %4423  ;;  %v3146_v45 = vsel %vm3143_vm5, %v3145_v34, %v3141_v7  ;;  %4427 = vrcp.f32 %v6207_v33  ;;  %v3156_v21 = vand.u32 2147483647, %v6207_v33 }
 0x386   : > { %v6212_v15 = vpop.eup %4425  ;;  %v3249_v13 = vmul.f32 %v6145_v23, %v3146_v45  ;;  %v3250_v60 = vmul.f32 %v6150_v51, %v3146_v45  ;;  %v3158_v59 = vand.u32 2147483648, %v6207_v33  ;;  %v3283_v14 = vadd.f32 %v6487_v31, %v5258_v35 }
 0x387   : > { %v2972_v8 = vadd.f32 %v6212_v15, %v6209_v5  ;;  %v2776_v16 = vrot.slane %v2775_v4, 1  ;;  %vm3152_vm9 = vweird.f32 %v6207_v33  ;;  %vm3157_vm13 = vcmp.eq.f32.partialorder %v3156_v21, 8.507059e+37 }
 0x388   : > { %v2585_v27 = vpop.f32.mrf.mxu2  ;;  %v2674_v42 = vpop.f32.mrf.mxu3  ;;  %v3313_v47 = vmul.f32 %v3281_v61, %v3249_v13  ;;  %v3314_v1 = vmul.f32 %v3282_v38, %v3250_v60  ;;  %v3159_v11 = vor.u32 1.1754944e-38, %v3158_v59  ;;  %v6488_v13 = vld [vmem:[#allocation49_spill] sm:$0xff] }
 0x389   : > { %v2586_v55 = vadd.f32 %v2585_v27, %v2497_v2  ;;  %v2410_v41 = vpop.f32.mrf.mxu0  ;;  %v2499_v52 = vpop.f32.mrf.mxu1  ;;  %v2973_v6 = vrot.slane %v2972_v8, 4  ;;  %v2777_v20 = vmax.f32 %v2775_v4, %v2776_v16  ;;  %v3284_v60 = vadd.f32 %v6488_v13, %v5266_v44  ;;  %v6489_v13 = vld [vmem:[#allocation42_spill] sm:$0xff] }
 0x38a   : > { %v3390_v23 = vadd.f32 %v3314_v1, %v3313_v47  ;;  %v2411_v46 = vadd.f32 %v6067_v12, %v2410_v41 }
 0x38b   : > { %v6224_v57 = vadd.f32 %v2674_v42, %v2586_v55  ;;  %v4428_v51 = vpop.eup %4427  ;;  %v2974_v24 = vadd.f32 %v2973_v6, %v2972_v8  ;;  %v2823_v0 = vsub.f32 %v6187_v50, %v2777_v20  ;;  %v2824_v29 = vsub.f32 %v6189_v19, %v2777_v20 }
 0x38c   : > { %v3391_v26 = vrot.slane %v3390_v23, 4  ;;  %v3148_v62 = vmul.f32 %v4428_v51, %v6207_v33  ;;  %vm3153_vm7 = vweird.f32 %v4428_v51  ;;  %v2500_v61 = vadd.f32 %v2499_v52, %v2411_v46 }
 0x38d   : > { %v2778_v63 = vmax.f32 %v6222_v37, %v6224_v57  ;;  %v2975_v22 = vrot.slane %v2974_v24, 2  ;;  %v2879_v40 = vmul.f32 1.442695, %v2823_v0  ;;  %v2881_v10 = vmul.f32 1.442695, %v2824_v29  ;;  %vm3154_vm11 = vmor %vm3152_vm9, %vm3153_vm7 }
 0x38e   : > { %v3392_v25 = vadd.f32 %v3391_v26, %v3390_v23  ;;  %v3149_v3 = vsub.f32 1.0, %v3148_v62  ;;  %v3389_v42 = vadd.f32 %v3388_v43, %v3387_v36 }
 0x38f   : > { %v2779_v49 = vrot.slane %v2778_v63, 4  ;;  %v2976_v39 = vadd.f32 %v2975_v22, %v2974_v24  ;;  %4429 = vpow2.f32 %v2879_v40 }
 0x390   : > { %v2588_v50 = vpop.f32.mrf.mxu2  ;;  %v2677_v28 = vpop.f32.mrf.mxu3  ;;  %v3393_v56 = vrot.slane %v3392_v25, 2  ;;  %v3150_v17 = vmul.f32 %v4428_v51, %v3149_v3  ;;  %4431 = vpow2.f32 %v2881_v10 }
 0x391   : > { %v2780_v19 = vmax.f32 %v2778_v63, %v2779_v49  ;;  %v2412_v30 = vpop.f32.mrf.mxu0  ;;  %v2501_v18 = vpop.f32.mrf.mxu1  ;;  %v2977_v34 = vrot.slane %v2976_v39, 1  ;;  %v2589_v16 = vadd.f32 %v2588_v50, %v2500_v61 }
 0x392   : > { %v2413_v53 = vadd.f32 %v6067_v12, %v2412_v30  ;;  %v3394_v7 = vadd.f32 %v3393_v56, %v3392_v25  ;;  %v3151_v45 = vadd.f32 %v4428_v51, %v3150_v17 }
 0x393   : > { %v2781_v4 = vrot.slane %v2780_v19, 2  ;;  %v6238_v2 = vadd.f32 %v2977_v34, %v2976_v39  ;;  %v6254_v26 = vadd.f32 %v2677_v28, %v2589_v16 }
 0x394   : > { %v3395_v58 = vrot.slane %v3394_v7, 1  ;;  %v3155_v38 = vsel %vm3154_vm11, %v4428_v51, %v3151_v45  ;;  %v2502_v55 = vadd.f32 %v2501_v18, %v2413_v53 }
 0x395   : > { %v2782_v48 = vmax.f32 %v2780_v19, %v2781_v4  ;;  %v6242_v27 = vpop.eup %4429  ;;  %v3160_v8 = vsel %vm3157_vm13, %v3159_v11, %v3155_v38  ;;  %4433 = vrcp.f32 %v6238_v2  ;;  %v3170_v30 = vand.u32 2147483647, %v6238_v2 }
 0x396   : > { %v6245_v33 = vpop.eup %4431  ;;  %v3396_v41 = vadd.f32 %v3395_v58, %v3394_v7  ;;  %v3251_v32 = vmul.f32 %v6176_v9, %v3160_v8  ;;  %v3252_v47 = vmul.f32 %v6181_v54, %v3160_v8  ;;  %v3172_v56 = vand.u32 2147483648, %v6238_v2 }
 0x397   : > { %v2979_v52 = vadd.f32 %v6245_v33, %v6242_v27  ;;  %v2783_v6 = vrot.slane %v2782_v48, 1  ;;  %vm3166_vm14 = vweird.f32 %v6238_v2  ;;  %vm3171_vm3 = vcmp.eq.f32.partialorder %v3170_v30, 8.507059e+37 }
 0x398   : > { %v2590_v1 = vpop.f32.mrf.mxu2  ;;  %v2679_v23 = vpop.f32.mrf.mxu3  ;;  %v6252_v24 = vsel %vm3455_vm10, %v3396_v41, %v3389_v42  ;;  %v3315_v0 = vmul.f32 %v3283_v14, %v3251_v32  ;;  %v3316_v29 = vmul.f32 %v3284_v60, %v3252_v47  ;;  %v3285_v60 = vadd.f32 %v6489_v13, %v5258_v35  ;;  %v6490_v47 = vld [vmem:[#allocation50_spill] sm:$0xff] }
 0x399   : > { %v2591_v20 = vadd.f32 %v2590_v1, %v2502_v55  ;;  %v2415_v51 = vpop.f32.mrf.mxu0  ;;  %v2980_v63 = vrot.slane %v2979_v52, 4  ;;  %v2784_v36 = vmax.f32 %v2782_v48, %v2783_v6  ;;  %v2504_v62 = vpop.f32.mrf.mxu1  ;;  %v3173_v48 = vor.u32 1.1754944e-38, %v3172_v56 }
 0x39a   : > { %v3397_v54 = vadd.f32 %v3316_v29, %v3315_v0  ;;  %v2416_v18 = vadd.f32 %v6067_v12, %v2415_v51  ;;  %v3286_v1 = vadd.f32 %v6490_v47, %v5266_v44 }
 0x39b   : > { %v6256_v9 = vadd.f32 %v2679_v23, %v2591_v20  ;;  %v4434_v22 = vpop.eup %4433  ;;  %v2981_v40 = vadd.f32 %v2980_v63, %v2979_v52  ;;  %v2825_v10 = vsub.f32 %v6222_v37, %v2784_v36  ;;  %v2826_v49 = vsub.f32 %v6224_v57, %v2784_v36 }
 0x39c   : > { %v3398_v3 = vrot.slane %v3397_v54, 4  ;;  %v3162_v21 = vmul.f32 %v4434_v22, %v6238_v2  ;;  %vm3167_vm10 = vweird.f32 %v4434_v22  ;;  %v2505_v38 = vadd.f32 %v2504_v62, %v2416_v18 }
 0x39d   : > { %v2785_v25 = vmax.f32 %v6254_v26, %v6256_v9  ;;  %v2982_v59 = vrot.slane %v2981_v40, 2  ;;  %v2883_v50 = vmul.f32 1.442695, %v2825_v10  ;;  %v2885_v39 = vmul.f32 1.442695, %v2826_v49  ;;  %vm3168_vm1 = vmor %vm3166_vm14, %vm3167_vm10 }
 0x39e   : > { %v3399_v46 = vadd.f32 %v3398_v3, %v3397_v54  ;;  %v3163_v28 = vsub.f32 1.0, %v3162_v21 }
 0x39f   : > { %v2786_v19 = vrot.slane %v2785_v25, 4  ;;  %v2983_v37 = vadd.f32 %v2982_v59, %v2981_v40  ;;  %4435 = vpow2.f32 %v2883_v50 }
 0x3a0   : > { %v2593_v17 = vpop.f32.mrf.mxu2  ;;  %v2682_v31 = vpop.f32.mrf.mxu3  ;;  %v3400_v34 = vrot.slane %v3399_v46, 2  ;;  %v3164_v4 = vmul.f32 %v4434_v22, %v3163_v28  ;;  %4437 = vpow2.f32 %v2885_v39 }
 0x3a1   : > { %v2787_v57 = vmax.f32 %v2785_v25, %v2786_v19  ;;  %v2417_v14 = vpop.f32.mrf.mxu0  ;;  %v2984_v53 = vrot.slane %v2983_v37, 1  ;;  %v2506_v55 = vpop.f32.mrf.mxu1  ;;  %v2594_v41 = vadd.f32 %v2593_v17, %v2505_v38 }
 0x3a2   : > { %v2418_v7 = vadd.f32 %v6067_v12, %v2417_v14  ;;  %v3401_v45 = vadd.f32 %v3400_v34, %v3399_v46  ;;  %v3165_v11 = vadd.f32 %v4434_v22, %v3164_v4 }
 0x3a3   : > { %v2788_v43 = vrot.slane %v2787_v57, 2  ;;  %v6268_v61 = vadd.f32 %v2984_v53, %v2983_v37  ;;  %v2683_v10 = vadd.f32 %v2682_v31, %v2594_v41 }
 0x3a4   : > { %v3402_v8 = vrot.slane %v3401_v45, 1  ;;  %v3169_v16 = vsel %vm3168_vm1, %v4434_v22, %v3165_v11  ;;  %v2507_v2 = vadd.f32 %v2506_v55, %v2418_v7 }
 0x3a5   : > { %v2789_v58 = vmax.f32 %v2787_v57, %v2788_v43  ;;  %v6272_v42 = vpop.eup %4435  ;;  %v3174_v12 = vsel %vm3171_vm3, %v3173_v48, %v3169_v16  ;;  %4439 = vrcp.f32 %v6268_v61  ;;  %v3184_v17 = vand.u32 2147483647, %v6268_v61 }
 0x3a6   : > { %v6275_v32 = vpop.eup %4437  ;;  %v3403_v52 = vadd.f32 %v3402_v8, %v3401_v45  ;;  %v3253_v6 = vmul.f32 %v6209_v5, %v3174_v12  ;;  %v3254_v20 = vmul.f32 %v6212_v15, %v3174_v12  ;;  %v3186_v37 = vand.u32 2147483648, %v6268_v61  ;;  %v6492_v8 = vld [vmem:[#allocation51_spill] sm:$0xff] }
 0x3a7   : > { %v2986_v51 = vadd.f32 %v6275_v32, %v6272_v42  ;;  %v2790_v0 = vrot.slane %v2789_v58, 1  ;;  %vm3180_vm4 = vweird.f32 %v6268_v61  ;;  %vm3185_vm7 = vcmp.eq.f32.partialorder %v3184_v17, 8.507059e+37 }
 0x3a8   : > { %v2595_v23 = vpop.f32.mrf.mxu2  ;;  %v3470_v63 = vsel %vm3457_vm15, %v3403_v52, %v6252_v24  ;;  %v3317_v36 = vmul.f32 %v3285_v60, %v3253_v6  ;;  %v3318_v54 = vmul.f32 %v3286_v1, %v3254_v20  ;;  %v2684_v62 = vpop.f32.mrf.mxu3  ;;  %v3187_v53 = vor.u32 1.1754944e-38, %v3186_v37  ;;  %v6494_v37 = vld [vmem:[#allocation52_spill] sm:$0xff] }
 0x3a9   : > { %v2596_v29 = vadd.f32 %v2595_v23, %v2507_v2  ;;  %v2987_v22 = vrot.slane %v2986_v51, 4  ;;  %v2791_v40 = vmax.f32 %v2789_v58, %v2790_v0  ;;  %v6491_v58 = vld [vmem:[#allocation35_spill] sm:$0xff]  ;;  %v3288_v16 = vadd.f32 %v6492_v8, %v5266_v44 }
 0x3aa   : > { %v3404_v25 = vadd.f32 %v3318_v54, %v3317_v36  ;;  %v3287_v38 = vadd.f32 %v6491_v58, %v5258_v35 }
 0x3ab   : > { %v2685_v49 = vadd.f32 %v2684_v62, %v2596_v29  ;;  %v4440_v5 = vpop.eup %4439  ;;  %v2988_v3 = vadd.f32 %v2987_v22, %v2986_v51  ;;  %v2827_v15 = vsub.f32 %v6254_v26, %v2791_v40  ;;  %v2828_v21 = vsub.f32 %v6256_v9, %v2791_v40 }
 0x3ac   : > { %v3405_v50 = vrot.slane %v3404_v25, 4  ;;  %v3176_v39 = vmul.f32 %v4440_v5, %v6268_v61  ;;  %vm3181_vm15 = vweird.f32 %v4440_v5 }
 0x3ad   : > { %v2792_v59 = vmax.f32 %v2683_v10, %v2685_v49  ;;  %v2989_v19 = vrot.slane %v2988_v3, 2  ;;  %v2887_v24 = vmul.f32 1.442695, %v2827_v15  ;;  %v2889_v46 = vmul.f32 1.442695, %v2828_v21  ;;  %vm3182_vm5 = vmor %vm3180_vm4, %vm3181_vm15 }
 0x3ae   : > { %v3406_v30 = vadd.f32 %v3405_v50, %v3404_v25  ;;  %v3177_v56 = vsub.f32 1.0, %v3176_v39 }
 0x3af   : > { %v2793_v28 = vrot.slane %v2792_v59, 4  ;;  %v2990_v57 = vadd.f32 %v2989_v19, %v2988_v3  ;;  %4441 = vpow2.f32 %v2887_v24 }
 0x3b0   : > { %v3407_v26 = vrot.slane %v3406_v30, 2  ;;  %v3178_v31 = vmul.f32 %v4440_v5, %v3177_v56  ;;  %4443 = vpow2.f32 %v2889_v46 }
 0x3b1   : > { %v2794_v18 = vmax.f32 %v2792_v59, %v2793_v28  ;;  %v2991_v9 = vrot.slane %v2990_v57, 1  ;;  %v6493_v28 = vld [vmem:[#allocation37_spill] sm:$0xff] }
 0x3b2   : > { %v3408_v34 = vadd.f32 %v3407_v26, %v3406_v30  ;;  %v3179_v4 = vadd.f32 %v4440_v5, %v3178_v31  ;;  %v3289_v30 = vadd.f32 %v6493_v28, %v5258_v35 }
 0x3b3   : > { %v2795_v14 = vrot.slane %v2794_v18, 2  ;;  %v2992_v43 = vadd.f32 %v2991_v9, %v2990_v57  ;;  %v3290_v57 = vadd.f32 %v6494_v37, %v5266_v44 }
 0x3b4   : > { %v3409_v45 = vrot.slane %v3408_v34, 1  ;;  %v3183_v11 = vsel %vm3182_vm5, %v4440_v5, %v3179_v4 }
 0x3b5   : > { %v2796_v7 = vmax.f32 %v2794_v18, %v2795_v14  ;;  %v6291_v48 = vpop.eup %4441  ;;  %v3188_v13 = vsel %vm3185_vm7, %v3187_v53, %v3183_v11  ;;  %4445 = vrcp.f32 %v2992_v43  ;;  %v3198_v5 = vand.u32 2147483647, %v2992_v43 }
 0x3b6   : > { %v6295_v60 = vpop.eup %4443  ;;  %v3410_v61 = vadd.f32 %v3409_v45, %v3408_v34  ;;  %v3255_v55 = vmul.f32 %v6242_v27, %v3188_v13  ;;  %v3256_v12 = vmul.f32 %v6245_v33, %v3188_v13  ;;  %v3200_v3 = vand.u32 2147483648, %v2992_v43 }
 0x3b7   : > { %v2993_v41 = vadd.f32 %v6295_v60, %v6291_v48  ;;  %v2797_v2 = vrot.slane %v2796_v7, 1  ;;  %vm3194_vm9 = vweird.f32 %v2992_v43  ;;  %vm3199_vm13 = vcmp.eq.f32.partialorder %v3198_v5, 8.507059e+37 }
 0x3b8   : > { %v3471_v47 = vsel %vm3459_vm6, %v3410_v61, %v3470_v63  ;;  %v3319_v1 = vmul.f32 %v3287_v38, %v3255_v55  ;;  %v3320_v52 = vmul.f32 %v3288_v16, %v3256_v12 }
 0x3b9   : > { %v2994_v6 = vrot.slane %v2993_v41, 4  ;;  %v2798_v20 = vmax.f32 %v2796_v7, %v2797_v2 }
 0x3ba   : > { %v3411_v23 = vadd.f32 %v3320_v52, %v3319_v1 }
 0x3bb   : > { %v4446_v51 = vpop.eup %4445  ;;  %v2995_v0 = vadd.f32 %v2994_v6, %v2993_v41  ;;  %v2829_v29 = vsub.f32 %v2683_v10, %v2798_v20  ;;  %v2830_v36 = vsub.f32 %v2685_v49, %v2798_v20  ;;  %v3201_v10 = vor.u32 1.1754944e-38, %v3200_v3  ;;  %v6495_v20 = vld [vmem:[#allocation43_spill] sm:$0xff] }
 0x3bc   : > { %v3412_v54 = vrot.slane %v3411_v23, 4  ;;  %v3190_v62 = vmul.f32 %v4446_v51, %v2992_v43  ;;  %vm3195_vm6 = vweird.f32 %v4446_v51 }
 0x3bd   : > { %v2996_v27 = vrot.slane %v2995_v0, 2  ;;  %v2891_v22 = vmul.f32 1.442695, %v2829_v29  ;;  %v2893_v33 = vmul.f32 1.442695, %v2830_v36  ;;  %vm3196_vm11 = vmor %vm3194_vm9, %vm3195_vm6 }
 0x3be   : > { %v3413_v40 = vadd.f32 %v3412_v54, %v3411_v23  ;;  %v3191_v25 = vsub.f32 1.0, %v3190_v62  ;;  %v3291_v23 = vadd.f32 %v6495_v20, %v5258_v35 }
 0x3bf   : > { %v2997_v15 = vadd.f32 %v2996_v27, %v2995_v0  ;;  %4447 = vpow2.f32 %v2891_v22  ;;  %v6496_v0 = vld [vmem:[#allocation53_spill] sm:$0xff] }
 0x3c0   : > { %v3414_v63 = vrot.slane %v3413_v40, 2  ;;  %v3192_v21 = vmul.f32 %v4446_v51, %v3191_v25  ;;  %4449 = vpow2.f32 %v2893_v33  ;;  %v3292_v29 = vadd.f32 %v6496_v0, %v5266_v44 }
 0x3c1   : > { %v2998_v59 = vrot.slane %v2997_v15, 1 }
 0x3c2   : > { %v3415_v50 = vadd.f32 %v3414_v63, %v3413_v40  ;;  %v3193_v39 = vadd.f32 %v4446_v51, %v3192_v21 }
 0x3c3   : > { %v2999_v49 = vadd.f32 %v2998_v59, %v2997_v15 }
 0x3c4   : > { %v3416_v19 = vrot.slane %v3415_v50, 1  ;;  %v3197_v24 = vsel %vm3196_vm11, %v4446_v51, %v3193_v39 }
 0x3c5   : > { %v6304_v46 = vpop.eup %4447  ;;  %v3202_v56 = vsel %vm3199_vm13, %v3201_v10, %v3197_v24  ;;  %4451 = vrcp.f32 %v2999_v49  ;;  %v3214_v16 = vand.u32 2147483648, %v2999_v49  ;;  %v3212_v55 = vand.u32 2147483647, %v2999_v49  ;;  %v6498_v24 = vld [vmem:[#allocation44_spill] sm:$0xff] }
 0x3c6   : > { %v6308_v17 = vpop.eup %4449  ;;  %v3417_v18 = vadd.f32 %v3416_v19, %v3415_v50  ;;  %v3257_v26 = vmul.f32 %v6272_v42, %v3202_v56  ;;  %v3258_v31 = vmul.f32 %v6275_v32, %v3202_v56  ;;  %vm3208_vm14 = vweird.f32 %v2999_v49  ;;  %v6499_v56 = vld [vmem:[#allocation54_spill] sm:$0xff] }
 0x3c7   : > { %v3000_v9 = vadd.f32 %v6308_v17, %v6304_v46  ;;  %vm3213_vm1 = vcmp.eq.f32.partialorder %v3212_v55, 8.507059e+37  ;;  %v3293_v28 = vadd.f32 %v6498_v24, %v5258_v35  ;;  %v3294_v37 = vadd.f32 %v6499_v56, %v5266_v44 }
 0x3c8   : > { %v3321_v14 = vmul.f32 %v3289_v30, %v3257_v26  ;;  %v3322_v34 = vmul.f32 %v3290_v57, %v3258_v31  ;;  %v3472_v4 = vsel %vm3461_vm12, %v3417_v18, %v3471_v47  ;;  %v3215_v47 = vor.u32 1.1754944e-38, %v3214_v16 }
 0x3c9   : > { %v3001_v53 = vrot.slane %v3000_v9, 4 }
 0x3ca   : > { %v3418_v43 = vadd.f32 %v3322_v34, %v3321_v14 }
 0x3cb   : > { %v4452_v7 = vpop.eup %4451  ;;  %v3002_v45 = vadd.f32 %v3001_v53, %v3000_v9 }
 0x3cc   : > { %v3419_v11 = vrot.slane %v3418_v43, 4  ;;  %v3204_v58 = vmul.f32 %v4452_v7, %v2999_v49  ;;  %vm3209_vm10 = vweird.f32 %v4452_v7 }
 0x3cd   : > { %v3003_v38 = vrot.slane %v3002_v45, 2  ;;  %vm3210_vm12 = vmor %vm3208_vm14, %vm3209_vm10 }
 0x3ce   : > { %v3420_v13 = vadd.f32 %v3419_v11, %v3418_v43  ;;  %v3205_v8 = vsub.f32 1.0, %v3204_v58 }
 0x3cf   : > { %v3004_v42 = vadd.f32 %v3003_v38, %v3002_v45 }
 0x3d0   : > { %v3421_v61 = vrot.slane %v3420_v13, 2  ;;  %v3206_v32 = vmul.f32 %v4452_v7, %v3205_v8 }
 0x3d1   : > { %v3005_v12 = vrot.slane %v3004_v42, 1 }
 0x3d2   : > { %v3422_v41 = vadd.f32 %v3421_v61, %v3420_v13  ;;  %v3207_v2 = vadd.f32 %v4452_v7, %v3206_v32 }
 0x3d3   : > { %v3006_v1 = vadd.f32 %v3005_v12, %v3004_v42 }
 0x3d4   : > { %v3423_v52 = vrot.slane %v3422_v41, 1  ;;  %v3211_v6 = vsel %vm3210_vm12, %v4452_v7, %v3207_v2 }
 0x3d5   : > { %v3216_v51 = vsel %vm3213_vm1, %v3215_v47, %v3211_v6  ;;  %4453 = vrcp.f32 %v3006_v1  ;;  %v3228_v21 = vand.u32 2147483648, %v3006_v1  ;;  %v3226_v39 = vand.u32 2147483647, %v3006_v1 }
 0x3d6   : > { %v3424_v36 = vadd.f32 %v3423_v52, %v3422_v41  ;;  %v3259_v54 = vmul.f32 %v6291_v48, %v3216_v51  ;;  %v3260_v62 = vmul.f32 %v6295_v60, %v3216_v51  ;;  %vm3222_vm15 = vweird.f32 %v3006_v1 }
 0x3d7   : > { %v3229_v48 = vor.u32 1.1754944e-38, %v3228_v21 }
 0x3d8   : > { %v3323_v27 = vmul.f32 %v3291_v23, %v3259_v54  ;;  %v3324_v22 = vmul.f32 %v3292_v29, %v3260_v62  ;;  %v3473_v33 = vsel %vm3463_vm2, %v3424_v36, %v3472_v4  ;;  %vm3227_vm2 = vcmp.eq.f32.partialorder %v3226_v39, 8.507059e+37 }
 0x3da   : > { %v3425_v40 = vadd.f32 %v3324_v22, %v3323_v27 }
 0x3db   : > { %v4454_v25 = vpop.eup %4453 }
 0x3dc   : > { %v3426_v5 = vrot.slane %v3425_v40, 4  ;;  %v3218_v3 = vmul.f32 %v4454_v25, %v3006_v1  ;;  %vm3223_vm3 = vweird.f32 %v4454_v25 }
 0x3dd   : > { %vm3224_vm4 = vmor %vm3222_vm15, %vm3223_vm3 }
 0x3de   : > { %v3427_v15 = vadd.f32 %v3426_v5, %v3425_v40  ;;  %v3219_v63 = vsub.f32 1.0, %v3218_v3 }
 0x3e0   : > { %v3428_v59 = vrot.slane %v3427_v15, 2  ;;  %v3220_v50 = vmul.f32 %v4454_v25, %v3219_v63 }
 0x3e2   : > { %v3429_v10 = vadd.f32 %v3428_v59, %v3427_v15  ;;  %v3221_v49 = vadd.f32 %v4454_v25, %v3220_v50 }
 0x3e4   : > { %v3430_v60 = vrot.slane %v3429_v10, 1  ;;  %v3225_v19 = vsel %vm3224_vm4, %v4454_v25, %v3221_v49 }
 0x3e5   : > { %v3230_v30 = vsel %vm3227_vm2, %v3229_v48, %v3225_v19 }
 0x3e6   : > { %v3431_v57 = vadd.f32 %v3430_v60, %v3429_v10  ;;  %v3261_v18 = vmul.f32 %v6304_v46, %v3230_v30  ;;  %v3262_v26 = vmul.f32 %v6308_v17, %v3230_v30 }
 0x3e8   : > { %v3325_v31 = vmul.f32 %v3293_v28, %v3261_v18  ;;  %v3326_v9 = vmul.f32 %v3294_v37, %v3262_v26  ;;  %v3474_v14 = vsel %vm3465_vm8, %v3431_v57, %v3473_v33 }
 0x3ea   : > { %v3432_v34 = vadd.f32 %v3326_v9, %v3325_v31 }
 0x3ec   : > { %v3433_v4 = vrot.slane %v3432_v34, 4 }
 0x3ee   : > { %v3434_v35 = vadd.f32 %v3433_v4, %v3432_v34 }
 0x3f0   : > { %v3435_v53 = vrot.slane %v3434_v35, 2 }
 0x3f2   : > { %v3436_v44 = vadd.f32 %v3435_v53, %v3434_v35 }
 0x3f4   : > { %v3437_v46 = vrot.slane %v3436_v44, 1 }
 0x3f6   : > { %v3438_v17 = vadd.f32 %v3437_v46, %v3436_v44 }
 0x3f8   : > { %v3475_v43 = vsel %vm3467_vm0, %v3438_v17, %v3474_v14 }
 0x3f9   : > { %3479 = vst [vmem:[%s6194_s4 + $0x8] sm:$0xff] %v3475_v43 }
 0x3fa   : > { %4723 = shalt.err (!%p4720_p0)
}
 0x3fb   : > { %s4812_s25 = smov 128   ;;  %s4813_s17 = smov 8  }
 0x3fc   : > { %4252 = dma.vmem_to_hbm [thread:$0]  (%p4965_p7), %s3496_s27, 256, %s3498_s29, %s3481_s12, %s4812_s25, %s4812_s25, %s4813_s17  }
 0x3fd PF: > { %s6502_s13 = sld [smem:[#allocation26_spill]]  ;;  %p4281_p3 = pnand %p3699_p11, %p4924_p6 }
 0x3ff   : > { %p4282_p5 = pneg %p4281_p3 }
 0x403   : > { %s3512_s18 = sand.u32 1, %s6502_s13  }
 0x404   : > { %s3513_s16 = scalar_lea.sflag [#allocation6], %s3512_s18 }
 0x405   : > { %4773 = dma.done.wait (%p4282_p5), %s3513_s16, 256  }
 0x406   : > { %4775 = vsyncadd (%p4282_p5), %s3513_s16, 4294967040  ;;  %s36_s26 = sadd.s32 1, %s4798_s26   ;;  %s6504_s14 = sld [smem:[#allocation32_spill]] }
 0x407   : > { %p33_p9 = scmp.ge.s32.totalorder %s36_s26, 4   ;;  %s6505_s24 = sld [smem:[#allocation28_spill]] }
 0x408   : > { %s6506_s25 = sld [smem:[#allocation30_spill]]  ;;  %s6507_s21 = smov %s4782_s22 }
 0x409   : > { %s6508_s22 = smov %s4786_s23  ;;  %35 = sbr.rel (!%p33_p9) target bundleno = 20 (0x14), region = 170 }
 0x40c   : > { %s6509_s23 = smov %s6504_s14 }
 0x40e   :  { %3519 = vsyncpa [#allocation5], 1 }
 0x40f   :  { %3521 = vsyncpa [#allocation5 + $0x1], 1 }
 0x410   :  { %3522 = vsyncpa [#allocation8], 1 }
 0x411   :  { %3524 = vsyncpa [#allocation8 + $0x1], 1 }
 0x412   :  { %3525 = vsyncpa [#allocation11], 1 }
 0x413   :  { %3527 = vsyncpa [#allocation11 + $0x1], 1 }
 0x414   :  { %3528 = vsyncpa [#allocation14], 1 }
 0x415   :  { %3529 = vsyncpa [#allocation17], 1 }
 0x416   :  { %3530 = vsyncpa [#allocation6], 1 }
 0x417   :  { %3532 = vsyncpa [#allocation6 + $0x1], 1 }

</bundles_post_ra>
